<compile_context>
chip_gen: v5e
topology: v5e:2x2
jax: 0.10.0
libtpu: 0.0.40
codegen_flags: <defaults>
</compile_context>

<pallas_src>
import functools

import jax
import jax.numpy as jnp
from jax.experimental import pallas as pl
from jax.experimental.pallas import tpu as pltpu

EPS = 1e-5
LANE = 128                      # lane width -> channel padding target
SUBLANE = 8
TM_TARGET = 512                 # rows per M tile (fits v7x 64 MiB VMEM w/ 2x buffering)
VMEM_LIMIT = 48 * 1024 * 1024   # explicit scoped-VMEM limit (v7x physical is 64 MiB)


def _round_up(x, m):
    return (x + m - 1) // m * m


def _cparams():
    return pltpu.CompilerParams(
        dimension_semantics=("parallel",),   # M tiles are independent (2 TCs on v7x)
        vmem_limit_bytes=VMEM_LIMIT)


# ----------------------------- Pallas kernels ------------------------------

def conv_stats_kernel(p_ref, w_ref, y_ref, st_ref):
    """One M tile of an im2col conv: y = P @ W (bf16 in, f32 acc) plus per-tile
    per-channel sum / sum-of-squares for two-pass training-mode BatchNorm."""
    y = jnp.dot(p_ref[...], w_ref[...], preferred_element_type=jnp.float32)
    y_ref[...] = y
    s = jnp.sum(y, axis=0, keepdims=True)          # (1, C)
    sq = jnp.sum(y * y, axis=0, keepdims=True)     # (1, C)
    st_ref[...] = jnp.concatenate([s, sq], axis=0).reshape(st_ref.shape)


def affine_relu_kernel(y_ref, sc_ref, sh_ref, o_ref):
    """BN (precomputed per-channel scale/shift) + ReLU; epilogue in f32."""
    o_ref[...] = jnp.maximum(
        y_ref[...] * sc_ref[...] + sh_ref[...], 0.0).astype(o_ref.dtype)


def affine_add_relu_kernel(y_ref, sc_ref, sh_ref, id_ref, o_ref):
    """BN2 + identity skip + ReLU."""
    o_ref[...] = jnp.maximum(
        y_ref[...] * sc_ref[...] + sh_ref[...] + id_ref[...], 0.0)


def affine_add_ds_relu_kernel(y_ref, sc_ref, sh_ref, yd_ref, scd_ref, shd_ref, o_ref):
    """BN2 + (1x1 conv + BN)-downsampled skip + ReLU."""
    main = y_ref[...] * sc_ref[...] + sh_ref[...]
    skip = yd_ref[...] * scd_ref[...] + shd_ref[...]
    o_ref[...] = jnp.maximum(main + skip, 0.0)


# --------------------------- pallas_call wrappers ----------------------------

def _conv_matmul_stats(patches_bf16, w_bf16, tm):
    """Tiled (Mp, K) @ (K, C) -> f32 (Mp, C) plus per-tile stats (nt, 2, C)."""
    Mp, K = patches_bf16.shape
    C = w_bf16.shape[1]
    nt = Mp // tm
    y, st = pl.pallas_call(
        conv_stats_kernel,
        grid=(nt,),
        in_specs=[
            pl.BlockSpec((tm, K), lambda i: (i, 0)),
            pl.BlockSpec((K, C), lambda i: (0, 0)),      # weights pinned in VMEM
        ],
        out_specs=[
            pl.BlockSpec((tm, C), lambda i: (i, 0)),
            pl.BlockSpec((1, 2, C), lambda i: (i, 0, 0)),
        ],
        out_shape=[
            jax.ShapeDtypeStruct((Mp, C), jnp.float32),
            jax.ShapeDtypeStruct((nt, 2, C), jnp.float32),
        ],
        compiler_params=_cparams(),
    )(patches_bf16, w_bf16)
    return y, st


def _bn_scale_shift(stats, gamma_p, beta_p, m_real):
    """Reduce per-tile stats -> per-channel affine (scale, shift) in f32."""
    s = jnp.sum(stats[:, 0, :], axis=0)
    sq = jnp.sum(stats[:, 1, :], axis=0)
    mean = s / m_real
    var = jnp.maximum(sq / m_real - mean * mean, 0.0)     # biased variance
    scale = gamma_p * jax.lax.rsqrt(var + EPS)
    shift = beta_p - mean * scale
    return scale.reshape(1, -1), shift.reshape(1, -1)


def _affine_relu(y, scale, shift, tm, out_dtype):
    Mp, C = y.shape
    return pl.pallas_call(
        affine_relu_kernel,
        grid=(Mp // tm,),
        in_specs=[
            pl.BlockSpec((tm, C), lambda i: (i, 0)),
            pl.BlockSpec((1, C), lambda i: (0, 0)),
            pl.BlockSpec((1, C), lambda i: (0, 0)),
        ],
        out_specs=pl.BlockSpec((tm, C), lambda i: (i, 0)),
        out_shape=jax.ShapeDtypeStruct((Mp, C), out_dtype),
        compiler_params=_cparams(),
    )(y, scale, shift)


def _affine_add_relu(y, scale, shift, idn, tm):
    Mp, C = y.shape
    return pl.pallas_call(
        affine_add_relu_kernel,
        grid=(Mp // tm,),
        in_specs=[
            pl.BlockSpec((tm, C), lambda i: (i, 0)),
            pl.BlockSpec((1, C), lambda i: (0, 0)),
            pl.BlockSpec((1, C), lambda i: (0, 0)),
            pl.BlockSpec((tm, C), lambda i: (i, 0)),
        ],
        out_specs=pl.BlockSpec((tm, C), lambda i: (i, 0)),
        out_shape=jax.ShapeDtypeStruct((Mp, C), jnp.float32),
        compiler_params=_cparams(),
    )(y, scale, shift, idn)


def _affine_add_ds_relu(y, scale, shift, yd, scaled, shiftd, tm):
    Mp, C = y.shape
    return pl.pallas_call(
        affine_add_ds_relu_kernel,
        grid=(Mp // tm,),
        in_specs=[
            pl.BlockSpec((tm, C), lambda i: (i, 0)),
            pl.BlockSpec((1, C), lambda i: (0, 0)),
            pl.BlockSpec((1, C), lambda i: (0, 0)),
            pl.BlockSpec((tm, C), lambda i: (i, 0)),
            pl.BlockSpec((1, C), lambda i: (0, 0)),
            pl.BlockSpec((1, C), lambda i: (0, 0)),
        ],
        out_specs=pl.BlockSpec((tm, C), lambda i: (i, 0)),
        out_shape=jax.ShapeDtypeStruct((Mp, C), jnp.float32),
        compiler_params=_cparams(),
    )(y, scale, shift, yd, scaled, shiftd)


# ------------------------------- layout glue ---------------------------------

def _im2col(x_nhwc, ksize, stride, pad):
    """(N,H,W,C) -> (N*Ho*Wo, ksize*ksize*C); columns are tap-major then channel."""
    N, H, W, C = x_nhwc.shape
    xp = jnp.pad(x_nhwc, ((0, 0), (pad, pad), (pad, pad), (0, 0)))
    Ho = (H + 2 * pad - ksize) // stride + 1
    Wo = (W + 2 * pad - ksize) // stride + 1
    cols = []
    for ky in range(ksize):
        for kx in range(ksize):
            sl = xp[:, ky:ky + (Ho - 1) * stride + 1:stride,
                       kx:kx + (Wo - 1) * stride + 1:stride, :]
            cols.append(sl)
    patches = jnp.concatenate(cols, axis=-1)
    return patches.reshape(N * Ho * Wo, ksize * ksize * C)


def _pack_w3x3(w_oihw, cin_p, cout_p):
    o, i, kh, kw = w_oihw.shape
    w = jnp.transpose(w_oihw, (2, 3, 1, 0))                        # (kh,kw,cin,cout)
    w = jnp.pad(w, ((0, 0), (0, 0), (0, cin_p - i), (0, cout_p - o)))
    return w.reshape(kh * kw * cin_p, cout_p).astype(jnp.bfloat16)


def _pack_w1x1(w_oihw, cin_p, cout_p):
    o, i = w_oihw.shape[0], w_oihw.shape[1]
    w = w_oihw.reshape(o, i).T                                      # (cin, cout)
    w = jnp.pad(w, ((0, cin_p - i), (0, cout_p - o)))
    return w.astype(jnp.bfloat16)


def _pad_vec(v, n, fill):
    return jnp.pad(v.astype(jnp.float32), (0, n - v.shape[0]), constant_values=fill)


# ------------------------------ block forward --------------------------------

@functools.partial(jax.jit, static_argnames=("stride", "is_first_block"))
def residual_block_forward(x_nchw, params, stride=1, is_first_block=False):
    x = jnp.transpose(x_nchw, (0, 2, 3, 1)).astype(jnp.float32)     # NCHW -> NHWC
    N, H, W, Cin = x.shape
    Cout = params['conv1_w'].shape[0]
    has_ds = is_first_block and stride != 1
    if not has_ds:
        assert stride == 1 and Cin == Cout, (
            "identity skip requires stride==1 and in_channels==out_channels")

    Cin_p = _round_up(Cin, LANE)
    Cout_p = _round_up(Cout, LANE)

    # channel-pad once; bf16 copy feeds the MXU, f32 copy is kept for the skip.
    xp = jnp.pad(x, ((0, 0), (0, 0), (0, 0), (0, Cin_p - Cin)))
    xp_bf = xp.astype(jnp.bfloat16)

    Ho = (H + 2 - 3) // stride + 1
    Wo = (W + 2 - 3) // stride + 1
    M = N * Ho * Wo
    tm = min(TM_TARGET, _round_up(M, SUBLANE))
    Mp = _round_up(M, tm)
    m_real = float(M)

    # ---- conv1 + (two-pass) BN1 + ReLU -------------------------------------
    p1 = jnp.pad(_im2col(xp_bf, 3, stride, 1), ((0, Mp - M), (0, 0)))
    w1 = _pack_w3x3(params['conv1_w'], Cin_p, Cout_p)
    y1, st1 = _conv_matmul_stats(p1, w1, tm)
    sc1, sh1 = _bn_scale_shift(st1, _pad_vec(params['bn1_g'], Cout_p, 1.0),
                               _pad_vec(params['bn1_b'], Cout_p, 0.0), m_real)
    y1n = _affine_relu(y1, sc1, sh1, tm, jnp.bfloat16)   # bf16: feeds next matmul

    # ---- conv2 + (two-pass) BN2 ---------------------------------------------
    y1n_nhwc = y1n[:M].reshape(N, Ho, Wo, Cout_p)
    p2 = jnp.pad(_im2col(y1n_nhwc, 3, 1, 1), ((0, Mp - M), (0, 0)))
    w2 = _pack_w3x3(params['conv2_w'], Cout_p, Cout_p)
    y2, st2 = _conv_matmul_stats(p2, w2, tm)
    sc2, sh2 = _bn_scale_shift(st2, _pad_vec(params['bn2_g'], Cout_p, 1.0),
                               _pad_vec(params['bn2_b'], Cout_p, 0.0), m_real)

    # ---- skip path + fused add + ReLU ---------------------------------------
    if has_ds:
        # 1x1 strided conv on the skip (matmul, K = Cin_p) + its own BN stats.
        idp = xp_bf[:, ::stride, ::stride, :].reshape(M, Cin_p)
        idp = jnp.pad(idp, ((0, Mp - M), (0, 0)))
        wd = _pack_w1x1(params['convd_w'], Cin_p, Cout_p)
        yd, std_ = _conv_matmul_stats(idp, wd, tm)
        scd, shd = _bn_scale_shift(std_, _pad_vec(params['bnd_g'], Cout_p, 1.0),
                                   _pad_vec(params['bnd_b'], Cout_p, 0.0), m_real)
        out = _affine_add_ds_relu(y2, sc2, sh2, yd, scd, shd, tm)
    else:
        idn = jnp.pad(xp.reshape(M, Cin_p), ((0, Mp - M), (0, 0)))
        out = _affine_add_relu(y2, sc2, sh2, idn, tm)

    out = out[:M, :Cout].reshape(N, Ho, Wo, Cout)
    return jnp.transpose(out, (0, 3, 1, 2))                          # NHWC -> NCHW


# --------------------- deterministic parameter init --------------------------

def init_params(key, in_channels, out_channels, has_ds):
    ks = jax.random.split(key, 9)
    p = {
        'conv1_w': 0.1 * jax.random.normal(ks[0], (out_channels, in_channels, 3, 3), jnp.float32),
        'bn1_g': 1.0 + 0.1 * jax.random.normal(ks[1], (out_channels,), jnp.float32),
        'bn1_b': 0.1 * jax.random.normal(ks[2], (out_channels,), jnp.float32),
        'conv2_w': 0.1 * jax.random.normal(ks[3], (out_channels, out_channels, 3, 3), jnp.float32),
        'bn2_g': 1.0 + 0.1 * jax.random.normal(ks[4], (out_channels,), jnp.float32),
        'bn2_b': 0.1 * jax.random.normal(ks[5], (out_channels,), jnp.float32),
    }
    if has_ds:
        p['convd_w'] = 0.1 * jax.random.normal(ks[6], (out_channels, in_channels, 1, 1), jnp.float32)
        p['bnd_g'] = 1.0 + 0.1 * jax.random.normal(ks[7], (out_channels,), jnp.float32)
        p['bnd_b'] = 0.1 * jax.random.normal(ks[8], (out_channels,), jnp.float32)
    return p


# ------------------------ pure-JAX reference check ---------------------------
# Reference uses the same numerics as the kernels (bf16 conv operands, f32
# accumulation, f32 training-mode BN) so the tolerance can stay meaningful.

def residual_block_reference(x_nchw, params, stride, is_first_block):
    def conv(x, w, s, pad):
        return jax.lax.conv_general_dilated(
            x.astype(jnp.bfloat16), w.astype(jnp.bfloat16),
            window_strides=(s, s), padding=[(pad, pad), (pad, pad)],
            dimension_numbers=('NCHW', 'OIHW', 'NCHW'),
            preferred_element_type=jnp.float32)

    def bn(x, g, b):
        mean = jnp.mean(x, axis=(0, 2, 3), keepdims=True)
        var = jnp.mean((x - mean) ** 2, axis=(0, 2, 3), keepdims=True)
        return ((x - mean) * jax.lax.rsqrt(var + EPS)
                * g.reshape(1, -1, 1, 1) + b.reshape(1, -1, 1, 1))

    identity = x_nchw.astype(jnp.float32)
    y = jax.nn.relu(bn(conv(x_nchw, params['conv1_w'], stride, 1),
                       params['bn1_g'], params['bn1_b']))
    y = bn(conv(y, params['conv2_w'], 1, 1), params['bn2_g'], params['bn2_b'])
    if is_first_block and stride != 1:
        identity = bn(conv(x_nchw, params['convd_w'], stride, 0),
                      params['bnd_g'], params['bnd_b'])
    return jax.nn.relu(y + identity)


# ---------------------------------- main --------------------------------------

if __name__ == "__main__":
    key = jax.random.PRNGKey(0)
    kx, kpa, kpb = jax.random.split(key, 3)
    x = jax.random.normal(kx, (2, 4, 16, 16), jnp.float32)   # NCHW, like PyTorch

    # Case 1: stride=1, Cin==Cout -> plain identity skip.
    pa = init_params(kpa, 4, 4, has_ds=False)
    out_a = jax.block_until_ready(
        residual_block_forward(x, pa, stride=1, is_first_block=False))
    ref_a = residual_block_reference(x, pa, 1, False)
    assert out_a.shape == (2, 4, 16, 16)
    err_a = float(jnp.max(jnp.abs(out_a - ref_a)))
    assert err_a < 3e-2, f"case1 max abs err {err_a}"

    # Case 2: stride=2, first block -> 1x1-conv + BN downsample on the skip.
    pb = init_params(kpb, 4, 8, has_ds=True)
    out_b = jax.block_until_ready(
        residual_block_forward(x, pb, stride=2, is_first_block=True))
    ref_b = residual_block_reference(x, pb, 2, True)
    assert out_b.shape == (2, 8, 8, 8)
    err_b = float(jnp.max(jnp.abs(out_b - ref_b)))
    assert err_b < 3e-2, f"case2 max abs err {err_b}"

    print("KERNEL_OK")
</pallas_src>

<mosaic_0001>
module attributes {stable_mosaic.version = 11 : i64} {
  func.func @conv_stats_kernel(%arg0: i32, %arg1: memref<512x1152xbf16, #tpu.memory_space<vmem>>, %arg2: memref<1152x128xbf16, #tpu.memory_space<vmem>>, %arg3: memref<512x128xf32, #tpu.memory_space<vmem>>, %arg4: memref<1x2x128xf32, #tpu.memory_space<vmem>>) attributes {dimension_semantics = [#tpu.dimension_semantics<parallel>], iteration_bounds = array<i64: 1>, scalar_prefetch = 0 : i64, scratch_operands = 0 : i64, tpu.core_type = #tpu.core_type<tc>, window_params = [{transform_indices = @transform_0, window_bounds = array<i64: 512, 1152>}, {pipeline_mode = #tpu.pipeline_mode<synchronous>, transform_indices = @transform_1, window_bounds = array<i64: 1152, 128>}, {transform_indices = @transform_2, window_bounds = array<i64: 512, 128>}, {transform_indices = @transform_3, window_bounds = array<i64: 1, 2, 128>}]} {
    %c0 = arith.constant 0 : index
    %c0_0 = arith.constant 0 : index
    %0 = vector.load %arg1[%c0, %c0_0] : memref<512x1152xbf16, #tpu.memory_space<vmem>>, vector<512x1152xbf16>
    %c0_1 = arith.constant 0 : index
    %c0_2 = arith.constant 0 : index
    %1 = vector.load %arg2[%c0_1, %c0_2] : memref<1152x128xbf16, #tpu.memory_space<vmem>>, vector<1152x128xbf16>
    %cst = arith.constant dense<0.000000e+00> : vector<512x128xf32>
    %2 = tpu.matmul %0, %1, %cst {dimension_numbers = #tpu.dot_dimension_numbers<[1], [0], [0], [1], [0, 0, 1, 1], [], []>} : vector<512x1152xbf16>, vector<1152x128xbf16>, vector<512x128xf32> -> vector<512x128xf32>
    %c0_3 = arith.constant 0 : index
    %c0_4 = arith.constant 0 : index
    %3 = vector.load %arg3[%c0_3, %c0_4] : memref<512x128xf32, #tpu.memory_space<vmem>>, vector<512x128xf32>
    tpu.vector_store %arg3[%c0_3, %c0_4], %2 {strides = array<i32>} : memref<512x128xf32, #tpu.memory_space<vmem>>, vector<512x128xf32>,
    %cst_5 = arith.constant dense<0.000000e+00> : vector<128xf32>
    %4 = vector.multi_reduction <add>, %2, %cst_5 [0] : vector<512x128xf32> to vector<128xf32>
    %5 = vector.shape_cast %4 : vector<128xf32> to vector<1x128xf32>
    %6 = arith.mulf %2, %2 : vector<512x128xf32>
    %cst_6 = arith.constant dense<0.000000e+00> : vector<128xf32>
    %7 = vector.multi_reduction <add>, %6, %cst_6 [0] : vector<512x128xf32> to vector<128xf32>
    %8 = vector.shape_cast %7 : vector<128xf32> to vector<1x128xf32>
    %9 = tpu.concatenate %5, %8 in 0 : vector<1x128xf32>, vector<1x128xf32> -> vector<2x128xf32>
    %10 = vector.shape_cast %9 : vector<2x128xf32> to vector<1x2x128xf32>
    %c0_7 = arith.constant 0 : index
    %c0_8 = arith.constant 0 : index
    %c0_9 = arith.constant 0 : index
    %11 = vector.load %arg4[%c0_7, %c0_8, %c0_9] : memref<1x2x128xf32, #tpu.memory_space<vmem>>, vector<1x2x128xf32>
    tpu.vector_store %arg4[%c0_7, %c0_8, %c0_9], %10 {strides = array<i32>} : memref<1x2x128xf32, #tpu.memory_space<vmem>>, vector<1x2x128xf32>,
    return
  }
  func.func @transform_0(%arg0: i32) -> (i32, i32) {
    %c0_i32 = arith.constant 0 : i32
    %c0_i32_0 = arith.constant 0 : i32
    return %arg0, %c0_i32 : i32, i32
  }
  func.func @transform_1(%arg0: i32) -> (i32, i32) {
    %c0_i32 = arith.constant 0 : i32
    %c0_i32_0 = arith.constant 0 : i32
    %c0_i32_1 = arith.constant 0 : i32
    return %c0_i32, %c0_i32_0 : i32, i32
  }
  func.func @transform_2(%arg0: i32) -> (i32, i32) {
    %c0_i32 = arith.constant 0 : i32
    %c0_i32_0 = arith.constant 0 : i32
    return %arg0, %c0_i32 : i32, i32
  }
  func.func @transform_3(%arg0: i32) -> (i32, i32, i32) {
    %c0_i32 = arith.constant 0 : i32
    %c0_i32_0 = arith.constant 0 : i32
    %c0_i32_1 = arith.constant 0 : i32
    return %arg0, %c0_i32, %c0_i32_0 : i32, i32, i32
  }
}

module attributes {stable_mosaic.version = 11 : i64} {
  func.func @affine_relu_kernel(%arg0: i32, %arg1: memref<512x128xf32, #tpu.memory_space<vmem>>, %arg2: memref<1x128xf32, #tpu.memory_space<vmem>>, %arg3: memref<1x128xf32, #tpu.memory_space<vmem>>, %arg4: memref<512x128xbf16, #tpu.memory_space<vmem>>) attributes {dimension_semantics = [#tpu.dimension_semantics<parallel>], iteration_bounds = array<i64: 1>, scalar_prefetch = 0 : i64, scratch_operands = 0 : i64, tpu.core_type = #tpu.core_type<tc>, window_params = [{transform_indices = @transform_0, window_bounds = array<i64: 512, 128>}, {pipeline_mode = #tpu.pipeline_mode<synchronous>, transform_indices = @transform_1, window_bounds = array<i64: 1, 128>}, {pipeline_mode = #tpu.pipeline_mode<synchronous>, transform_indices = @transform_2, window_bounds = array<i64: 1, 128>}, {transform_indices = @transform_3, window_bounds = array<i64: 512, 128>}]} {
    %c0 = arith.constant 0 : index
    %c0_0 = arith.constant 0 : index
    %0 = vector.load %arg1[%c0, %c0_0] : memref<512x128xf32, #tpu.memory_space<vmem>>, vector<512x128xf32>
    %c0_1 = arith.constant 0 : index
    %c0_2 = arith.constant 0 : index
    %1 = vector.load %arg2[%c0_1, %c0_2] : memref<1x128xf32, #tpu.memory_space<vmem>>, vector<1x128xf32>
    %2 = vector.broadcast %1 : vector<1x128xf32> to vector<512x128xf32>
    %3 = arith.mulf %0, %2 : vector<512x128xf32>
    %c0_3 = arith.constant 0 : index
    %c0_4 = arith.constant 0 : index
    %4 = vector.load %arg3[%c0_3, %c0_4] : memref<1x128xf32, #tpu.memory_space<vmem>>, vector<1x128xf32>
    %5 = vector.broadcast %4 : vector<1x128xf32> to vector<512x128xf32>
    %6 = arith.addf %3, %5 : vector<512x128xf32>
    %cst = arith.constant 0.000000e+00 : f32
    %7 = vector.broadcast %cst : f32 to vector<512x128xf32>
    %8 = arith.maximumf %6, %7 : vector<512x128xf32>
    %9 = arith.truncf %8 : vector<512x128xf32> to vector<512x128xbf16>
    %c0_5 = arith.constant 0 : index
    %c0_6 = arith.constant 0 : index
    %10 = vector.load %arg4[%c0_5, %c0_6] : memref<512x128xbf16, #tpu.memory_space<vmem>>, vector<512x128xbf16>
    tpu.vector_store %arg4[%c0_5, %c0_6], %9 {strides = array<i32>} : memref<512x128xbf16, #tpu.memory_space<vmem>>, vector<512x128xbf16>,
    return
  }
  func.func @transform_0(%arg0: i32) -> (i32, i32) {
    %c0_i32 = arith.constant 0 : i32
    %c0_i32_0 = arith.constant 0 : i32
    return %arg0, %c0_i32 : i32, i32
  }
  func.func @transform_1(%arg0: i32) -> (i32, i32) {
    %c0_i32 = arith.constant 0 : i32
    %c0_i32_0 = arith.constant 0 : i32
    %c0_i32_1 = arith.constant 0 : i32
    return %c0_i32, %c0_i32_0 : i32, i32
  }
  func.func @transform_2(%arg0: i32) -> (i32, i32) {
    %c0_i32 = arith.constant 0 : i32
    %c0_i32_0 = arith.constant 0 : i32
    %c0_i32_1 = arith.constant 0 : i32
    return %c0_i32, %c0_i32_0 : i32, i32
  }
  func.func @transform_3(%arg0: i32) -> (i32, i32) {
    %c0_i32 = arith.constant 0 : i32
    %c0_i32_0 = arith.constant 0 : i32
    return %arg0, %c0_i32 : i32, i32
  }
}

module attributes {stable_mosaic.version = 11 : i64} {
  func.func @affine_add_relu_kernel(%arg0: i32, %arg1: memref<512x128xf32, #tpu.memory_space<vmem>>, %arg2: memref<1x128xf32, #tpu.memory_space<vmem>>, %arg3: memref<1x128xf32, #tpu.memory_space<vmem>>, %arg4: memref<512x128xf32, #tpu.memory_space<vmem>>, %arg5: memref<512x128xf32, #tpu.memory_space<vmem>>) attributes {dimension_semantics = [#tpu.dimension_semantics<parallel>], iteration_bounds = array<i64: 1>, scalar_prefetch = 0 : i64, scratch_operands = 0 : i64, tpu.core_type = #tpu.core_type<tc>, window_params = [{transform_indices = @transform_0, window_bounds = array<i64: 512, 128>}, {pipeline_mode = #tpu.pipeline_mode<synchronous>, transform_indices = @transform_1, window_bounds = array<i64: 1, 128>}, {pipeline_mode = #tpu.pipeline_mode<synchronous>, transform_indices = @transform_2, window_bounds = array<i64: 1, 128>}, {transform_indices = @transform_3, window_bounds = array<i64: 512, 128>}, {transform_indices = @transform_4, window_bounds = array<i64: 512, 128>}]} {
    %c0 = arith.constant 0 : index
    %c0_0 = arith.constant 0 : index
    %0 = vector.load %arg1[%c0, %c0_0] : memref<512x128xf32, #tpu.memory_space<vmem>>, vector<512x128xf32>
    %c0_1 = arith.constant 0 : index
    %c0_2 = arith.constant 0 : index
    %1 = vector.load %arg2[%c0_1, %c0_2] : memref<1x128xf32, #tpu.memory_space<vmem>>, vector<1x128xf32>
    %2 = vector.broadcast %1 : vector<1x128xf32> to vector<512x128xf32>
    %3 = arith.mulf %0, %2 : vector<512x128xf32>
    %c0_3 = arith.constant 0 : index
    %c0_4 = arith.constant 0 : index
    %4 = vector.load %arg3[%c0_3, %c0_4] : memref<1x128xf32, #tpu.memory_space<vmem>>, vector<1x128xf32>
    %5 = vector.broadcast %4 : vector<1x128xf32> to vector<512x128xf32>
    %6 = arith.addf %3, %5 : vector<512x128xf32>
    %c0_5 = arith.constant 0 : index
    %c0_6 = arith.constant 0 : index
    %7 = vector.load %arg4[%c0_5, %c0_6] : memref<512x128xf32, #tpu.memory_space<vmem>>, vector<512x128xf32>
    %8 = arith.addf %6, %7 : vector<512x128xf32>
    %cst = arith.constant 0.000000e+00 : f32
    %9 = vector.broadcast %cst : f32 to vector<512x128xf32>
    %10 = arith.maximumf %8, %9 : vector<512x128xf32>
    %c0_7 = arith.constant 0 : index
    %c0_8 = arith.constant 0 : index
    %11 = vector.load %arg5[%c0_7, %c0_8] : memref<512x128xf32, #tpu.memory_space<vmem>>, vector<512x128xf32>
    tpu.vector_store %arg5[%c0_7, %c0_8], %10 {strides = array<i32>} : memref<512x128xf32, #tpu.memory_space<vmem>>, vector<512x128xf32>,
    return
  }
  func.func @transform_0(%arg0: i32) -> (i32, i32) {
    %c0_i32 = arith.constant 0 : i32
    %c0_i32_0 = arith.constant 0 : i32
    return %arg0, %c0_i32 : i32, i32
  }
  func.func @transform_1(%arg0: i32) -> (i32, i32) {
    %c0_i32 = arith.constant 0 : i32
    %c0_i32_0 = arith.constant 0 : i32
    %c0_i32_1 = arith.constant 0 : i32
    return %c0_i32, %c0_i32_0 : i32, i32
  }
  func.func @transform_2(%arg0: i32) -> (i32, i32) {
    %c0_i32 = arith.constant 0 : i32
    %c0_i32_0 = arith.constant 0 : i32
    %c0_i32_1 = arith.constant 0 : i32
    return %c0_i32, %c0_i32_0 : i32, i32
  }
  func.func @transform_3(%arg0: i32) -> (i32, i32) {
    %c0_i32 = arith.constant 0 : i32
    %c0_i32_0 = arith.constant 0 : i32
    return %arg0, %c0_i32 : i32, i32
  }
  func.func @transform_4(%arg0: i32) -> (i32, i32) {
    %c0_i32 = arith.constant 0 : i32
    %c0_i32_0 = arith.constant 0 : i32
    return %arg0, %c0_i32 : i32, i32
  }
}

</mosaic_0001>

<bundles_post_ra>
// kernel: residual_block_forward.5
= control target key start
LH: loop header
LB: loop body
LE: loop exit
PB: predicated region body
PF: predicated region fallthrough
CT: control target
= control target key end

     0   :  { %s1049_s0 = inlined_call_operand.vmem [shape: f32[512,128], index: 0, kind: input, shape index: {}]   ;;  %s1050_s1 = inlined_call_operand.vmem [shape: f32[1,128], index: 1, kind: input, shape index: {}]   ;;  %s1051_s2 = inlined_call_operand.vmem [shape: f32[1,128], index: 2, kind: input, shape index: {}]   ;;  %s1052_s3 = inlined_call_operand.vmem [shape: bf16[512,128], index: 3, kind: output, shape index: {}]  }
   0x1   :  { %v14_v0 = vld [vmem:[%s1049_s0] sm:$0xff]  ;;  %v15_v1 = vld [vmem:[%s1049_s0 + $0x8] sm:$0xff]  ;;  %v16_v4 = vld [vmem:[%s1049_s0 + $0x10] sm:$0xff] }
   0x2   :  { %v632_v2 = vld [vmem:[%s1050_s1] ss:$0 sm:$0xff]  ;;  %v17_v5 = vld [vmem:[%s1049_s0 + $0x18] sm:$0xff]  ;;  %v19_v11 = vld [vmem:[%s1049_s0 + $0x28] sm:$0xff] }
   0x3   :  { %v637_v3 = vld [vmem:[%s1051_s2] ss:$0 sm:$0xff]  ;;  %v82_v7 = vmul.f32 %v632_v2, %v14_v0  ;;  %v83_v8 = vmul.f32 %v632_v2, %v15_v1  ;;  %v84_v9 = vmul.f32 %v632_v2, %v16_v4  ;;  %v85_v10 = vmul.f32 %v632_v2, %v17_v5  ;;  %v20_v12 = vld [vmem:[%s1049_s0 + $0x30] sm:$0xff]  ;;  %v21_v13 = vld [vmem:[%s1049_s0 + $0x38] sm:$0xff] }
   0x4   :  { %v18_v6 = vld [vmem:[%s1049_s0 + $0x20] sm:$0xff]  ;;  %v87_v15 = vmul.f32 %v632_v2, %v19_v11  ;;  %v88_v16 = vmul.f32 %v632_v2, %v20_v12  ;;  %v89_v17 = vmul.f32 %v632_v2, %v21_v13  ;;  %v23_v27 = vld [vmem:[%s1049_s0 + $0x48] sm:$0xff]  ;;  %v24_v32 = vld [vmem:[%s1049_s0 + $0x50] sm:$0xff] }
   0x5   :  { %v86_v14 = vmul.f32 %v632_v2, %v18_v6  ;;  %v150_v18 = vadd.f32 %v637_v3, %v82_v7  ;;  %v151_v19 = vadd.f32 %v637_v3, %v83_v8  ;;  %v152_v20 = vadd.f32 %v637_v3, %v84_v9  ;;  %v22_v26 = vld [vmem:[%s1049_s0 + $0x40] sm:$0xff]  ;;  %v25_v33 = vld [vmem:[%s1049_s0 + $0x58] sm:$0xff]  ;;  %v27_v39 = vld [vmem:[%s1049_s0 + $0x68] sm:$0xff] }
   0x6   :  { %v153_v21 = vadd.f32 %v637_v3, %v85_v10  ;;  %v155_v23 = vadd.f32 %v637_v3, %v87_v15  ;;  %v156_v24 = vadd.f32 %v637_v3, %v88_v16  ;;  %v157_v25 = vadd.f32 %v637_v3, %v89_v17  ;;  %v26_v38 = vld [vmem:[%s1049_s0 + $0x60] sm:$0xff]  ;;  %v28_v44 = vld [vmem:[%s1049_s0 + $0x70] sm:$0xff]  ;;  %v29_v45 = vld [vmem:[%s1049_s0 + $0x78] sm:$0xff] }
   0x7   :  { %v154_v22 = vadd.f32 %v637_v3, %v86_v14  ;;  %v214_v28 = vmax.f32 %v150_v18, 0.0  ;;  %v215_v29 = vmax.f32 %v151_v19, 0.0  ;;  %v216_v30 = vmax.f32 %v152_v20, 0.0  ;;  %v30_v58 = vld [vmem:[%s1049_s0 + $0x80] sm:$0xff]  ;;  %v31_v63 = vld [vmem:[%s1049_s0 + $0x88] sm:$0xff]  ;;  %v32_v6 = vld [vmem:[%s1049_s0 + $0x90] sm:$0xff] }
   0x8   :  { %v217_v31 = vmax.f32 %v153_v21, 0.0  ;;  %v219_v35 = vmax.f32 %v155_v23, 0.0  ;;  %v220_v36 = vmax.f32 %v156_v24, 0.0  ;;  %v221_v37 = vmax.f32 %v157_v25, 0.0  ;;  %v33_v7 = vld [vmem:[%s1049_s0 + $0x98] sm:$0xff]  ;;  %v34_v12 = vld [vmem:[%s1049_s0 + $0xa0] sm:$0xff] }
   0x9   :  { %v218_v34 = vmax.f32 %v154_v22, 0.0  ;;  %v413_v40 = vpack.c.bf16 %v215_v29, %v214_v28  ;;  %v90_v42 = vmul.f32 %v632_v2, %v22_v26  ;;  %v91_v43 = vmul.f32 %v632_v2, %v23_v27  ;;  %v35_v13 = vld [vmem:[%s1049_s0 + $0xa8] sm:$0xff]  ;;  %v36_v18 = vld [vmem:[%s1049_s0 + $0xb0] sm:$0xff]  ;;  %v37_v23 = vld [vmem:[%s1049_s0 + $0xb8] sm:$0xff] }
   0xa   :  { %v418_v41 = vpack.c.bf16 %v217_v31, %v216_v30  ;;  %v428_v47 = vpack.c.bf16 %v221_v37, %v220_v36  ;;  %v92_v48 = vmul.f32 %v632_v2, %v24_v32  ;;  %v93_v49 = vmul.f32 %v632_v2, %v25_v33  ;;  %v38_v28 = vld [vmem:[%s1049_s0 + $0xc0] sm:$0xff]  ;;  %v39_v37 = vld [vmem:[%s1049_s0 + $0xc8] sm:$0xff] }
   0xb   :  { %v423_v46 = vpack.c.bf16 %v219_v35, %v218_v34  ;;  %414 = vst [vmem:[%s1052_s3] sm:$0xff] %v413_v40   ;;  %v158_v50 = vadd.f32 %v637_v3, %v90_v42  ;;  %v159_v51 = vadd.f32 %v637_v3, %v91_v43  ;;  %v94_v52 = vmul.f32 %v632_v2, %v26_v38  ;;  %v40_v42 = vld [vmem:[%s1049_s0 + $0xd0] sm:$0xff]  ;;  %v41_v43 = vld [vmem:[%s1049_s0 + $0xd8] sm:$0xff] }
   0xc   :  { %v95_v53 = vmul.f32 %v632_v2, %v27_v39  ;;  %570 = vst [vmem:[%s1052_s3 + $0x8] sm:$0xff] %v418_v41   ;;  %v160_v54 = vadd.f32 %v637_v3, %v92_v48  ;;  %v161_v55 = vadd.f32 %v637_v3, %v93_v49  ;;  %v96_v56 = vmul.f32 %v632_v2, %v28_v44  ;;  %v42_v48 = vld [vmem:[%s1049_s0 + $0xe0] sm:$0xff]  ;;  %v43_v49 = vld [vmem:[%s1049_s0 + $0xe8] sm:$0xff] }
   0xd   :  { %v97_v57 = vmul.f32 %v632_v2, %v29_v45  ;;  %571 = vst [vmem:[%s1052_s3 + $0x10] sm:$0xff] %v423_v46   ;;  %v222_v59 = vmax.f32 %v158_v50, 0.0  ;;  %v223_v60 = vmax.f32 %v159_v51, 0.0  ;;  %v162_v61 = vadd.f32 %v637_v3, %v94_v52 }
   0xe   :  { %v163_v62 = vadd.f32 %v637_v3, %v95_v53  ;;  %572 = vst [vmem:[%s1052_s3 + $0x18] sm:$0xff] %v428_v47   ;;  %v224_v0 = vmax.f32 %v160_v54, 0.0  ;;  %v225_v1 = vmax.f32 %v161_v55, 0.0  ;;  %v164_v4 = vadd.f32 %v637_v3, %v96_v56  ;;  %v44_v54 = vld [vmem:[%s1049_s0 + $0xf0] sm:$0xff] }
   0xf   :  { %v165_v5 = vadd.f32 %v637_v3, %v97_v57  ;;  %v433_v8 = vpack.c.bf16 %v223_v60, %v222_v59  ;;  %v226_v9 = vmax.f32 %v162_v61, 0.0  ;;  %v98_v11 = vmul.f32 %v632_v2, %v30_v58  ;;  %v45_v59 = vld [vmem:[%s1049_s0 + $0xf8] sm:$0xff] }
  0x10   :  { %v227_v10 = vmax.f32 %v163_v62, 0.0  ;;  %v438_v14 = vpack.c.bf16 %v225_v1, %v224_v0  ;;  %v228_v15 = vmax.f32 %v164_v4, 0.0  ;;  %v99_v17 = vmul.f32 %v632_v2, %v31_v63  ;;  %v46_v0 = vld [vmem:[%s1049_s0 + $0x100] sm:$0xff] }
  0x11   :  { %v229_v16 = vmax.f32 %v165_v5, 0.0  ;;  %573 = vst [vmem:[%s1052_s3 + $0x20] sm:$0xff] %v433_v8   ;;  %v166_v20 = vadd.f32 %v637_v3, %v98_v11  ;;  %v100_v21 = vmul.f32 %v632_v2, %v32_v6  ;;  %v101_v22 = vmul.f32 %v632_v2, %v33_v7  ;;  %v47_v11 = vld [vmem:[%s1049_s0 + $0x108] sm:$0xff] }
  0x12   :  { %v443_v19 = vpack.c.bf16 %v227_v10, %v226_v9  ;;  %574 = vst [vmem:[%s1052_s3 + $0x28] sm:$0xff] %v438_v14   ;;  %v167_v25 = vadd.f32 %v637_v3, %v99_v17  ;;  %v102_v26 = vmul.f32 %v632_v2, %v34_v12  ;;  %v103_v27 = vmul.f32 %v632_v2, %v35_v13  ;;  %v49_v17 = vld [vmem:[%s1049_s0 + $0x118] sm:$0xff] }
  0x13   :  { %v448_v24 = vpack.c.bf16 %v229_v16, %v228_v15  ;;  %v230_v29 = vmax.f32 %v166_v20, 0.0  ;;  %v168_v30 = vadd.f32 %v637_v3, %v100_v21  ;;  %v169_v31 = vadd.f32 %v637_v3, %v101_v22  ;;  %v48_v16 = vld [vmem:[%s1049_s0 + $0x110] sm:$0xff]  ;;  %v50_v22 = vld [vmem:[%s1049_s0 + $0x120] sm:$0xff] }
  0x14   :  { %575 = vst [vmem:[%s1052_s3 + $0x30] sm:$0xff] %v443_v19   ;;  %v104_v32 = vmul.f32 %v632_v2, %v36_v18  ;;  %v231_v33 = vmax.f32 %v167_v25, 0.0  ;;  %v170_v34 = vadd.f32 %v637_v3, %v102_v26  ;;  %v171_v35 = vadd.f32 %v637_v3, %v103_v27 }
  0x15   :  { %576 = vst [vmem:[%s1052_s3 + $0x38] sm:$0xff] %v448_v24   ;;  %v105_v36 = vmul.f32 %v632_v2, %v37_v23  ;;  %v232_v38 = vmax.f32 %v168_v30, 0.0  ;;  %v233_v39 = vmax.f32 %v169_v31, 0.0  ;;  %v106_v41 = vmul.f32 %v632_v2, %v38_v28  ;;  %v51_v23 = vld [vmem:[%s1049_s0 + $0x128] sm:$0xff]  ;;  %v52_v28 = vld [vmem:[%s1049_s0 + $0x130] sm:$0xff] }
  0x16   :  { %v172_v40 = vadd.f32 %v637_v3, %v104_v32  ;;  %v453_v44 = vpack.c.bf16 %v231_v33, %v230_v29  ;;  %v234_v45 = vmax.f32 %v170_v34, 0.0  ;;  %v235_v46 = vmax.f32 %v171_v35, 0.0  ;;  %v53_v33 = vld [vmem:[%s1049_s0 + $0x138] sm:$0xff] }
  0x17   :  { %v173_v47 = vadd.f32 %v637_v3, %v105_v36  ;;  %v458_v50 = vpack.c.bf16 %v233_v39, %v232_v38  ;;  %v107_v52 = vmul.f32 %v632_v2, %v39_v37  ;;  %v174_v53 = vadd.f32 %v637_v3, %v106_v41  ;;  %v54_v38 = vld [vmem:[%s1049_s0 + $0x140] sm:$0xff] }
  0x18   :  { %v236_v51 = vmax.f32 %v172_v40, 0.0  ;;  %577 = vst [vmem:[%s1052_s3 + $0x40] sm:$0xff] %v453_v44   ;;  %v463_v55 = vpack.c.bf16 %v235_v46, %v234_v45  ;;  %v108_v57 = vmul.f32 %v632_v2, %v40_v42  ;;  %v109_v58 = vmul.f32 %v632_v2, %v41_v43 }
  0x19   :  { %v237_v56 = vmax.f32 %v173_v47, 0.0  ;;  %578 = vst [vmem:[%s1052_s3 + $0x48] sm:$0xff] %v458_v50   ;;  %v175_v60 = vadd.f32 %v637_v3, %v107_v52  ;;  %v238_v61 = vmax.f32 %v174_v53, 0.0  ;;  %v110_v62 = vmul.f32 %v632_v2, %v42_v48  ;;  %v55_v47 = vld [vmem:[%s1049_s0 + $0x148] sm:$0xff]  ;;  %v56_v52 = vld [vmem:[%s1049_s0 + $0x150] sm:$0xff]  ;;  %v57_v53 = vld [vmem:[%s1049_s0 + $0x158] sm:$0xff] }
  0x1a   :  { %v111_v63 = vmul.f32 %v632_v2, %v43_v49  ;;  %579 = vst [vmem:[%s1052_s3 + $0x50] sm:$0xff] %v463_v55   ;;  %v176_v4 = vadd.f32 %v637_v3, %v108_v57  ;;  %v177_v5 = vadd.f32 %v637_v3, %v109_v58  ;;  %v112_v6 = vmul.f32 %v632_v2, %v44_v54  ;;  %v58_v58 = vld [vmem:[%s1049_s0 + $0x160] sm:$0xff] }
  0x1b   :  { %v468_v1 = vpack.c.bf16 %v237_v56, %v236_v51  ;;  %v239_v7 = vmax.f32 %v175_v60, 0.0  ;;  %v178_v8 = vadd.f32 %v637_v3, %v110_v62  ;;  %v113_v10 = vmul.f32 %v632_v2, %v45_v59  ;;  %v59_v59 = vld [vmem:[%s1049_s0 + $0x168] sm:$0xff] }
  0x1c   :  { %v179_v9 = vadd.f32 %v637_v3, %v111_v63  ;;  %v240_v12 = vmax.f32 %v176_v4, 0.0  ;;  %v241_v13 = vmax.f32 %v177_v5, 0.0  ;;  %v180_v14 = vadd.f32 %v637_v3, %v112_v6 }
  0x1d   :  { %580 = vst [vmem:[%s1052_s3 + $0x58] sm:$0xff] %v468_v1   ;;  %v114_v15 = vmul.f32 %v632_v2, %v46_v0  ;;  %v473_v18 = vpack.c.bf16 %v239_v7, %v238_v61  ;;  %v242_v19 = vmax.f32 %v178_v8, 0.0  ;;  %v181_v21 = vadd.f32 %v637_v3, %v113_v10  ;;  %v60_v0 = vld [vmem:[%s1049_s0 + $0x170] sm:$0xff]  ;;  %v61_v7 = vld [vmem:[%s1049_s0 + $0x178] sm:$0xff] }
  0x1e   :  { %v243_v20 = vmax.f32 %v179_v9, 0.0  ;;  %v478_v24 = vpack.c.bf16 %v241_v13, %v240_v12  ;;  %v244_v25 = vmax.f32 %v180_v14, 0.0  ;;  %v115_v26 = vmul.f32 %v632_v2, %v47_v11  ;;  %v62_v12 = vld [vmem:[%s1049_s0 + $0x180] sm:$0xff] }
  0x1f   :  { %v182_v27 = vadd.f32 %v637_v3, %v114_v15  ;;  %581 = vst [vmem:[%s1052_s3 + $0x60] sm:$0xff] %v473_v18   ;;  %v245_v30 = vmax.f32 %v181_v21, 0.0  ;;  %v116_v31 = vmul.f32 %v632_v2, %v48_v16  ;;  %v117_v32 = vmul.f32 %v632_v2, %v49_v17  ;;  %v63_v21 = vld [vmem:[%s1049_s0 + $0x188] sm:$0xff] }
  0x20   :  { %v483_v29 = vpack.c.bf16 %v243_v20, %v242_v19  ;;  %582 = vst [vmem:[%s1052_s3 + $0x68] sm:$0xff] %v478_v24   ;;  %v183_v34 = vadd.f32 %v637_v3, %v115_v26  ;;  %v118_v36 = vmul.f32 %v632_v2, %v50_v22  ;;  %v119_v37 = vmul.f32 %v632_v2, %v51_v23  ;;  %v64_v26 = vld [vmem:[%s1049_s0 + $0x190] sm:$0xff] }
  0x21   :  { %v246_v35 = vmax.f32 %v182_v27, 0.0  ;;  %v488_v39 = vpack.c.bf16 %v245_v30, %v244_v25  ;;  %v184_v40 = vadd.f32 %v637_v3, %v116_v31  ;;  %v185_v41 = vadd.f32 %v637_v3, %v117_v32  ;;  %v65_v27 = vld [vmem:[%s1049_s0 + $0x198] sm:$0xff]  ;;  %v66_v32 = vld [vmem:[%s1049_s0 + $0x1a0] sm:$0xff] }
  0x22   :  { %583 = vst [vmem:[%s1052_s3 + $0x70] sm:$0xff] %v483_v29   ;;  %v120_v42 = vmul.f32 %v632_v2, %v52_v28  ;;  %v247_v43 = vmax.f32 %v183_v34, 0.0  ;;  %v186_v44 = vadd.f32 %v637_v3, %v118_v36  ;;  %v187_v45 = vadd.f32 %v637_v3, %v119_v37 }
  0x23   :  { %v121_v46 = vmul.f32 %v632_v2, %v53_v33  ;;  %584 = vst [vmem:[%s1052_s3 + $0x78] sm:$0xff] %v488_v39   ;;  %v248_v48 = vmax.f32 %v184_v40, 0.0  ;;  %v249_v49 = vmax.f32 %v185_v41, 0.0  ;;  %v122_v51 = vmul.f32 %v632_v2, %v54_v38  ;;  %v67_v33 = vld [vmem:[%s1049_s0 + $0x1a8] sm:$0xff]  ;;  %v68_v38 = vld [vmem:[%s1049_s0 + $0x1b0] sm:$0xff] }
  0x24   :  { %v188_v50 = vadd.f32 %v637_v3, %v120_v42  ;;  %v493_v54 = vpack.c.bf16 %v247_v43, %v246_v35  ;;  %v250_v55 = vmax.f32 %v186_v44, 0.0  ;;  %v251_v56 = vmax.f32 %v187_v45, 0.0  ;;  %v69_v43 = vld [vmem:[%s1049_s0 + $0x1b8] sm:$0xff] }
  0x25   :  { %v189_v57 = vadd.f32 %v637_v3, %v121_v46  ;;  %v498_v60 = vpack.c.bf16 %v249_v49, %v248_v48  ;;  %v123_v62 = vmul.f32 %v632_v2, %v55_v47  ;;  %v190_v63 = vadd.f32 %v637_v3, %v122_v51  ;;  %v70_v48 = vld [vmem:[%s1049_s0 + $0x1c0] sm:$0xff] }
  0x26   :  { %v252_v61 = vmax.f32 %v188_v50, 0.0  ;;  %585 = vst [vmem:[%s1052_s3 + $0x80] sm:$0xff] %v493_v54   ;;  %v503_v1 = vpack.c.bf16 %v251_v56, %v250_v55  ;;  %v124_v5 = vmul.f32 %v632_v2, %v56_v52  ;;  %v125_v6 = vmul.f32 %v632_v2, %v57_v53 }
  0x27   :  { %v253_v4 = vmax.f32 %v189_v57, 0.0  ;;  %586 = vst [vmem:[%s1052_s3 + $0x88] sm:$0xff] %v498_v60   ;;  %v191_v8 = vadd.f32 %v637_v3, %v123_v62  ;;  %v254_v9 = vmax.f32 %v190_v63, 0.0  ;;  %v126_v10 = vmul.f32 %v632_v2, %v58_v58  ;;  %v71_v57 = vld [vmem:[%s1049_s0 + $0x1c8] sm:$0xff]  ;;  %v72_v62 = vld [vmem:[%s1049_s0 + $0x1d0] sm:$0xff]  ;;  %v73_v63 = vld [vmem:[%s1049_s0 + $0x1d8] sm:$0xff] }
  0x28   :  { %v127_v11 = vmul.f32 %v632_v2, %v59_v59  ;;  %587 = vst [vmem:[%s1052_s3 + $0x90] sm:$0xff] %v503_v1   ;;  %v192_v14 = vadd.f32 %v637_v3, %v124_v5  ;;  %v193_v15 = vadd.f32 %v637_v3, %v125_v6  ;;  %v128_v16 = vmul.f32 %v632_v2, %v60_v0  ;;  %v74_v6 = vld [vmem:[%s1049_s0 + $0x1e0] sm:$0xff] }
  0x29   :  { %v508_v13 = vpack.c.bf16 %v253_v4, %v252_v61  ;;  %v255_v17 = vmax.f32 %v191_v8, 0.0  ;;  %v194_v18 = vadd.f32 %v637_v3, %v126_v10  ;;  %v129_v20 = vmul.f32 %v632_v2, %v61_v7  ;;  %v75_v7 = vld [vmem:[%s1049_s0 + $0x1e8] sm:$0xff] }
  0x2a   :  { %v195_v19 = vadd.f32 %v637_v3, %v127_v11  ;;  %v256_v22 = vmax.f32 %v192_v14, 0.0  ;;  %v257_v23 = vmax.f32 %v193_v15, 0.0  ;;  %v196_v24 = vadd.f32 %v637_v3, %v128_v16 }
  0x2b   :  { %588 = vst [vmem:[%s1052_s3 + $0x98] sm:$0xff] %v508_v13   ;;  %v130_v25 = vmul.f32 %v632_v2, %v62_v12  ;;  %v513_v28 = vpack.c.bf16 %v255_v17, %v254_v9  ;;  %v258_v29 = vmax.f32 %v194_v18, 0.0  ;;  %v197_v31 = vadd.f32 %v637_v3, %v129_v20  ;;  %v76_v12 = vld [vmem:[%s1049_s0 + $0x1f0] sm:$0xff]  ;;  %v77_v17 = vld [vmem:[%s1049_s0 + $0x1f8] sm:$0xff] }
  0x2c   :  { %v259_v30 = vmax.f32 %v195_v19, 0.0  ;;  %v518_v34 = vpack.c.bf16 %v257_v23, %v256_v22  ;;  %v260_v35 = vmax.f32 %v196_v24, 0.0  ;;  %v131_v36 = vmul.f32 %v632_v2, %v63_v21 }
  0x2d   :  { %v198_v37 = vadd.f32 %v637_v3, %v130_v25  ;;  %589 = vst [vmem:[%s1052_s3 + $0xa0] sm:$0xff] %v513_v28   ;;  %v261_v40 = vmax.f32 %v197_v31, 0.0  ;;  %v132_v41 = vmul.f32 %v632_v2, %v64_v26  ;;  %v133_v42 = vmul.f32 %v632_v2, %v65_v27 }
  0x2e   :  { %v523_v39 = vpack.c.bf16 %v259_v30, %v258_v29  ;;  %590 = vst [vmem:[%s1052_s3 + $0xa8] sm:$0xff] %v518_v34   ;;  %v199_v44 = vadd.f32 %v637_v3, %v131_v36  ;;  %v134_v46 = vmul.f32 %v632_v2, %v66_v32  ;;  %v135_v47 = vmul.f32 %v632_v2, %v67_v33 }
  0x2f   :  { %v262_v45 = vmax.f32 %v198_v37, 0.0  ;;  %v528_v49 = vpack.c.bf16 %v261_v40, %v260_v35  ;;  %v200_v50 = vadd.f32 %v637_v3, %v132_v41  ;;  %v201_v51 = vadd.f32 %v637_v3, %v133_v42 }
  0x30   :  { %591 = vst [vmem:[%s1052_s3 + $0xb0] sm:$0xff] %v523_v39   ;;  %v136_v52 = vmul.f32 %v632_v2, %v68_v38  ;;  %v263_v53 = vmax.f32 %v199_v44, 0.0  ;;  %v202_v54 = vadd.f32 %v637_v3, %v134_v46  ;;  %v203_v55 = vadd.f32 %v637_v3, %v135_v47 }
  0x31   :  { %v137_v56 = vmul.f32 %v632_v2, %v69_v43  ;;  %592 = vst [vmem:[%s1052_s3 + $0xb8] sm:$0xff] %v528_v49   ;;  %v264_v58 = vmax.f32 %v200_v50, 0.0  ;;  %v265_v59 = vmax.f32 %v201_v51, 0.0  ;;  %v138_v61 = vmul.f32 %v632_v2, %v70_v48 }
  0x32   :  { %v204_v60 = vadd.f32 %v637_v3, %v136_v52  ;;  %v533_v0 = vpack.c.bf16 %v263_v53, %v262_v45  ;;  %v266_v1 = vmax.f32 %v202_v54, 0.0  ;;  %v267_v4 = vmax.f32 %v203_v55, 0.0 }
  0x33   :  { %v205_v5 = vadd.f32 %v637_v3, %v137_v56  ;;  %v538_v8 = vpack.c.bf16 %v265_v59, %v264_v58  ;;  %v139_v10 = vmul.f32 %v632_v2, %v71_v57  ;;  %v206_v11 = vadd.f32 %v637_v3, %v138_v61 }
  0x34   :  { %v268_v9 = vmax.f32 %v204_v60, 0.0  ;;  %593 = vst [vmem:[%s1052_s3 + $0xc0] sm:$0xff] %v533_v0   ;;  %v543_v13 = vpack.c.bf16 %v267_v4, %v266_v1  ;;  %v140_v15 = vmul.f32 %v632_v2, %v72_v62  ;;  %v141_v16 = vmul.f32 %v632_v2, %v73_v63 }
  0x35   :  { %v269_v14 = vmax.f32 %v205_v5, 0.0  ;;  %594 = vst [vmem:[%s1052_s3 + $0xc8] sm:$0xff] %v538_v8   ;;  %v207_v18 = vadd.f32 %v637_v3, %v139_v10  ;;  %v270_v19 = vmax.f32 %v206_v11, 0.0  ;;  %v142_v20 = vmul.f32 %v632_v2, %v74_v6 }
  0x36   :  { %v143_v21 = vmul.f32 %v632_v2, %v75_v7  ;;  %595 = vst [vmem:[%s1052_s3 + $0xd0] sm:$0xff] %v543_v13   ;;  %v208_v23 = vadd.f32 %v637_v3, %v140_v15  ;;  %v209_v24 = vadd.f32 %v637_v3, %v141_v16  ;;  %v144_v25 = vmul.f32 %v632_v2, %v76_v12 }
  0x37   :  { %v548_v22 = vpack.c.bf16 %v269_v14, %v268_v9  ;;  %v271_v26 = vmax.f32 %v207_v18, 0.0  ;;  %v210_v27 = vadd.f32 %v637_v3, %v142_v20  ;;  %v145_v29 = vmul.f32 %v632_v2, %v77_v17 }
  0x38   :  { %v211_v28 = vadd.f32 %v637_v3, %v143_v21  ;;  %v272_v30 = vmax.f32 %v208_v23, 0.0  ;;  %v273_v31 = vmax.f32 %v209_v24, 0.0  ;;  %v212_v32 = vadd.f32 %v637_v3, %v144_v25 }
  0x39   :  { %596 = vst [vmem:[%s1052_s3 + $0xd8] sm:$0xff] %v548_v22   ;;  %v553_v33 = vpack.c.bf16 %v271_v26, %v270_v19  ;;  %v274_v34 = vmax.f32 %v210_v27, 0.0  ;;  %v213_v36 = vadd.f32 %v637_v3, %v145_v29 }
  0x3a   :  { %v275_v35 = vmax.f32 %v211_v28, 0.0  ;;  %v558_v37 = vpack.c.bf16 %v273_v31, %v272_v30  ;;  %v276_v38 = vmax.f32 %v212_v32, 0.0 }
  0x3b   :  { %597 = vst [vmem:[%s1052_s3 + $0xe0] sm:$0xff] %v553_v33   ;;  %v277_v39 = vmax.f32 %v213_v36, 0.0 }
  0x3c   :  { %v563_v2 = vpack.c.bf16 %v275_v35, %v274_v34  ;;  %598 = vst [vmem:[%s1052_s3 + $0xe8] sm:$0xff] %v558_v37  }
  0x3d   :  { %v568_v40 = vpack.c.bf16 %v277_v39, %v276_v38 }
  0x3e   :  { %599 = vst [vmem:[%s1052_s3 + $0xf0] sm:$0xff] %v563_v2  }
  0x3f   :  { %600 = vst [vmem:[%s1052_s3 + $0xf8] sm:$0xff] %v568_v40  }

// kernel: residual_block_forward.7
= control target key start
LH: loop header
LB: loop body
LE: loop exit
PB: predicated region body
PF: predicated region fallthrough
CT: control target
= control target key end

     0   :  { %s1218_s0 = inlined_call_operand.vmem [shape: f32[512,128], index: 0, kind: input, shape index: {}]   ;;  %s1219_s1 = inlined_call_operand.vmem [shape: f32[1,128], index: 1, kind: input, shape index: {}]   ;;  %s1220_s2 = inlined_call_operand.vmem [shape: f32[1,128], index: 2, kind: input, shape index: {}]   ;;  %s1221_s3 = inlined_call_operand.vmem [shape: f32[512,128], index: 3, kind: input, shape index: {}]   ;;  %s1222_s4 = inlined_call_operand.vmem [shape: f32[512,128], index: 4, kind: output, shape index: {}]  }
   0x1   :  { %v17_v0 = vld [vmem:[%s1218_s0] sm:$0xff]  ;;  %v18_v4 = vld [vmem:[%s1218_s0 + $0x8] sm:$0xff]  ;;  %v19_v5 = vld [vmem:[%s1218_s0 + $0x10] sm:$0xff] }
   0x2   :  { %v510_v1 = vld [vmem:[%s1219_s1] ss:$0 sm:$0xff]  ;;  %v218_v8 = vld [vmem:[%s1221_s3 + $0x8] sm:$0xff]  ;;  %v20_v10 = vld [vmem:[%s1218_s0 + $0x18] sm:$0xff] }
   0x3   :  { %v515_v2 = vld [vmem:[%s1220_s2] ss:$0 sm:$0xff]  ;;  %v85_v3 = vmul.f32 %v510_v1, %v17_v0  ;;  %v86_v7 = vmul.f32 %v510_v1, %v18_v4  ;;  %v87_v9 = vmul.f32 %v510_v1, %v19_v5  ;;  %v219_v12 = vld [vmem:[%s1221_s3 + $0x10] sm:$0xff]  ;;  %v88_v13 = vmul.f32 %v510_v1, %v20_v10  ;;  %v22_v15 = vld [vmem:[%s1218_s0 + $0x28] sm:$0xff] }
   0x4   :  { %v217_v6 = vld [vmem:[%s1221_s3] sm:$0xff]  ;;  %v220_v18 = vld [vmem:[%s1221_s3 + $0x18] sm:$0xff]  ;;  %v90_v20 = vmul.f32 %v510_v1, %v22_v15  ;;  %v23_v21 = vld [vmem:[%s1218_s0 + $0x30] sm:$0xff] }
   0x5   :  { %v153_v11 = vadd.f32 %v515_v2, %v85_v3  ;;  %v21_v14 = vld [vmem:[%s1218_s0 + $0x20] sm:$0xff]  ;;  %v154_v16 = vadd.f32 %v515_v2, %v86_v7  ;;  %v155_v17 = vadd.f32 %v515_v2, %v87_v9  ;;  %v156_v23 = vadd.f32 %v515_v2, %v88_v13  ;;  %v222_v25 = vld [vmem:[%s1221_s3 + $0x28] sm:$0xff]  ;;  %v24_v27 = vld [vmem:[%s1218_s0 + $0x38] sm:$0xff] }
   0x6   :  { %v89_v19 = vmul.f32 %v510_v1, %v21_v14  ;;  %v221_v24 = vld [vmem:[%s1221_s3 + $0x20] sm:$0xff]  ;;  %v91_v26 = vmul.f32 %v510_v1, %v23_v21  ;;  %v158_v31 = vadd.f32 %v515_v2, %v90_v20  ;;  %v223_v32 = vld [vmem:[%s1221_s3 + $0x30] sm:$0xff]  ;;  %v92_v37 = vmul.f32 %v510_v1, %v24_v27  ;;  %v26_v38 = vld [vmem:[%s1218_s0 + $0x48] sm:$0xff] }
   0x7   :  { %v281_v22 = vadd.f32 %v217_v6, %v153_v11  ;;  %v282_v28 = vadd.f32 %v218_v8, %v154_v16  ;;  %v283_v29 = vadd.f32 %v219_v12, %v155_v17  ;;  %v25_v33 = vld [vmem:[%s1218_s0 + $0x40] sm:$0xff]  ;;  %v284_v35 = vadd.f32 %v220_v18, %v156_v23  ;;  %v27_v39 = vld [vmem:[%s1218_s0 + $0x50] sm:$0xff]  ;;  %v224_v44 = vld [vmem:[%s1221_s3 + $0x38] sm:$0xff] }
   0x8   :  { %v157_v30 = vadd.f32 %v515_v2, %v89_v19  ;;  %v159_v36 = vadd.f32 %v515_v2, %v91_v26  ;;  %v286_v43 = vadd.f32 %v222_v25, %v158_v31  ;;  %v28_v45 = vld [vmem:[%s1218_s0 + $0x58] sm:$0xff]  ;;  %v160_v48 = vadd.f32 %v515_v2, %v92_v37  ;;  %v29_v50 = vld [vmem:[%s1218_s0 + $0x60] sm:$0xff]  ;;  %v30_v51 = vld [vmem:[%s1218_s0 + $0x68] sm:$0xff] }
   0x9   :  { %v345_v34 = vmax.f32 %v281_v22, 0.0  ;;  %v346_v40 = vmax.f32 %v282_v28, 0.0  ;;  %v347_v41 = vmax.f32 %v283_v29, 0.0  ;;  %v348_v46 = vmax.f32 %v284_v35, 0.0  ;;  %v225_v54 = vld [vmem:[%s1221_s3 + $0x40] sm:$0xff]  ;;  %v31_v57 = vld [vmem:[%s1218_s0 + $0x70] sm:$0xff] }
   0xa   :  { %v285_v42 = vadd.f32 %v221_v24, %v157_v30  ;;  %v287_v47 = vadd.f32 %v223_v32, %v159_v36  ;;  %v93_v49 = vmul.f32 %v510_v1, %v25_v33  ;;  %v350_v53 = vmax.f32 %v286_v43, 0.0  ;;  %v226_v61 = vld [vmem:[%s1221_s3 + $0x48] sm:$0xff]  ;;  %v227_v62 = vld [vmem:[%s1221_s3 + $0x50] sm:$0xff]  ;;  %v228_v4 = vld [vmem:[%s1221_s3 + $0x58] sm:$0xff] }
   0xb   :  { %409 = vst [vmem:[%s1222_s4] sm:$0xff] %v345_v34  ;;  %v94_v55 = vmul.f32 %v510_v1, %v26_v38  ;;  %v95_v56 = vmul.f32 %v510_v1, %v27_v39  ;;  %v288_v59 = vadd.f32 %v224_v44, %v160_v48  ;;  %v96_v63 = vmul.f32 %v510_v1, %v28_v45  ;;  %v32_v7 = vld [vmem:[%s1218_s0 + $0x78] sm:$0xff]  ;;  %v229_v11 = vld [vmem:[%s1221_s3 + $0x60] sm:$0xff]  ;;  %v230_v12 = vld [vmem:[%s1221_s3 + $0x68] sm:$0xff] }
   0xc   :  { %410 = vst [vmem:[%s1222_s4 + $0x8] sm:$0xff] %v346_v40  ;;  %v349_v52 = vmax.f32 %v285_v42, 0.0  ;;  %v351_v58 = vmax.f32 %v287_v47, 0.0  ;;  %v161_v60 = vadd.f32 %v515_v2, %v93_v49  ;;  %v97_v5 = vmul.f32 %v510_v1, %v29_v50  ;;  %v231_v18 = vld [vmem:[%s1221_s3 + $0x70] sm:$0xff]  ;;  %v33_v19 = vld [vmem:[%s1218_s0 + $0x80] sm:$0xff]  ;;  %v34_v24 = vld [vmem:[%s1218_s0 + $0x88] sm:$0xff] }
   0xd   :  { %411 = vst [vmem:[%s1222_s4 + $0x10] sm:$0xff] %v347_v41  ;;  %v162_v0 = vadd.f32 %v515_v2, %v94_v55  ;;  %v163_v3 = vadd.f32 %v515_v2, %v95_v56  ;;  %v98_v6 = vmul.f32 %v510_v1, %v30_v51  ;;  %v352_v8 = vmax.f32 %v288_v59, 0.0  ;;  %v35_v25 = vld [vmem:[%s1218_s0 + $0x90] sm:$0xff]  ;;  %v232_v30 = vld [vmem:[%s1221_s3 + $0x78] sm:$0xff]  ;;  %v37_v36 = vld [vmem:[%s1218_s0 + $0xa0] sm:$0xff] }
   0xe   :  { %412 = vst [vmem:[%s1222_s4 + $0x18] sm:$0xff] %v348_v46  ;;  %v289_v9 = vadd.f32 %v225_v54, %v161_v60  ;;  %v164_v10 = vadd.f32 %v515_v2, %v96_v63  ;;  %v99_v13 = vmul.f32 %v510_v1, %v31_v57  ;;  %v165_v16 = vadd.f32 %v515_v2, %v97_v5  ;;  %v36_v31 = vld [vmem:[%s1218_s0 + $0x98] sm:$0xff]  ;;  %v38_v37 = vld [vmem:[%s1218_s0 + $0xa8] sm:$0xff]  ;;  %v233_v40 = vld [vmem:[%s1221_s3 + $0x80] sm:$0xff] }
   0xf   :  { %413 = vst [vmem:[%s1222_s4 + $0x20] sm:$0xff] %v349_v52  ;;  %v290_v14 = vadd.f32 %v226_v61, %v162_v0  ;;  %v291_v15 = vadd.f32 %v227_v62, %v163_v3  ;;  %v166_v17 = vadd.f32 %v515_v2, %v98_v6  ;;  %v100_v23 = vmul.f32 %v510_v1, %v32_v7  ;;  %v39_v43 = vld [vmem:[%s1218_s0 + $0xb0] sm:$0xff]  ;;  %v234_v47 = vld [vmem:[%s1221_s3 + $0x88] sm:$0xff]  ;;  %v236_v52 = vld [vmem:[%s1221_s3 + $0x98] sm:$0xff] }
  0x10   :  { %414 = vst [vmem:[%s1222_s4 + $0x28] sm:$0xff] %v350_v53  ;;  %v353_v20 = vmax.f32 %v289_v9, 0.0  ;;  %v292_v21 = vadd.f32 %v228_v4, %v164_v10  ;;  %v167_v22 = vadd.f32 %v515_v2, %v99_v13  ;;  %v293_v28 = vadd.f32 %v229_v11, %v165_v16  ;;  %v235_v48 = vld [vmem:[%s1221_s3 + $0x90] sm:$0xff]  ;;  %v40_v55 = vld [vmem:[%s1218_s0 + $0xb8] sm:$0xff]  ;;  %v237_v59 = vld [vmem:[%s1221_s3 + $0xa0] sm:$0xff] }
  0x11   :  { %415 = vst [vmem:[%s1222_s4 + $0x30] sm:$0xff] %v351_v58  ;;  %v354_v26 = vmax.f32 %v290_v14, 0.0  ;;  %v355_v27 = vmax.f32 %v291_v15, 0.0  ;;  %v294_v29 = vadd.f32 %v230_v12, %v166_v17  ;;  %v168_v34 = vadd.f32 %v515_v2, %v100_v23  ;;  %v238_v60 = vld [vmem:[%s1221_s3 + $0xa8] sm:$0xff]  ;;  %v239_v4 = vld [vmem:[%s1221_s3 + $0xb0] sm:$0xff]  ;;  %v41_v5 = vld [vmem:[%s1218_s0 + $0xc0] sm:$0xff] }
  0x12   :  { %416 = vst [vmem:[%s1222_s4 + $0x38] sm:$0xff] %v352_v8  ;;  %v356_v32 = vmax.f32 %v292_v21, 0.0  ;;  %v295_v33 = vadd.f32 %v231_v18, %v167_v22  ;;  %v101_v35 = vmul.f32 %v510_v1, %v33_v19  ;;  %v357_v38 = vmax.f32 %v293_v28, 0.0  ;;  %v42_v10 = vld [vmem:[%s1218_s0 + $0xc8] sm:$0xff]  ;;  %v43_v11 = vld [vmem:[%s1218_s0 + $0xd0] sm:$0xff]  ;;  %v240_v16 = vld [vmem:[%s1221_s3 + $0xb8] sm:$0xff] }
  0x13   :  { %417 = vst [vmem:[%s1222_s4 + $0x40] sm:$0xff] %v353_v20  ;;  %v358_v39 = vmax.f32 %v294_v29, 0.0  ;;  %v102_v41 = vmul.f32 %v510_v1, %v34_v24  ;;  %v103_v42 = vmul.f32 %v510_v1, %v35_v25  ;;  %v296_v45 = vadd.f32 %v232_v30, %v168_v34  ;;  %v44_v17 = vld [vmem:[%s1218_s0 + $0xd8] sm:$0xff]  ;;  %v45_v22 = vld [vmem:[%s1218_s0 + $0xe0] sm:$0xff]  ;;  %v46_v23 = vld [vmem:[%s1218_s0 + $0xe8] sm:$0xff] }
  0x14   :  { %418 = vst [vmem:[%s1222_s4 + $0x48] sm:$0xff] %v354_v26  ;;  %v359_v44 = vmax.f32 %v295_v33, 0.0  ;;  %v169_v46 = vadd.f32 %v515_v2, %v101_v35  ;;  %v104_v49 = vmul.f32 %v510_v1, %v36_v31  ;;  %v105_v53 = vmul.f32 %v510_v1, %v37_v36  ;;  %v241_v26 = vld [vmem:[%s1221_s3 + $0xc0] sm:$0xff]  ;;  %v47_v29 = vld [vmem:[%s1218_s0 + $0xf0] sm:$0xff]  ;;  %v242_v33 = vld [vmem:[%s1221_s3 + $0xc8] sm:$0xff] }
  0x15   :  { %419 = vst [vmem:[%s1222_s4 + $0x50] sm:$0xff] %v355_v27  ;;  %v170_v50 = vadd.f32 %v515_v2, %v102_v41  ;;  %v171_v51 = vadd.f32 %v515_v2, %v103_v42  ;;  %v106_v54 = vmul.f32 %v510_v1, %v38_v37  ;;  %v360_v56 = vmax.f32 %v296_v45, 0.0  ;;  %v243_v34 = vld [vmem:[%s1221_s3 + $0xd0] sm:$0xff]  ;;  %v48_v41 = vld [vmem:[%s1218_s0 + $0xf8] sm:$0xff]  ;;  %v245_v45 = vld [vmem:[%s1221_s3 + $0xe0] sm:$0xff] }
  0x16   :  { %420 = vst [vmem:[%s1222_s4 + $0x58] sm:$0xff] %v356_v32  ;;  %v297_v57 = vadd.f32 %v233_v40, %v169_v46  ;;  %v172_v58 = vadd.f32 %v515_v2, %v104_v49  ;;  %v107_v61 = vmul.f32 %v510_v1, %v39_v43  ;;  %v173_v0 = vadd.f32 %v515_v2, %v105_v53  ;;  %v246_v46 = vld [vmem:[%s1221_s3 + $0xe8] sm:$0xff]  ;;  %v49_v53 = vld [vmem:[%s1218_s0 + $0x100] sm:$0xff] }
  0x17   :  { %421 = vst [vmem:[%s1222_s4 + $0x60] sm:$0xff] %v357_v38  ;;  %v298_v62 = vadd.f32 %v234_v47, %v170_v50  ;;  %v299_v63 = vadd.f32 %v235_v48, %v171_v51  ;;  %v174_v3 = vadd.f32 %v515_v2, %v106_v54  ;;  %v108_v9 = vmul.f32 %v510_v1, %v40_v55  ;;  %v244_v38 = vld [vmem:[%s1221_s3 + $0xd8] sm:$0xff] }
  0x18   :  { %422 = vst [vmem:[%s1222_s4 + $0x68] sm:$0xff] %v358_v39  ;;  %v361_v6 = vmax.f32 %v297_v57, 0.0  ;;  %v300_v7 = vadd.f32 %v236_v52, %v172_v58  ;;  %v175_v8 = vadd.f32 %v515_v2, %v107_v61  ;;  %v301_v14 = vadd.f32 %v237_v59, %v173_v0  ;;  %v247_v52 = vld [vmem:[%s1221_s3 + $0xf0] sm:$0xff]  ;;  %v50_v58 = vld [vmem:[%s1218_s0 + $0x108] sm:$0xff]  ;;  %v248_v0 = vld [vmem:[%s1221_s3 + $0xf8] sm:$0xff] }
  0x19   :  { %423 = vst [vmem:[%s1222_s4 + $0x70] sm:$0xff] %v359_v44  ;;  %v362_v12 = vmax.f32 %v298_v62, 0.0  ;;  %v363_v13 = vmax.f32 %v299_v63, 0.0  ;;  %v302_v15 = vadd.f32 %v238_v60, %v174_v3  ;;  %v176_v20 = vadd.f32 %v515_v2, %v108_v9  ;;  %v51_v59 = vld [vmem:[%s1218_s0 + $0x110] sm:$0xff]  ;;  %v52_v3 = vld [vmem:[%s1218_s0 + $0x118] sm:$0xff]  ;;  %v54_v9 = vld [vmem:[%s1218_s0 + $0x128] sm:$0xff] }
  0x1a   :  { %424 = vst [vmem:[%s1222_s4 + $0x78] sm:$0xff] %v360_v56  ;;  %v364_v18 = vmax.f32 %v300_v7, 0.0  ;;  %v303_v19 = vadd.f32 %v239_v4, %v175_v8  ;;  %v109_v21 = vmul.f32 %v510_v1, %v41_v5  ;;  %v365_v24 = vmax.f32 %v301_v14, 0.0  ;;  %v53_v8 = vld [vmem:[%s1218_s0 + $0x120] sm:$0xff] }
  0x1b   :  { %425 = vst [vmem:[%s1222_s4 + $0x80] sm:$0xff] %v361_v6  ;;  %v366_v25 = vmax.f32 %v302_v15, 0.0  ;;  %v110_v27 = vmul.f32 %v510_v1, %v42_v10  ;;  %v111_v28 = vmul.f32 %v510_v1, %v43_v11  ;;  %v304_v31 = vadd.f32 %v240_v16, %v176_v20  ;;  %v55_v15 = vld [vmem:[%s1218_s0 + $0x130] sm:$0xff] }
  0x1c   :  { %426 = vst [vmem:[%s1222_s4 + $0x88] sm:$0xff] %v362_v12  ;;  %v367_v30 = vmax.f32 %v303_v19, 0.0  ;;  %v177_v32 = vadd.f32 %v515_v2, %v109_v21  ;;  %v112_v35 = vmul.f32 %v510_v1, %v44_v17  ;;  %v113_v39 = vmul.f32 %v510_v1, %v45_v22  ;;  %v249_v12 = vld [vmem:[%s1221_s3 + $0x100] sm:$0xff]  ;;  %v250_v19 = vld [vmem:[%s1221_s3 + $0x108] sm:$0xff]  ;;  %v251_v20 = vld [vmem:[%s1221_s3 + $0x110] sm:$0xff] }
  0x1d   :  { %427 = vst [vmem:[%s1222_s4 + $0x90] sm:$0xff] %v363_v13  ;;  %v178_v36 = vadd.f32 %v515_v2, %v110_v27  ;;  %v179_v37 = vadd.f32 %v515_v2, %v111_v28  ;;  %v114_v40 = vmul.f32 %v510_v1, %v46_v23  ;;  %v368_v42 = vmax.f32 %v304_v31, 0.0  ;;  %v56_v27 = vld [vmem:[%s1218_s0 + $0x138] sm:$0xff]  ;;  %v253_v31 = vld [vmem:[%s1221_s3 + $0x120] sm:$0xff] }
  0x1e   :  { %428 = vst [vmem:[%s1222_s4 + $0x98] sm:$0xff] %v364_v18  ;;  %v305_v43 = vadd.f32 %v241_v26, %v177_v32  ;;  %v180_v44 = vadd.f32 %v515_v2, %v112_v35  ;;  %v115_v47 = vmul.f32 %v510_v1, %v47_v29  ;;  %v181_v50 = vadd.f32 %v515_v2, %v113_v39  ;;  %v254_v32 = vld [vmem:[%s1221_s3 + $0x128] sm:$0xff]  ;;  %v57_v39 = vld [vmem:[%s1218_s0 + $0x140] sm:$0xff] }
  0x1f   :  { %429 = vst [vmem:[%s1222_s4 + $0xa0] sm:$0xff] %v365_v24  ;;  %v306_v48 = vadd.f32 %v242_v33, %v178_v36  ;;  %v307_v49 = vadd.f32 %v243_v34, %v179_v37  ;;  %v182_v51 = vadd.f32 %v515_v2, %v114_v40  ;;  %v116_v57 = vmul.f32 %v510_v1, %v48_v41  ;;  %v252_v24 = vld [vmem:[%s1221_s3 + $0x118] sm:$0xff] }
  0x20   :  { %430 = vst [vmem:[%s1222_s4 + $0xa8] sm:$0xff] %v366_v25  ;;  %v369_v54 = vmax.f32 %v305_v43, 0.0  ;;  %v308_v55 = vadd.f32 %v244_v38, %v180_v44  ;;  %v183_v56 = vadd.f32 %v515_v2, %v115_v47  ;;  %v309_v62 = vadd.f32 %v245_v45, %v181_v50  ;;  %v255_v38 = vld [vmem:[%s1221_s3 + $0x130] sm:$0xff]  ;;  %v58_v44 = vld [vmem:[%s1218_s0 + $0x148] sm:$0xff]  ;;  %v256_v50 = vld [vmem:[%s1221_s3 + $0x138] sm:$0xff] }
  0x21   :  { %431 = vst [vmem:[%s1222_s4 + $0xb0] sm:$0xff] %v367_v30  ;;  %v370_v60 = vmax.f32 %v306_v48, 0.0  ;;  %v371_v61 = vmax.f32 %v307_v49, 0.0  ;;  %v310_v63 = vadd.f32 %v246_v46, %v182_v51  ;;  %v184_v6 = vadd.f32 %v515_v2, %v116_v57  ;;  %v59_v45 = vld [vmem:[%s1218_s0 + $0x150] sm:$0xff]  ;;  %v60_v51 = vld [vmem:[%s1218_s0 + $0x158] sm:$0xff]  ;;  %v62_v57 = vld [vmem:[%s1218_s0 + $0x168] sm:$0xff] }
  0x22   :  { %432 = vst [vmem:[%s1222_s4 + $0xb8] sm:$0xff] %v368_v42  ;;  %v372_v4 = vmax.f32 %v308_v55, 0.0  ;;  %v311_v5 = vadd.f32 %v247_v52, %v183_v56  ;;  %v117_v7 = vmul.f32 %v510_v1, %v49_v53  ;;  %v373_v10 = vmax.f32 %v309_v62, 0.0  ;;  %v61_v56 = vld [vmem:[%s1218_s0 + $0x160] sm:$0xff] }
  0x23   :  { %433 = vst [vmem:[%s1222_s4 + $0xc0] sm:$0xff] %v369_v54  ;;  %v374_v11 = vmax.f32 %v310_v63, 0.0  ;;  %v118_v13 = vmul.f32 %v510_v1, %v50_v58  ;;  %v119_v14 = vmul.f32 %v510_v1, %v51_v59  ;;  %v312_v17 = vadd.f32 %v248_v0, %v184_v6  ;;  %v63_v63 = vld [vmem:[%s1218_s0 + $0x170] sm:$0xff] }
  0x24   :  { %434 = vst [vmem:[%s1222_s4 + $0xc8] sm:$0xff] %v370_v60  ;;  %v375_v16 = vmax.f32 %v311_v5, 0.0  ;;  %v185_v18 = vadd.f32 %v515_v2, %v117_v7  ;;  %v120_v21 = vmul.f32 %v510_v1, %v52_v3  ;;  %v121_v25 = vmul.f32 %v510_v1, %v53_v8  ;;  %v257_v60 = vld [vmem:[%s1221_s3 + $0x140] sm:$0xff]  ;;  %v258_v5 = vld [vmem:[%s1221_s3 + $0x148] sm:$0xff]  ;;  %v259_v6 = vld [vmem:[%s1221_s3 + $0x150] sm:$0xff] }
  0x25   :  { %435 = vst [vmem:[%s1222_s4 + $0xd0] sm:$0xff] %v371_v61  ;;  %v186_v22 = vadd.f32 %v515_v2, %v118_v13  ;;  %v187_v23 = vadd.f32 %v515_v2, %v119_v14  ;;  %v122_v26 = vmul.f32 %v510_v1, %v54_v9  ;;  %v376_v28 = vmax.f32 %v312_v17, 0.0  ;;  %v64_v13 = vld [vmem:[%s1218_s0 + $0x178] sm:$0xff]  ;;  %v261_v17 = vld [vmem:[%s1221_s3 + $0x160] sm:$0xff] }
  0x26   :  { %436 = vst [vmem:[%s1222_s4 + $0xd8] sm:$0xff] %v372_v4  ;;  %v313_v29 = vadd.f32 %v249_v12, %v185_v18  ;;  %v188_v30 = vadd.f32 %v515_v2, %v120_v21  ;;  %v123_v33 = vmul.f32 %v510_v1, %v55_v15  ;;  %v189_v36 = vadd.f32 %v515_v2, %v121_v25  ;;  %v262_v18 = vld [vmem:[%s1221_s3 + $0x168] sm:$0xff]  ;;  %v65_v25 = vld [vmem:[%s1218_s0 + $0x180] sm:$0xff] }
  0x27   :  { %437 = vst [vmem:[%s1222_s4 + $0xe0] sm:$0xff] %v373_v10  ;;  %v314_v34 = vadd.f32 %v250_v19, %v186_v22  ;;  %v315_v35 = vadd.f32 %v251_v20, %v187_v23  ;;  %v190_v37 = vadd.f32 %v515_v2, %v122_v26  ;;  %v124_v43 = vmul.f32 %v510_v1, %v56_v27  ;;  %v260_v10 = vld [vmem:[%s1221_s3 + $0x158] sm:$0xff] }
  0x28   :  { %438 = vst [vmem:[%s1222_s4 + $0xe8] sm:$0xff] %v374_v11  ;;  %v377_v40 = vmax.f32 %v313_v29, 0.0  ;;  %v316_v41 = vadd.f32 %v252_v24, %v188_v30  ;;  %v191_v42 = vadd.f32 %v515_v2, %v123_v33  ;;  %v317_v48 = vadd.f32 %v253_v31, %v189_v36  ;;  %v263_v24 = vld [vmem:[%s1221_s3 + $0x170] sm:$0xff]  ;;  %v66_v30 = vld [vmem:[%s1218_s0 + $0x188] sm:$0xff]  ;;  %v264_v36 = vld [vmem:[%s1221_s3 + $0x178] sm:$0xff] }
  0x29   :  { %439 = vst [vmem:[%s1222_s4 + $0xf0] sm:$0xff] %v375_v16  ;;  %v378_v46 = vmax.f32 %v314_v34, 0.0  ;;  %v379_v47 = vmax.f32 %v315_v35, 0.0  ;;  %v318_v49 = vadd.f32 %v254_v32, %v190_v37  ;;  %v192_v54 = vadd.f32 %v515_v2, %v124_v43  ;;  %v67_v31 = vld [vmem:[%s1218_s0 + $0x190] sm:$0xff]  ;;  %v68_v37 = vld [vmem:[%s1218_s0 + $0x198] sm:$0xff]  ;;  %v70_v43 = vld [vmem:[%s1218_s0 + $0x1a8] sm:$0xff] }
  0x2a   :  { %440 = vst [vmem:[%s1222_s4 + $0xf8] sm:$0xff] %v376_v28  ;;  %v380_v52 = vmax.f32 %v316_v41, 0.0  ;;  %v319_v53 = vadd.f32 %v255_v38, %v191_v42  ;;  %v125_v55 = vmul.f32 %v510_v1, %v57_v39  ;;  %v381_v58 = vmax.f32 %v317_v48, 0.0  ;;  %v69_v42 = vld [vmem:[%s1218_s0 + $0x1a0] sm:$0xff] }
  0x2b   :  { %441 = vst [vmem:[%s1222_s4 + $0x100] sm:$0xff] %v377_v40  ;;  %v382_v59 = vmax.f32 %v318_v49, 0.0  ;;  %v126_v61 = vmul.f32 %v510_v1, %v58_v44  ;;  %v127_v62 = vmul.f32 %v510_v1, %v59_v45  ;;  %v320_v3 = vadd.f32 %v256_v50, %v192_v54  ;;  %v71_v49 = vld [vmem:[%s1218_s0 + $0x1b0] sm:$0xff] }
  0x2c   :  { %442 = vst [vmem:[%s1222_s4 + $0x108] sm:$0xff] %v378_v46  ;;  %v383_v0 = vmax.f32 %v319_v53, 0.0  ;;  %v193_v4 = vadd.f32 %v515_v2, %v125_v55  ;;  %v128_v7 = vmul.f32 %v510_v1, %v60_v51  ;;  %v129_v11 = vmul.f32 %v510_v1, %v61_v56  ;;  %v265_v46 = vld [vmem:[%s1221_s3 + $0x180] sm:$0xff]  ;;  %v266_v53 = vld [vmem:[%s1221_s3 + $0x188] sm:$0xff]  ;;  %v267_v54 = vld [vmem:[%s1221_s3 + $0x190] sm:$0xff] }
  0x2d   :  { %443 = vst [vmem:[%s1222_s4 + $0x110] sm:$0xff] %v379_v47  ;;  %v194_v8 = vadd.f32 %v515_v2, %v126_v61  ;;  %v195_v9 = vadd.f32 %v515_v2, %v127_v62  ;;  %v130_v12 = vmul.f32 %v510_v1, %v62_v57  ;;  %v384_v14 = vmax.f32 %v320_v3, 0.0  ;;  %v72_v61 = vld [vmem:[%s1218_s0 + $0x1b8] sm:$0xff]  ;;  %v269_v3 = vld [vmem:[%s1221_s3 + $0x1a0] sm:$0xff] }
  0x2e   :  { %444 = vst [vmem:[%s1222_s4 + $0x118] sm:$0xff] %v380_v52  ;;  %v321_v15 = vadd.f32 %v257_v60, %v193_v4  ;;  %v196_v16 = vadd.f32 %v515_v2, %v128_v7  ;;  %v131_v19 = vmul.f32 %v510_v1, %v63_v63  ;;  %v197_v22 = vadd.f32 %v515_v2, %v129_v11  ;;  %v270_v4 = vld [vmem:[%s1221_s3 + $0x1a8] sm:$0xff]  ;;  %v73_v11 = vld [vmem:[%s1218_s0 + $0x1c0] sm:$0xff] }
  0x2f   :  { %445 = vst [vmem:[%s1222_s4 + $0x120] sm:$0xff] %v381_v58  ;;  %v322_v20 = vadd.f32 %v258_v5, %v194_v8  ;;  %v323_v21 = vadd.f32 %v259_v6, %v195_v9  ;;  %v198_v23 = vadd.f32 %v515_v2, %v130_v12  ;;  %v132_v29 = vmul.f32 %v510_v1, %v64_v13  ;;  %v268_v58 = vld [vmem:[%s1221_s3 + $0x198] sm:$0xff] }
  0x30   :  { %446 = vst [vmem:[%s1222_s4 + $0x128] sm:$0xff] %v382_v59  ;;  %v385_v26 = vmax.f32 %v321_v15, 0.0  ;;  %v324_v27 = vadd.f32 %v260_v10, %v196_v16  ;;  %v199_v28 = vadd.f32 %v515_v2, %v131_v19  ;;  %v325_v34 = vadd.f32 %v261_v17, %v197_v22  ;;  %v271_v10 = vld [vmem:[%s1221_s3 + $0x1b0] sm:$0xff]  ;;  %v74_v16 = vld [vmem:[%s1218_s0 + $0x1c8] sm:$0xff]  ;;  %v272_v22 = vld [vmem:[%s1221_s3 + $0x1b8] sm:$0xff] }
  0x31   :  { %447 = vst [vmem:[%s1222_s4 + $0x130] sm:$0xff] %v383_v0  ;;  %v386_v32 = vmax.f32 %v322_v20, 0.0  ;;  %v387_v33 = vmax.f32 %v323_v21, 0.0  ;;  %v326_v35 = vadd.f32 %v262_v18, %v198_v23  ;;  %v200_v40 = vadd.f32 %v515_v2, %v132_v29  ;;  %v75_v17 = vld [vmem:[%s1218_s0 + $0x1d0] sm:$0xff]  ;;  %v76_v23 = vld [vmem:[%s1218_s0 + $0x1d8] sm:$0xff]  ;;  %v78_v29 = vld [vmem:[%s1218_s0 + $0x1e8] sm:$0xff] }
  0x32   :  { %448 = vst [vmem:[%s1222_s4 + $0x138] sm:$0xff] %v384_v14  ;;  %v388_v38 = vmax.f32 %v324_v27, 0.0  ;;  %v327_v39 = vadd.f32 %v263_v24, %v199_v28  ;;  %v133_v41 = vmul.f32 %v510_v1, %v65_v25  ;;  %v389_v44 = vmax.f32 %v325_v34, 0.0  ;;  %v77_v28 = vld [vmem:[%s1218_s0 + $0x1e0] sm:$0xff] }
  0x33   :  { %449 = vst [vmem:[%s1222_s4 + $0x140] sm:$0xff] %v385_v26  ;;  %v390_v45 = vmax.f32 %v326_v35, 0.0  ;;  %v134_v47 = vmul.f32 %v510_v1, %v66_v30  ;;  %v135_v48 = vmul.f32 %v510_v1, %v67_v31  ;;  %v328_v51 = vadd.f32 %v264_v36, %v200_v40  ;;  %v79_v35 = vld [vmem:[%s1218_s0 + $0x1f0] sm:$0xff] }
  0x34   :  { %450 = vst [vmem:[%s1222_s4 + $0x148] sm:$0xff] %v386_v32  ;;  %v391_v50 = vmax.f32 %v327_v39, 0.0  ;;  %v201_v52 = vadd.f32 %v515_v2, %v133_v41  ;;  %v136_v55 = vmul.f32 %v510_v1, %v68_v37  ;;  %v137_v59 = vmul.f32 %v510_v1, %v69_v42  ;;  %v273_v32 = vld [vmem:[%s1221_s3 + $0x1c0] sm:$0xff]  ;;  %v274_v39 = vld [vmem:[%s1221_s3 + $0x1c8] sm:$0xff]  ;;  %v275_v40 = vld [vmem:[%s1221_s3 + $0x1d0] sm:$0xff] }
  0x35   :  { %451 = vst [vmem:[%s1222_s4 + $0x150] sm:$0xff] %v387_v33  ;;  %v202_v56 = vadd.f32 %v515_v2, %v134_v47  ;;  %v203_v57 = vadd.f32 %v515_v2, %v135_v48  ;;  %v138_v60 = vmul.f32 %v510_v1, %v70_v43  ;;  %v392_v62 = vmax.f32 %v328_v51, 0.0  ;;  %v80_v47 = vld [vmem:[%s1218_s0 + $0x1f8] sm:$0xff]  ;;  %v277_v51 = vld [vmem:[%s1221_s3 + $0x1e0] sm:$0xff] }
  0x36   :  { %452 = vst [vmem:[%s1222_s4 + $0x158] sm:$0xff] %v388_v38  ;;  %v329_v63 = vadd.f32 %v265_v46, %v201_v52  ;;  %v204_v0 = vadd.f32 %v515_v2, %v136_v55  ;;  %v139_v5 = vmul.f32 %v510_v1, %v71_v49  ;;  %v205_v8 = vadd.f32 %v515_v2, %v137_v59  ;;  %v278_v52 = vld [vmem:[%s1221_s3 + $0x1e8] sm:$0xff] }
  0x37   :  { %453 = vst [vmem:[%s1222_s4 + $0x160] sm:$0xff] %v389_v44  ;;  %v330_v6 = vadd.f32 %v266_v53, %v202_v56  ;;  %v331_v7 = vadd.f32 %v267_v54, %v203_v57  ;;  %v206_v9 = vadd.f32 %v515_v2, %v138_v60  ;;  %v140_v15 = vmul.f32 %v510_v1, %v72_v61  ;;  %v276_v44 = vld [vmem:[%s1221_s3 + $0x1d8] sm:$0xff] }
  0x38   :  { %454 = vst [vmem:[%s1222_s4 + $0x168] sm:$0xff] %v390_v45  ;;  %v393_v12 = vmax.f32 %v329_v63, 0.0  ;;  %v332_v13 = vadd.f32 %v268_v58, %v204_v0  ;;  %v207_v14 = vadd.f32 %v515_v2, %v139_v5  ;;  %v333_v20 = vadd.f32 %v269_v3, %v205_v8  ;;  %v279_v58 = vld [vmem:[%s1221_s3 + $0x1f0] sm:$0xff]  ;;  %v280_v5 = vld [vmem:[%s1221_s3 + $0x1f8] sm:$0xff] }
  0x39   :  { %455 = vst [vmem:[%s1222_s4 + $0x170] sm:$0xff] %v391_v50  ;;  %v394_v18 = vmax.f32 %v330_v6, 0.0  ;;  %v395_v19 = vmax.f32 %v331_v7, 0.0  ;;  %v334_v21 = vadd.f32 %v270_v4, %v206_v9  ;;  %v208_v26 = vadd.f32 %v515_v2, %v140_v15 }
  0x3a   :  { %456 = vst [vmem:[%s1222_s4 + $0x178] sm:$0xff] %v392_v62  ;;  %v396_v24 = vmax.f32 %v332_v13, 0.0  ;;  %v335_v25 = vadd.f32 %v271_v10, %v207_v14  ;;  %v141_v27 = vmul.f32 %v510_v1, %v73_v11  ;;  %v397_v30 = vmax.f32 %v333_v20, 0.0 }
  0x3b   :  { %457 = vst [vmem:[%s1222_s4 + $0x180] sm:$0xff] %v393_v12  ;;  %v398_v31 = vmax.f32 %v334_v21, 0.0  ;;  %v142_v33 = vmul.f32 %v510_v1, %v74_v16  ;;  %v143_v34 = vmul.f32 %v510_v1, %v75_v17  ;;  %v336_v37 = vadd.f32 %v272_v22, %v208_v26 }
  0x3c   :  { %458 = vst [vmem:[%s1222_s4 + $0x188] sm:$0xff] %v394_v18  ;;  %v399_v36 = vmax.f32 %v335_v25, 0.0  ;;  %v209_v38 = vadd.f32 %v515_v2, %v141_v27  ;;  %v144_v41 = vmul.f32 %v510_v1, %v76_v23  ;;  %v145_v45 = vmul.f32 %v510_v1, %v77_v28 }
  0x3d   :  { %459 = vst [vmem:[%s1222_s4 + $0x190] sm:$0xff] %v395_v19  ;;  %v210_v42 = vadd.f32 %v515_v2, %v142_v33  ;;  %v211_v43 = vadd.f32 %v515_v2, %v143_v34  ;;  %v146_v46 = vmul.f32 %v510_v1, %v78_v29  ;;  %v400_v48 = vmax.f32 %v336_v37, 0.0 }
  0x3e   :  { %460 = vst [vmem:[%s1222_s4 + $0x198] sm:$0xff] %v396_v24  ;;  %v337_v49 = vadd.f32 %v273_v32, %v209_v38  ;;  %v212_v50 = vadd.f32 %v515_v2, %v144_v41  ;;  %v147_v53 = vmul.f32 %v510_v1, %v79_v35  ;;  %v213_v56 = vadd.f32 %v515_v2, %v145_v45 }
  0x3f   :  { %461 = vst [vmem:[%s1222_s4 + $0x1a0] sm:$0xff] %v397_v30  ;;  %v338_v54 = vadd.f32 %v274_v39, %v210_v42  ;;  %v339_v55 = vadd.f32 %v275_v40, %v211_v43  ;;  %v214_v57 = vadd.f32 %v515_v2, %v146_v46  ;;  %v148_v62 = vmul.f32 %v510_v1, %v80_v47 }
  0x40   :  { %462 = vst [vmem:[%s1222_s4 + $0x1a8] sm:$0xff] %v398_v31  ;;  %v401_v59 = vmax.f32 %v337_v49, 0.0  ;;  %v340_v60 = vadd.f32 %v276_v44, %v212_v50  ;;  %v215_v61 = vadd.f32 %v515_v2, %v147_v53  ;;  %v341_v3 = vadd.f32 %v277_v51, %v213_v56 }
  0x41   :  { %463 = vst [vmem:[%s1222_s4 + $0x1b0] sm:$0xff] %v399_v36  ;;  %v402_v63 = vmax.f32 %v338_v54, 0.0  ;;  %v403_v0 = vmax.f32 %v339_v55, 0.0  ;;  %v342_v4 = vadd.f32 %v278_v52, %v214_v57  ;;  %v216_v1 = vadd.f32 %v515_v2, %v148_v62 }
  0x42   :  { %464 = vst [vmem:[%s1222_s4 + $0x1b8] sm:$0xff] %v400_v48  ;;  %v404_v6 = vmax.f32 %v340_v60, 0.0  ;;  %v343_v7 = vadd.f32 %v279_v58, %v215_v61  ;;  %v405_v8 = vmax.f32 %v341_v3, 0.0 }
  0x43   :  { %465 = vst [vmem:[%s1222_s4 + $0x1c0] sm:$0xff] %v401_v59  ;;  %v406_v9 = vmax.f32 %v342_v4, 0.0  ;;  %v344_v11 = vadd.f32 %v280_v5, %v216_v1 }
  0x44   :  { %466 = vst [vmem:[%s1222_s4 + $0x1c8] sm:$0xff] %v402_v63  ;;  %v407_v10 = vmax.f32 %v343_v7, 0.0 }
  0x45   :  { %467 = vst [vmem:[%s1222_s4 + $0x1d0] sm:$0xff] %v403_v0  ;;  %v408_v2 = vmax.f32 %v344_v11, 0.0 }
  0x46   :  { %468 = vst [vmem:[%s1222_s4 + $0x1d8] sm:$0xff] %v404_v6 }
  0x47   :  { %469 = vst [vmem:[%s1222_s4 + $0x1e0] sm:$0xff] %v405_v8 }
  0x48   :  { %470 = vst [vmem:[%s1222_s4 + $0x1e8] sm:$0xff] %v406_v9 }
  0x49   :  { %471 = vst [vmem:[%s1222_s4 + $0x1f0] sm:$0xff] %v407_v10 }
  0x4a   :  { %472 = vst [vmem:[%s1222_s4 + $0x1f8] sm:$0xff] %v408_v2 }

// kernel: residual_block_forward.4
= control target key start
LH: loop header
LB: loop body
LE: loop exit
PB: predicated region body
PF: predicated region fallthrough
CT: control target
= control target key end

     0   :  { %vm4168_vm0 = vcmask 1040384   ;;  %s8546_s1 = inlined_call_operand.vmem [shape: bf16[1152,128], index: 1, kind: input, shape index: {}]   ;;  %s8547_s0 = inlined_call_operand.vmem [shape: bf16[512,1152], index: 0, kind: input, shape index: {}]   ;;  %s8548_s2 = inlined_call_operand.vmem [shape: f32[512,128], index: 2, kind: output, shape index: {0}]   ;;  %s8549_s3 = inlined_call_operand.vmem [shape: f32[1,2,128], index: 3, kind: output, shape index: {1}]  }
   0x1   :  { %v5914_v0 = vld [vmem:[%s8546_s1 + $0x38] sm:$0xff]  ;;  %v5913_v1 = vld [vmem:[%s8546_s1 + $0x30] sm:$0xff]  ;;  %v5912_v2 = vld [vmem:[%s8546_s1 + $0x28] sm:$0xff] }
   0x2   :  { %5979 = vmatpush.bf16.msra.mxu1 %v5914_v0  ;;  %5980 = vmatpush.bf16.msra.mxu2 %v5914_v0  ;;  %v5911_v3 = vld [vmem:[%s8546_s1 + $0x20] sm:$0xff]  ;;  %v5910_v4 = vld [vmem:[%s8546_s1 + $0x18] sm:$0xff]  ;;  %v5909_v5 = vld [vmem:[%s8546_s1 + $0x10] sm:$0xff] }
   0x3   :  { %5981 = vmatpush.bf16.msra.mxu3 %v5914_v0  ;;  %2381 = vmatpush.bf16.msra.mxu0 %v5914_v0  ;;  %v5908_v6 = vld [vmem:[%s8546_s1 + $0x8] sm:$0xff]  ;;  %v5907_v7 = vld [vmem:[%s8546_s1] sm:$0xff]  ;;  %v5930_v16 = vld [vmem:[%s8546_s1 + $0xb8] sm:$0xff] }
   0x4   :  { %v4469_v8 = vld [vmem:[%s8547_s0 + $0x240] sm:$0xf]  ;;  %v5695_v9 = vld [vmem:[%s8547_s0 + $0x260] sm:$0xf0]  ;;  %v5938_v17 = vld [vmem:[%s8546_s1 + $0xf8] sm:$0xff] }
   0x5   :  { %v4757_v10 = vld [vmem:[%s8547_s0 + $0x480] sm:$0xf]  ;;  %v5767_v11 = vld [vmem:[%s8547_s0 + $0x4a0] sm:$0xf0]  ;;  %v4470_v18 = vor.u32 %v5695_v9, %v4469_v8  ;;  %v5922_v22 = vld [vmem:[%s8546_s1 + $0x78] sm:$0xff] }
   0x6   :  { %5982 = vmatpush.bf16.msra.mxu1 %v5913_v1  ;;  %5983 = vmatpush.bf16.msra.mxu2 %v5913_v1  ;;  %v5045_v12 = vld [vmem:[%s8547_s0 + $0x6c0] sm:$0xf]  ;;  %v5839_v13 = vld [vmem:[%s8547_s0 + $0x6e0] sm:$0xf0]  ;;  %v4758_v19 = vor.u32 %v5767_v11, %v4757_v10  ;;  %v5946_v23 = vld [vmem:[%s8546_s1 + $0x138] sm:$0xff] }
   0x7   :  { %5984 = vmatpush.bf16.msra.mxu3 %v5913_v1  ;;  %2382 = vmatpush.bf16.msra.mxu0 %v5913_v1  ;;  %v4181_v14 = vld [vmem:[%s8547_s0] sm:$0xf]  ;;  %v5623_v15 = vld [vmem:[%s8547_s0 + $0x20] sm:$0xf0]  ;;  %v5046_v20 = vor.u32 %v5839_v13, %v5045_v12  ;;  %v5929_v24 = vld [vmem:[%s8546_s1 + $0xb0] sm:$0xff] }
   0x8   :  { %v4182_v21 = vor.u32 %v5623_v15, %v4181_v14  ;;  %v5937_v25 = vld [vmem:[%s8546_s1 + $0xf0] sm:$0xff]  ;;  %v5928_v28 = vld [vmem:[%s8546_s1 + $0xa8] sm:$0xff]  ;;  %v5927_v44 = vld [vmem:[%s8546_s1 + $0xa0] sm:$0xff] }
   0x9   :  { %v5921_v26 = vld [vmem:[%s8546_s1 + $0x70] sm:$0xff]  ;;  %v5936_v29 = vld [vmem:[%s8546_s1 + $0xe8] sm:$0xff]  ;;  %v5935_v45 = vld [vmem:[%s8546_s1 + $0xe0] sm:$0xff] }
   0xa   :  { %5985 = vmatpush.bf16.msra.mxu1 %v5912_v2  ;;  %5986 = vmatpush.bf16.msra.mxu2 %v5912_v2  ;;  %v5945_v27 = vld [vmem:[%s8546_s1 + $0x130] sm:$0xff]  ;;  %v5920_v30 = vld [vmem:[%s8546_s1 + $0x68] sm:$0xff]  ;;  %v5919_v46 = vld [vmem:[%s8546_s1 + $0x60] sm:$0xff] }
   0xb   :  { %5987 = vmatpush.bf16.msra.mxu3 %v5912_v2  ;;  %2383 = vmatpush.bf16.msra.mxu0 %v5912_v2  ;;  %v5944_v31 = vld [vmem:[%s8546_s1 + $0x128] sm:$0xff]  ;;  %v5943_v47 = vld [vmem:[%s8546_s1 + $0x120] sm:$0xff]  ;;  %v4541_v48 = vld [vmem:[%s8547_s0 + $0x2d0] sm:$0xf] }
   0xc   :  { %v4505_v32 = vld [vmem:[%s8547_s0 + $0x288] sm:$0xf]  ;;  %v5704_v33 = vld [vmem:[%s8547_s0 + $0x2a8] sm:$0xf0]  ;;  %v5713_v49 = vld [vmem:[%s8547_s0 + $0x2f0] sm:$0xf0] }
   0xd   :  { %v4793_v34 = vld [vmem:[%s8547_s0 + $0x4c8] sm:$0xf]  ;;  %v5776_v35 = vld [vmem:[%s8547_s0 + $0x4e8] sm:$0xf0]  ;;  %v4506_v40 = vor.u32 %v5704_v33, %v4505_v32  ;;  %v4829_v50 = vld [vmem:[%s8547_s0 + $0x510] sm:$0xf]  ;;  %v4542_v56 = vor.u32 %v5713_v49, %v4541_v48 }
   0xe   :  { %5988 = vmatpush.bf16.msra.mxu1 %v5911_v3  ;;  %5989 = vmatpush.bf16.msra.mxu2 %v5911_v3  ;;  %v5081_v36 = vld [vmem:[%s8547_s0 + $0x708] sm:$0xf]  ;;  %v5848_v37 = vld [vmem:[%s8547_s0 + $0x728] sm:$0xf0]  ;;  %v4794_v41 = vor.u32 %v5776_v35, %v4793_v34  ;;  %v5785_v51 = vld [vmem:[%s8547_s0 + $0x530] sm:$0xf0] }
   0xf   :  { %5990 = vmatpush.bf16.msra.mxu3 %v5911_v3  ;;  %2384 = vmatpush.bf16.msra.mxu0 %v5911_v3  ;;  %v4217_v38 = vld [vmem:[%s8547_s0 + $0x48] sm:$0xf]  ;;  %v5632_v39 = vld [vmem:[%s8547_s0 + $0x68] sm:$0xf0]  ;;  %v5082_v42 = vor.u32 %v5848_v37, %v5081_v36  ;;  %v5117_v52 = vld [vmem:[%s8547_s0 + $0x750] sm:$0xf]  ;;  %v4830_v57 = vor.u32 %v5785_v51, %v4829_v50 }
  0x10   :  { %v4218_v43 = vor.u32 %v5632_v39, %v4217_v38  ;;  %v5857_v53 = vld [vmem:[%s8547_s0 + $0x770] sm:$0xf0]  ;;  %v4253_v54 = vld [vmem:[%s8547_s0 + $0x90] sm:$0xf]  ;;  %v5926_v60 = vld [vmem:[%s8546_s1 + $0x98] sm:$0xff] }
  0x11   :  { %v5641_v55 = vld [vmem:[%s8547_s0 + $0xb0] sm:$0xf0]  ;;  %v5118_v58 = vor.u32 %v5857_v53, %v5117_v52  ;;  %v5934_v61 = vld [vmem:[%s8546_s1 + $0xd8] sm:$0xff]  ;;  %v4649_v32 = vld [vmem:[%s8547_s0 + $0x3a8] sm:$0xf] }
  0x12   :  { %5991 = vmatpush.bf16.msra.mxu1 %v5910_v4  ;;  %5992 = vmatpush.bf16.msra.mxu2 %v5910_v4  ;;  %v4254_v59 = vor.u32 %v5641_v55, %v4253_v54  ;;  %v5918_v62 = vld [vmem:[%s8546_s1 + $0x58] sm:$0xff]  ;;  %v5925_v12 = vld [vmem:[%s8546_s1 + $0x90] sm:$0xff]  ;;  %v5740_v33 = vld [vmem:[%s8547_s0 + $0x3c8] sm:$0xf0] }
  0x13   :  { %5993 = vmatpush.bf16.msra.mxu3 %v5910_v4  ;;  %2385 = vmatpush.bf16.msra.mxu0 %v5910_v4  ;;  %v5942_v63 = vld [vmem:[%s8546_s1 + $0x118] sm:$0xff]  ;;  %v5933_v13 = vld [vmem:[%s8546_s1 + $0xd0] sm:$0xff]  ;;  %v4937_v34 = vld [vmem:[%s8547_s0 + $0x5e8] sm:$0xf] }
  0x14   :  { %v4577_v0 = vld [vmem:[%s8547_s0 + $0x318] sm:$0xf]  ;;  %v5722_v1 = vld [vmem:[%s8547_s0 + $0x338] sm:$0xf0]  ;;  %v5917_v14 = vld [vmem:[%s8546_s1 + $0x50] sm:$0xff] }
  0x15   :  { %v4865_v2 = vld [vmem:[%s8547_s0 + $0x558] sm:$0xf]  ;;  %v5794_v3 = vld [vmem:[%s8547_s0 + $0x578] sm:$0xf0]  ;;  %v4578_v8 = vor.u32 %v5722_v1, %v4577_v0  ;;  %v5941_v15 = vld [vmem:[%s8546_s1 + $0x110] sm:$0xff] }
  0x16   :  { %5994 = vmatpush.bf16.msra.mxu1 %v5909_v5  ;;  %5995 = vmatpush.bf16.msra.mxu2 %v5909_v5  ;;  %v5153_v4 = vld [vmem:[%s8547_s0 + $0x798] sm:$0xf]  ;;  %v4866_v9 = vor.u32 %v5794_v3, %v4865_v2  ;;  %v5812_v35 = vld [vmem:[%s8547_s0 + $0x608] sm:$0xf0]  ;;  %v5225_v36 = vld [vmem:[%s8547_s0 + $0x828] sm:$0xf] }
  0x17   :  { %5996 = vmatpush.bf16.msra.mxu3 %v5909_v5  ;;  %2386 = vmatpush.bf16.msra.mxu0 %v5909_v5  ;;  %v5866_v5 = vld [vmem:[%s8547_s0 + $0x7b8] sm:$0xf0]  ;;  %v5884_v37 = vld [vmem:[%s8547_s0 + $0x848] sm:$0xf0]  ;;  %v4361_v38 = vld [vmem:[%s8547_s0 + $0x168] sm:$0xf] }
  0x18   :  { %v5154_v10 = vor.u32 %v5866_v5, %v5153_v4  ;;  %v5668_v39 = vld [vmem:[%s8547_s0 + $0x188] sm:$0xf0]  ;;  %v4685_v48 = vld [vmem:[%s8547_s0 + $0x3f0] sm:$0xf]  ;;  %v5749_v49 = vld [vmem:[%s8547_s0 + $0x410] sm:$0xf0] }
  0x19   :  { %v4973_v50 = vld [vmem:[%s8547_s0 + $0x630] sm:$0xf]  ;;  %v5821_v51 = vld [vmem:[%s8547_s0 + $0x650] sm:$0xf0]  ;;  %v4721_v0 = vld [vmem:[%s8547_s0 + $0x438] sm:$0xf] }
  0x1a   :  { %5997 = vmatpush.bf16.msra.mxu1 %v5908_v6  ;;  %5998 = vmatpush.bf16.msra.mxu2 %v5908_v6  ;;  %v5261_v52 = vld [vmem:[%s8547_s0 + $0x870] sm:$0xf]  ;;  %v5893_v53 = vld [vmem:[%s8547_s0 + $0x890] sm:$0xf0]  ;;  %v5758_v1 = vld [vmem:[%s8547_s0 + $0x458] sm:$0xf0] }
  0x1b   :  { %5999 = vmatpush.bf16.msra.mxu3 %v5908_v6  ;;  %2387 = vmatpush.bf16.msra.mxu0 %v5908_v6  ;;  %v4289_v6 = vld [vmem:[%s8547_s0 + $0xd8] sm:$0xf]  ;;  %v4397_v54 = vld [vmem:[%s8547_s0 + $0x1b0] sm:$0xf]  ;;  %v5677_v55 = vld [vmem:[%s8547_s0 + $0x1d0] sm:$0xf0] }
  0x1c   :  { %v5009_v2 = vld [vmem:[%s8547_s0 + $0x678] sm:$0xf]  ;;  %v5830_v3 = vld [vmem:[%s8547_s0 + $0x698] sm:$0xf0] }
  0x1d   :  { %v5297_v4 = vld [vmem:[%s8547_s0 + $0x8b8] sm:$0xf]  ;;  %v5902_v5 = vld [vmem:[%s8547_s0 + $0x8d8] sm:$0xf0] }
  0x1e   :  { %6000 = vmatpush.bf16.msra.mxu1 %v5907_v7  ;;  %6001 = vmatpush.bf16.msra.mxu2 %v5907_v7 }
  0x1f   :  { %6002 = vmatpush.bf16.msra.mxu3 %v5907_v7  ;;  %2388 = vmatpush.bf16.msra.mxu0 %v5907_v7  ;;  %v5650_v7 = vld [vmem:[%s8547_s0 + $0xf8] sm:$0xf0] }
  0x20   :  { %v4290_v11 = vor.u32 %v5650_v7, %v4289_v6  ;;  %v4433_v6 = vld [vmem:[%s8547_s0 + $0x1f8] sm:$0xf]  ;;  %v5686_v7 = vld [vmem:[%s8547_s0 + $0x218] sm:$0xf0] }
  0x21   :  { %2429 = vmatmul.bf16.vlgmr.msra.gmra.mxu1 %v4470_v18  ;;  %2469 = vmatmul.bf16.vlgmr.msra.gmra.mxu2 %v4758_v19  ;;  %v4901_v18 = vld [vmem:[%s8547_s0 + $0x5a0] sm:$0xf]  ;;  %v5803_v19 = vld [vmem:[%s8547_s0 + $0x5c0] sm:$0xf0] }
  0x22   :  { %2719 = vmatpush.bf16.msrb.mxu2 %v5930_v16  ;;  %2509 = vmatmul.bf16.vlgmr.msra.gmra.mxu3 %v5046_v20  ;;  %v4613_v16 = vld [vmem:[%s8547_s0 + $0x360] sm:$0xf] }
  0x23   :  { %2888 = vmatpush.bf16.msrb.mxu3 %v5938_v17  ;;  %2389 = vmatmul.bf16.vlgmr.msra.gmra.mxu0 %v4182_v21  ;;  %v5731_v17 = vld [vmem:[%s8547_s0 + $0x380] sm:$0xf0]  ;;  %v5189_v20 = vld [vmem:[%s8547_s0 + $0x7e0] sm:$0xf] }
  0x24   :  { %2550 = vmatpush.bf16.msrb.mxu1 %v5922_v22  ;;  %3057 = vmatpush.bf16.msrb.mxu0 %v5946_v23  ;;  %v5875_v21 = vld [vmem:[%s8547_s0 + $0x800] sm:$0xf0]  ;;  %v4325_v22 = vld [vmem:[%s8547_s0 + $0x120] sm:$0xf] }
  0x25   :  { %v5659_v23 = vld [vmem:[%s8547_s0 + $0x140] sm:$0xf0] }
  0x26   :  { %2720 = vmatpush.bf16.msrb.mxu2 %v5929_v24  ;;  %v4614_v24 = vor.u32 %v5731_v17, %v4613_v16  ;;  %v5620_v16 = vld [vmem:[%s8547_s0 + $0xc] sm:$0xf]  ;;  %v4191_v17 = vld [vmem:[%s8547_s0 + $0x2c] sm:$0xf0] }
  0x27   :  { %2889 = vmatpush.bf16.msrb.mxu3 %v5937_v25  ;;  %v4902_v25 = vor.u32 %v5803_v19, %v4901_v18  ;;  %v4197_v18 = vld [vmem:[%s8547_s0 + $0x10] sm:$0xf]  ;;  %v5625_v19 = vld [vmem:[%s8547_s0 + $0x30] sm:$0xf0] }
  0x28   :  { %2551 = vmatpush.bf16.msrb.mxu1 %v5921_v26  ;;  %3058 = vmatpush.bf16.msrb.mxu0 %v5945_v27  ;;  %v5190_v26 = vor.u32 %v5875_v21, %v5189_v20  ;;  %v4326_v27 = vor.u32 %v5659_v23, %v4325_v22  ;;  %v4194_v23 = vor.u32 %v5620_v16, %v4191_v17  ;;  %v4305_v16 = vld [vmem:[%s8547_s0 + $0xe8] sm:$0xf]  ;;  %v5652_v17 = vld [vmem:[%s8547_s0 + $0x108] sm:$0xf0] }
  0x2a   :  { %2721 = vmatpush.bf16.msrb.mxu2 %v5928_v28  ;;  %v5924_v28 = vld [vmem:[%s8546_s1 + $0x88] sm:$0xff] }
  0x2b   :  { %2890 = vmatpush.bf16.msrb.mxu3 %v5936_v29  ;;  %v5932_v29 = vld [vmem:[%s8546_s1 + $0xc8] sm:$0xff] }
  0x2c   :  { %2552 = vmatpush.bf16.msrb.mxu1 %v5920_v30  ;;  %3059 = vmatpush.bf16.msrb.mxu0 %v5944_v31  ;;  %v5916_v30 = vld [vmem:[%s8546_s1 + $0x48] sm:$0xff] }
  0x2d   :  { %v5940_v31 = vld [vmem:[%s8546_s1 + $0x108] sm:$0xff] }
  0x2e   :  { %2722 = vmatpush.bf16.msrb.mxu2 %v5927_v44  ;;  %v5923_v44 = vld [vmem:[%s8546_s1 + $0x80] sm:$0xff] }
  0x2f   :  { %2891 = vmatpush.bf16.msrb.mxu3 %v5935_v45  ;;  %v5931_v45 = vld [vmem:[%s8546_s1 + $0xc0] sm:$0xff] }
  0x30   :  { %2553 = vmatpush.bf16.msrb.mxu1 %v5919_v46  ;;  %3060 = vmatpush.bf16.msrb.mxu0 %v5943_v47  ;;  %v5915_v46 = vld [vmem:[%s8546_s1 + $0x40] sm:$0xff] }
  0x31   :  { %2434 = vmatmul.bf16.gmra.mxu1 %v4506_v40  ;;  %2474 = vmatmul.bf16.gmra.mxu2 %v4794_v41  ;;  %v4650_v40 = vor.u32 %v5740_v33, %v4649_v32  ;;  %v4938_v41 = vor.u32 %v5812_v35, %v4937_v34  ;;  %v5939_v47 = vld [vmem:[%s8546_s1 + $0x100] sm:$0xff]  ;;  %v4225_v32 = vld [vmem:[%s8547_s0 + $0x50] sm:$0xf]  ;;  %v5633_v33 = vld [vmem:[%s8547_s0 + $0x70] sm:$0xf0] }
  0x32   :  { %2514 = vmatmul.bf16.gmra.mxu3 %v5082_v42  ;;  %2723 = vmatpush.bf16.msrb.mxu2 %v5926_v60  ;;  %v5226_v42 = vor.u32 %v5884_v37, %v5225_v36  ;;  %v5962_v60 = vld [vmem:[%s8546_s1 + $0x1b8] sm:$0xff]  ;;  %v5629_v34 = vld [vmem:[%s8547_s0 + $0x54] sm:$0xf] }
  0x33   :  { %2394 = vmatmul.bf16.gmra.mxu0 %v4218_v43  ;;  %2892 = vmatpush.bf16.msrb.mxu3 %v5934_v61  ;;  %v4362_v43 = vor.u32 %v5668_v39, %v4361_v38  ;;  %v5970_v61 = vld [vmem:[%s8546_s1 + $0x1f8] sm:$0xff] }
  0x34   :  { %2554 = vmatpush.bf16.msrb.mxu1 %v5918_v62  ;;  %3061 = vmatpush.bf16.msrb.mxu0 %v5942_v63  ;;  %v5954_v62 = vld [vmem:[%s8546_s1 + $0x178] sm:$0xff] }
  0x35   :  { %v5978_v63 = vld [vmem:[%s8546_s1 + $0x238] sm:$0xff] }
  0x36   :  { %2724 = vmatpush.bf16.msrb.mxu2 %v5925_v12  ;;  %v5619_v12 = vld [vmem:[%s8547_s0 + $0x4] sm:$0xf]  ;;  %v4227_v35 = vld [vmem:[%s8547_s0 + $0x74] sm:$0xf0]  ;;  %v5634_v37 = vld [vmem:[%s8547_s0 + $0x78] sm:$0xf0] }
  0x37   :  { %2893 = vmatpush.bf16.msrb.mxu3 %v5933_v13  ;;  %v4183_v13 = vld [vmem:[%s8547_s0 + $0x24] sm:$0xf0]  ;;  %v4233_v36 = vld [vmem:[%s8547_s0 + $0x58] sm:$0xf] }
  0x38   :  { %2555 = vmatpush.bf16.msrb.mxu1 %v5917_v14  ;;  %3062 = vmatpush.bf16.msrb.mxu0 %v5941_v15  ;;  %v4189_v14 = vld [vmem:[%s8547_s0 + $0x8] sm:$0xf]  ;;  %v5624_v15 = vld [vmem:[%s8547_s0 + $0x28] sm:$0xf0]  ;;  %v4186_v20 = vor.u32 %v5619_v12, %v4183_v13  ;;  %v4297_v12 = vld [vmem:[%s8547_s0 + $0xe0] sm:$0xf] }
  0x39   :  { %v4190_v21 = vor.u32 %v5624_v15, %v4189_v14  ;;  %v5651_v13 = vld [vmem:[%s8547_s0 + $0x100] sm:$0xf0]  ;;  %v4299_v15 = vld [vmem:[%s8547_s0 + $0x104] sm:$0xf0] }
  0x3a   :  { %2725 = vmatpush.bf16.msrb.mxu2 %v5924_v28  ;;  %v5647_v14 = vld [vmem:[%s8547_s0 + $0xe4] sm:$0xf] }
  0x3b   :  { %2894 = vmatpush.bf16.msrb.mxu3 %v5932_v29 }
  0x3c   :  { %2556 = vmatpush.bf16.msrb.mxu1 %v5916_v30  ;;  %3063 = vmatpush.bf16.msrb.mxu0 %v5940_v31  ;;  %v5628_v30 = vld [vmem:[%s8547_s0 + $0x4c] sm:$0xf]  ;;  %v4219_v31 = vld [vmem:[%s8547_s0 + $0x6c] sm:$0xf0] }
  0x3e   :  { %2726 = vmatpush.bf16.msrb.mxu2 %v5923_v44  ;;  %v4234_v44 = vor.u32 %v5634_v37, %v4233_v36  ;;  %v5655_v36 = vld [vmem:[%s8547_s0 + $0x124] sm:$0xf]  ;;  %v4327_v37 = vld [vmem:[%s8547_s0 + $0x144] sm:$0xf0] }
  0x3f   :  { %2895 = vmatpush.bf16.msrb.mxu3 %v5931_v45 }
  0x40   :  { %2557 = vmatpush.bf16.msrb.mxu1 %v5915_v46  ;;  %3064 = vmatpush.bf16.msrb.mxu0 %v5939_v47 }
  0x41   :  { %2439 = vmatmul.bf16.gmra.mxu1 %v4542_v56  ;;  %2479 = vmatmul.bf16.gmra.mxu2 %v4830_v57  ;;  %v4686_v56 = vor.u32 %v5749_v49, %v4685_v48  ;;  %v4974_v57 = vor.u32 %v5821_v51, %v4973_v50  ;;  %v5637_v50 = vld [vmem:[%s8547_s0 + $0x94] sm:$0xf]  ;;  %v4255_v51 = vld [vmem:[%s8547_s0 + $0xb4] sm:$0xf0] }
  0x42   :  { %2519 = vmatmul.bf16.gmra.mxu3 %v5118_v58  ;;  %v5262_v58 = vor.u32 %v5893_v53, %v5261_v52  ;;  %3395 = vmatpush.bf16.msra.mxu2 %v5962_v60  ;;  %v4261_v52 = vld [vmem:[%s8547_s0 + $0x98] sm:$0xf]  ;;  %v5642_v53 = vld [vmem:[%s8547_s0 + $0xb8] sm:$0xf0]  ;;  %v4258_v60 = vor.u32 %v5637_v50, %v4255_v51  ;;  %v4341_v50 = vld [vmem:[%s8547_s0 + $0x130] sm:$0xf] }
  0x43   :  { %2399 = vmatmul.bf16.gmra.mxu0 %v4254_v59  ;;  %v4398_v59 = vor.u32 %v5677_v55, %v4397_v54  ;;  %3564 = vmatpush.bf16.msra.mxu3 %v5970_v61  ;;  %v5638_v54 = vld [vmem:[%s8547_s0 + $0x9c] sm:$0xf]  ;;  %v4263_v55 = vld [vmem:[%s8547_s0 + $0xbc] sm:$0xf0]  ;;  %v4262_v61 = vor.u32 %v5642_v53, %v4261_v52  ;;  %v5661_v51 = vld [vmem:[%s8547_s0 + $0x150] sm:$0xf0] }
  0x44   :  { %3226 = vmatpush.bf16.msra.mxu1 %v5954_v62  ;;  %3733 = vmatpush.bf16.msra.mxu0 %v5978_v63  ;;  %v4266_v63 = vor.u32 %v5638_v54, %v4263_v55  ;;  %v4330_v54 = vor.u32 %v5655_v36, %v4327_v37 }
  0x51   :  { %2444 = vmatmul.bf16.gmra.mxu1 %v4578_v8  ;;  %2484 = vmatmul.bf16.gmra.mxu2 %v4866_v9  ;;  %v4722_v8 = vor.u32 %v5758_v1, %v4721_v0  ;;  %v5010_v9 = vor.u32 %v5830_v3, %v5009_v2  ;;  %v5961_v2 = vld [vmem:[%s8546_s1 + $0x1b0] sm:$0xff] }
  0x52   :  { %2524 = vmatmul.bf16.gmra.mxu3 %v5154_v10  ;;  %v5298_v10 = vor.u32 %v5902_v5, %v5297_v4  ;;  %v5969_v3 = vld [vmem:[%s8546_s1 + $0x1f0] sm:$0xff]  ;;  %3396 = vmatpush.bf16.msra.mxu2 %v5961_v2 }
  0x53   :  { %2404 = vmatmul.bf16.gmra.mxu0 %v4290_v11  ;;  %v4434_v11 = vor.u32 %v5686_v7, %v4433_v6  ;;  %3565 = vmatpush.bf16.msra.mxu3 %v5969_v3  ;;  %v5953_v6 = vld [vmem:[%s8546_s1 + $0x170] sm:$0xff] }
  0x54   :  { %3227 = vmatpush.bf16.msra.mxu1 %v5953_v6  ;;  %v5664_v6 = vld [vmem:[%s8547_s0 + $0x16c] sm:$0xf] }
  0x61   :  { %2449 = vmatmul.bf16.gmra.mxu1 %v4614_v24  ;;  %2489 = vmatmul.bf16.gmra.mxu2 %v4902_v25  ;;  %v4198_v24 = vor.u32 %v5625_v19, %v4197_v18 }
  0x62   :  { %2529 = vmatmul.bf16.gmra.mxu3 %v5190_v26 }
  0x63   :  { %2409 = vmatmul.bf16.gmra.mxu0 %v4326_v27 }
  0x71   :  { %2454 = vmatmul.bf16.gmra.mxu1 %v4650_v40  ;;  %2494 = vmatmul.bf16.gmra.mxu2 %v4938_v41  ;;  %v4222_v40 = vor.u32 %v5628_v30, %v4219_v31  ;;  %v4226_v41 = vor.u32 %v5633_v33, %v4225_v32  ;;  %v4306_v30 = vor.u32 %v5652_v17, %v4305_v16 }
  0x72   :  { %2534 = vmatmul.bf16.gmra.mxu3 %v5226_v42 }
  0x73   :  { %2414 = vmatmul.bf16.gmra.mxu0 %v4362_v43  ;;  %v4230_v43 = vor.u32 %v5629_v34, %v4227_v35 }
  0x81   :  { %2459 = vmatmul.bf16.gmra.mxu1 %v4686_v56  ;;  %2499 = vmatmul.bf16.gmra.mxu2 %v4974_v57  ;;  %v4269_v56 = vld [vmem:[%s8547_s0 + $0xa0] sm:$0xf]  ;;  %v5643_v57 = vld [vmem:[%s8547_s0 + $0xc0] sm:$0xf0] }
  0x82   :  { %2539 = vmatmul.bf16.gmra.mxu3 %v5262_v58  ;;  %v4270_v0 = vor.u32 %v5643_v57, %v4269_v56 }
  0x83   :  { %2419 = vmatmul.bf16.gmra.mxu0 %v4398_v59 }
  0x91   :  { %2464 = vmatmul.bf16.gmra.mxu1 %v4722_v8  ;;  %2504 = vmatmul.bf16.gmra.mxu2 %v5010_v9  ;;  %v5977_v9 = vld [vmem:[%s8546_s1 + $0x230] sm:$0xff] }
  0x92   :  { %2544 = vmatmul.bf16.gmra.mxu3 %v5298_v10  ;;  %v5646_v10 = vld [vmem:[%s8547_s0 + $0xdc] sm:$0xf]  ;;  %3734 = vmatpush.bf16.msra.mxu0 %v5977_v9  ;;  %v4363_v9 = vld [vmem:[%s8547_s0 + $0x18c] sm:$0xf0] }
  0x93   :  { %2424 = vmatmul.bf16.gmra.mxu0 %v4434_v11  ;;  %v4291_v11 = vld [vmem:[%s8547_s0 + $0xfc] sm:$0xf0] }
  0x9e   :  { %v6371_v22 = vpop.f32.mrf.mxu1 }
  0xa0   :  { %v6373_v25 = vpop.f32.mrf.mxu0 }
  0xa1   :  { %2558 = vmatmul.bf16.vlgmr.msrb.gmra.mxu1 %v4186_v20  ;;  %2727 = vmatmul.bf16.vlgmr.msrb.gmra.mxu2 %v4190_v21  ;;  %v4294_v20 = vor.u32 %v5646_v10, %v4291_v11  ;;  %v4298_v21 = vor.u32 %v5651_v13, %v4297_v12  ;;  %v4369_v10 = vld [vmem:[%s8547_s0 + $0x170] sm:$0xf]  ;;  %v5669_v11 = vld [vmem:[%s8547_s0 + $0x190] sm:$0xf0]  ;;  %v4371_v13 = vld [vmem:[%s8547_s0 + $0x194] sm:$0xf0] }
  0xa2   :  { %2896 = vmatmul.bf16.vlgmr.msrb.gmra.mxu3 %v4194_v23  ;;  %v5665_v12 = vld [vmem:[%s8547_s0 + $0x174] sm:$0xf] }
  0xa3   :  { %3065 = vmatmul.bf16.vlgmr.msrb.gmra.mxu0 %v4198_v24  ;;  %v4302_v24 = vor.u32 %v5647_v14, %v4299_v15  ;;  %v4377_v14 = vld [vmem:[%s8547_s0 + $0x178] sm:$0xf]  ;;  %v5670_v15 = vld [vmem:[%s8547_s0 + $0x198] sm:$0xf0] }
  0xa4   :  { %v6375_v26 = vpop.f32.mrf.mxu2  ;;  %v4378_v36 = vor.u32 %v5670_v15, %v4377_v14 }
  0xa5   :  { %v6377_v27 = vpop.f32.mrf.mxu3 }
  0xa6   :  { %8550 = vst [vmem:[#allocation2_spill] sm:$0xff] %v6377_v27  ;;  %v6379_v28 = vpop.f32.mrf.mxu1 }
  0xa8   :  { %v6381_v29 = vpop.f32.mrf.mxu0 }
  0xac   :  { %v6407_v38 = vpop.f32.mrf.mxu2 }
  0xad   :  { %v6409_v39 = vpop.f32.mrf.mxu3 }
  0xae   :  { %8551 = vst [vmem:[#allocation3_spill] sm:$0xff] %v6409_v39  ;;  %v6411_v42 = vpop.f32.mrf.mxu1 }
  0xb0   :  { %v6413_v45 = vpop.f32.mrf.mxu0 }
  0xb1   :  { %2563 = vmatmul.bf16.gmra.mxu1 %v4222_v40  ;;  %2732 = vmatmul.bf16.gmra.mxu2 %v4226_v41  ;;  %v4333_v40 = vld [vmem:[%s8547_s0 + $0x128] sm:$0xf]  ;;  %v5660_v41 = vld [vmem:[%s8547_s0 + $0x148] sm:$0xf0] }
  0xb2   :  { %2901 = vmatmul.bf16.gmra.mxu3 %v4230_v43  ;;  %v5656_v43 = vld [vmem:[%s8547_s0 + $0x12c] sm:$0xf]  ;;  %v4334_v55 = vor.u32 %v5660_v41, %v4333_v40 }
  0xb3   :  { %3070 = vmatmul.bf16.gmra.mxu0 %v4234_v44  ;;  %v4335_v44 = vld [vmem:[%s8547_s0 + $0x14c] sm:$0xf0] }
  0xb4   :  { %v6415_v46 = vpop.f32.mrf.mxu2  ;;  %v4338_v57 = vor.u32 %v5656_v43, %v4335_v44 }
  0xb5   :  { %v6417_v47 = vpop.f32.mrf.mxu3 }
  0xb6   :  { %8552 = vst [vmem:[#allocation4_spill] sm:$0xff] %v6417_v47  ;;  %v6419_v48 = vpop.f32.mrf.mxu1 }
  0xb8   :  { %v6421_v49 = vpop.f32.mrf.mxu0 }
  0xbc   :  { %v6447_v58 = vpop.f32.mrf.mxu2 }
  0xbd   :  { %v6449_v59 = vpop.f32.mrf.mxu3 }
  0xbe   :  { %8553 = vst [vmem:[#allocation5_spill] sm:$0xff] %v6449_v59  ;;  %v6451_v62 = vpop.f32.mrf.mxu1 }
  0xc0   :  { %v6453_v1 = vpop.f32.mrf.mxu0 }
  0xc1   :  { %2568 = vmatmul.bf16.gmra.mxu1 %v4258_v60  ;;  %2737 = vmatmul.bf16.gmra.mxu2 %v4262_v61  ;;  %v4342_v60 = vor.u32 %v5661_v51, %v4341_v50  ;;  %v5673_v50 = vld [vmem:[%s8547_s0 + $0x1b4] sm:$0xf]  ;;  %v4399_v51 = vld [vmem:[%s8547_s0 + $0x1d4] sm:$0xf0] }
  0xc2   :  { %2906 = vmatmul.bf16.gmra.mxu3 %v4266_v63 }
  0xc3   :  { %3075 = vmatmul.bf16.gmra.mxu0 %v4270_v0 }
  0xc4   :  { %v6461_v4 = vpop.f32.mrf.mxu2 }
  0xc5   :  { %v6463_v5 = vpop.f32.mrf.mxu3 }
  0xc6   :  { %8554 = vst [vmem:[#allocation6_spill] sm:$0xff] %v6463_v5  ;;  %v6468_v7 = vpop.f32.mrf.mxu1 }
  0xc8   :  { %v6470_v8 = vpop.f32.mrf.mxu0 }
  0xcc   :  { %v6499_v18 = vpop.f32.mrf.mxu2 }
  0xcd   :  { %v6501_v19 = vpop.f32.mrf.mxu3 }
  0xce   :  { %8555 = vst [vmem:[#allocation7_spill] sm:$0xff] %v6501_v19  ;;  %v6503_v23 = vpop.f32.mrf.mxu1 }
  0xd0   :  { %v6505_v31 = vpop.f32.mrf.mxu0 }
  0xd1   :  { %2573 = vmatmul.bf16.gmra.mxu1 %v4294_v20  ;;  %2742 = vmatmul.bf16.gmra.mxu2 %v4298_v21  ;;  %v4366_v20 = vor.u32 %v5664_v6, %v4363_v9  ;;  %v4370_v21 = vor.u32 %v5669_v11, %v4369_v10  ;;  %v4413_v6 = vld [vmem:[%s8547_s0 + $0x1c0] sm:$0xf]  ;;  %v5679_v9 = vld [vmem:[%s8547_s0 + $0x1e0] sm:$0xf0] }
  0xd2   :  { %2911 = vmatmul.bf16.gmra.mxu3 %v4302_v24 }
  0xd3   :  { %3080 = vmatmul.bf16.gmra.mxu0 %v4306_v30  ;;  %v4374_v30 = vor.u32 %v5665_v12, %v4371_v13  ;;  %v4402_v12 = vor.u32 %v5673_v50, %v4399_v51 }
  0xd4   :  { %v6507_v32 = vpop.f32.mrf.mxu2 }
  0xd5   :  { %v6509_v33 = vpop.f32.mrf.mxu3 }
  0xd6   :  { %8556 = vst [vmem:[#allocation8_spill] sm:$0xff] %v6509_v33  ;;  %v6511_v34 = vpop.f32.mrf.mxu1 }
  0xd8   :  { %v6513_v35 = vpop.f32.mrf.mxu0 }
  0xdc   :  { %v6539_v52 = vpop.f32.mrf.mxu2 }
  0xdd   :  { %v6541_v53 = vpop.f32.mrf.mxu3 }
  0xde   :  { %8557 = vst [vmem:[#allocation9_spill] sm:$0xff] %v6541_v53  ;;  %v6543_v56 = vpop.f32.mrf.mxu1 }
  0xe0   :  { %v6545_v61 = vpop.f32.mrf.mxu0 }
  0xe1   :  { %2578 = vmatmul.bf16.gmra.mxu1 %v4330_v54  ;;  %2747 = vmatmul.bf16.gmra.mxu2 %v4334_v55  ;;  %v4405_v54 = vld [vmem:[%s8547_s0 + $0x1b8] sm:$0xf]  ;;  %v5678_v55 = vld [vmem:[%s8547_s0 + $0x1d8] sm:$0xf0] }
  0xe2   :  { %2916 = vmatmul.bf16.gmra.mxu3 %v4338_v57  ;;  %v5674_v57 = vld [vmem:[%s8547_s0 + $0x1bc] sm:$0xf]  ;;  %v4406_v13 = vor.u32 %v5678_v55, %v4405_v54 }
  0xe3   :  { %3085 = vmatmul.bf16.gmra.mxu0 %v4342_v60  ;;  %v4407_v60 = vld [vmem:[%s8547_s0 + $0x1dc] sm:$0xf0] }
  0xe4   :  { %v6547_v63 = vpop.f32.mrf.mxu2  ;;  %v4410_v15 = vor.u32 %v5674_v57, %v4407_v60  ;;  %v5952_v57 = vld [vmem:[%s8546_s1 + $0x168] sm:$0xff] }
  0xe5   :  { %v6549_v0 = vpop.f32.mrf.mxu3  ;;  %v5976_v60 = vld [vmem:[%s8546_s1 + $0x228] sm:$0xff]  ;;  %3228 = vmatpush.bf16.msra.mxu1 %v5952_v57 }
  0xe6   :  { %8558 = vst [vmem:[#allocation10_spill] sm:$0xff] %v6549_v0  ;;  %v6551_v2 = vpop.f32.mrf.mxu1  ;;  %3735 = vmatpush.bf16.msra.mxu0 %v5976_v60 }
  0xe8   :  { %v6553_v3 = vpop.f32.mrf.mxu0 }
  0xec   :  { %v6579_v16 = vpop.f32.mrf.mxu2 }
  0xed   :  { %8559 = vst [vmem:[#allocation11_spill] sm:$0xff] %v6579_v16  ;;  %v6581_v17 = vpop.f32.mrf.mxu3 }
  0xee   :  { %8560 = vst [vmem:[#allocation12_spill] sm:$0xff] %v6581_v17  ;;  %v6583_v24 = vpop.f32.mrf.mxu1 }
  0xf0   :  { %v6585_v37 = vpop.f32.mrf.mxu0 }
  0xf1   :  { %2583 = vmatmul.bf16.gmra.mxu1 %v4366_v20  ;;  %2752 = vmatmul.bf16.gmra.mxu2 %v4370_v21  ;;  %v4414_v20 = vor.u32 %v5679_v9, %v4413_v6  ;;  %v5682_v6 = vld [vmem:[%s8547_s0 + $0x1fc] sm:$0xf]  ;;  %v4435_v9 = vld [vmem:[%s8547_s0 + $0x21c] sm:$0xf0] }
  0xf2   :  { %2921 = vmatmul.bf16.gmra.mxu3 %v4374_v30  ;;  %v5960_v30 = vld [vmem:[%s8546_s1 + $0x1a8] sm:$0xff] }
  0xf3   :  { %3090 = vmatmul.bf16.gmra.mxu0 %v4378_v36  ;;  %v5968_v36 = vld [vmem:[%s8546_s1 + $0x1e8] sm:$0xff]  ;;  %3397 = vmatpush.bf16.msra.mxu2 %v5960_v30 }
  0xf4   :  { %v6587_v40 = vpop.f32.mrf.mxu2  ;;  %3566 = vmatpush.bf16.msra.mxu3 %v5968_v36  ;;  %v4449_v30 = vld [vmem:[%s8547_s0 + $0x208] sm:$0xf]  ;;  %v5688_v36 = vld [vmem:[%s8547_s0 + $0x228] sm:$0xf0] }
  0xf5   :  { %8561 = vst [vmem:[#allocation13_spill] sm:$0xff] %v6587_v40  ;;  %v6589_v41 = vpop.f32.mrf.mxu3  ;;  %v4450_v0 = vor.u32 %v5688_v36, %v4449_v30 }
  0xf6   :  { %8562 = vst [vmem:[#allocation14_spill] sm:$0xff] %v6589_v41  ;;  %v6591_v43 = vpop.f32.mrf.mxu1 }
  0xf8   :  { %v6593_v44 = vpop.f32.mrf.mxu0 }
  0xfc   :  { %v6619_v10 = vpop.f32.mrf.mxu2 }
  0xfd   :  { %8563 = vst [vmem:[#allocation15_spill] sm:$0xff] %v6619_v10  ;;  %v6621_v11 = vpop.f32.mrf.mxu3 }
  0xfe   :  { %8564 = vst [vmem:[#allocation16_spill] sm:$0xff] %v6621_v11  ;;  %v6623_v14 = vpop.f32.mrf.mxu1 }
 0x100   :  { %v6625_v21 = vpop.f32.mrf.mxu0 }
 0x101   :  { %2588 = vmatmul.bf16.gmra.mxu1 %v4402_v12  ;;  %2757 = vmatmul.bf16.gmra.mxu2 %v4406_v13  ;;  %v4441_v12 = vld [vmem:[%s8547_s0 + $0x200] sm:$0xf]  ;;  %v5687_v13 = vld [vmem:[%s8547_s0 + $0x220] sm:$0xf0] }
 0x102   :  { %2926 = vmatmul.bf16.gmra.mxu3 %v4410_v15  ;;  %v5683_v15 = vld [vmem:[%s8547_s0 + $0x204] sm:$0xf]  ;;  %v4442_v11 = vor.u32 %v5687_v13, %v4441_v12  ;;  %v4485_v12 = vld [vmem:[%s8547_s0 + $0x250] sm:$0xf]  ;;  %v5697_v13 = vld [vmem:[%s8547_s0 + $0x270] sm:$0xf0] }
 0x103   :  { %3095 = vmatmul.bf16.gmra.mxu0 %v4414_v20  ;;  %v4443_v20 = vld [vmem:[%s8547_s0 + $0x224] sm:$0xf0]  ;;  %v4486_v47 = vor.u32 %v5697_v13, %v4485_v12 }
 0x104   :  { %v6633_v50 = vpop.f32.mrf.mxu2  ;;  %v4446_v17 = vor.u32 %v5683_v15, %v4443_v20 }
 0x105   :  { %8565 = vst [vmem:[#allocation17_spill] sm:$0xff] %v6633_v50  ;;  %v6635_v51 = vpop.f32.mrf.mxu3 }
 0x106   :  { %8566 = vst [vmem:[#allocation18_spill] sm:$0xff] %v6635_v51  ;;  %v6637_v54 = vpop.f32.mrf.mxu1  ;;  %v4438_v51 = vor.u32 %v5682_v6, %v4435_v9  ;;  %v5691_v6 = vld [vmem:[%s8547_s0 + $0x244] sm:$0xf]  ;;  %v4471_v9 = vld [vmem:[%s8547_s0 + $0x264] sm:$0xf0] }
 0x107   :  { %v4474_v30 = vor.u32 %v5691_v6, %v4471_v9  ;;  %v5700_v6 = vld [vmem:[%s8547_s0 + $0x28c] sm:$0xf]  ;;  %v4507_v9 = vld [vmem:[%s8547_s0 + $0x2ac] sm:$0xf0] }
 0x108   :  { %v6639_v55 = vpop.f32.mrf.mxu0 }
 0x10c   :  { %v6671_v57 = vpop.f32.mrf.mxu2 }
 0x10d   :  { %8567 = vst [vmem:[#allocation19_spill] sm:$0xff] %v6671_v57  ;;  %v6673_v60 = vpop.f32.mrf.mxu3 }
 0x10e   :  { %8568 = vst [vmem:[#allocation20_spill] sm:$0xff] %v6673_v60  ;;  %v6675_v41 = vpop.f32.mrf.mxu1 }
 0x110   :  { %v6677_v53 = vpop.f32.mrf.mxu0 }
 0x111   :  { %2593 = vmatmul.bf16.gmra.mxu1 %v4438_v51  ;;  %2762 = vmatmul.bf16.gmra.mxu2 %v4442_v11  ;;  %v5692_v11 = vld [vmem:[%s8547_s0 + $0x24c] sm:$0xf]  ;;  %v4479_v51 = vld [vmem:[%s8547_s0 + $0x26c] sm:$0xf0] }
 0x112   :  { %2931 = vmatmul.bf16.gmra.mxu3 %v4446_v17  ;;  %v5696_v17 = vld [vmem:[%s8547_s0 + $0x268] sm:$0xf0]  ;;  %v4482_v60 = vor.u32 %v5692_v11, %v4479_v51 }
 0x113   :  { %3100 = vmatmul.bf16.gmra.mxu0 %v4450_v0  ;;  %v4477_v0 = vld [vmem:[%s8547_s0 + $0x248] sm:$0xf] }
 0x114   :  { %v6679_v33 = vpop.f32.mrf.mxu2  ;;  %v4478_v36 = vor.u32 %v5696_v17, %v4477_v0  ;;  %v4510_v17 = vor.u32 %v5700_v6, %v4507_v9  ;;  %v5709_v9 = vld [vmem:[%s8547_s0 + $0x2d4] sm:$0xf] }
 0x115   :  { %8569 = vst [vmem:[#allocation21_spill] sm:$0xff] %v6679_v33  ;;  %v6681_v19 = vpop.f32.mrf.mxu3 }
 0x116   :  { %8570 = vst [vmem:[#allocation22_spill] sm:$0xff] %v6681_v19  ;;  %v6683_v5 = vpop.f32.mrf.mxu1 }
 0x118   :  { %v6685_v59 = vpop.f32.mrf.mxu0 }
 0x11c   :  { %v6711_v15 = vpop.f32.mrf.mxu2 }
 0x11d   :  { %8571 = vst [vmem:[#allocation23_spill] sm:$0xff] %v6711_v15  ;;  %v6713_v20 = vpop.f32.mrf.mxu3 }
 0x11e   :  { %8572 = vst [vmem:[#allocation24_spill] sm:$0xff] %v6713_v20  ;;  %v2559_v19 = vpop.f32.mrf.mxu1 }
 0x11f   :  { %v2560_v27 = vadd.f32 %v2559_v19, %v6373_v25  ;;  %v4513_v25 = vld [vmem:[%s8547_s0 + $0x290] sm:$0xf] }
 0x120   :  { %v3066_v39 = vpop.f32.mrf.mxu0 }
 0x121   :  { %2598 = vmatmul.bf16.gmra.mxu1 %v4474_v30  ;;  %2767 = vmatmul.bf16.gmra.mxu2 %v4478_v36 }
 0x122   :  { %2936 = vmatmul.bf16.gmra.mxu3 %v4482_v60 }
 0x123   :  { %3105 = vmatmul.bf16.gmra.mxu0 %v4486_v47  ;;  %v5701_v47 = vld [vmem:[%s8547_s0 + $0x294] sm:$0xf] }
 0x124   :  { %v2728_v33 = vpop.f32.mrf.mxu2 }
 0x125   :  { %v2729_v57 = vadd.f32 %v2728_v33, %v2560_v27  ;;  %v2897_v50 = vpop.f32.mrf.mxu3  ;;  %v5705_v27 = vld [vmem:[%s8547_s0 + $0x2b0] sm:$0xf0]  ;;  %v4515_v33 = vld [vmem:[%s8547_s0 + $0x2b4] sm:$0xf0] }
 0x126   :  { %v2561_v10 = vpop.f32.mrf.mxu1  ;;  %v4514_v11 = vor.u32 %v5705_v27, %v4513_v25  ;;  %v4518_v12 = vor.u32 %v5701_v47, %v4515_v33  ;;  %v4543_v25 = vld [vmem:[%s8547_s0 + $0x2f4] sm:$0xf0]  ;;  %v4551_v27 = vld [vmem:[%s8547_s0 + $0x2fc] sm:$0xf0]  ;;  %v5715_v33 = vld [vmem:[%s8547_s0 + $0x300] sm:$0xf0] }
 0x127   :  { %v2898_v40 = vadd.f32 %v2897_v50, %v2729_v57  ;;  %v2562_v19 = vadd.f32 %v2561_v10, %v6381_v29  ;;  %v4557_v47 = vld [vmem:[%s8547_s0 + $0x2e0] sm:$0xf] }
 0x128   :  { %v3068_v15 = vpop.f32.mrf.mxu0 }
 0x129   :  { %v6722_v0 = vadd.f32 %v3066_v39, %v2898_v40  ;;  %v4521_v39 = vld [vmem:[%s8547_s0 + $0x298] sm:$0xf]  ;;  %v5706_v40 = vld [vmem:[%s8547_s0 + $0x2b8] sm:$0xf0] }
 0x12a   :  { %v4522_v29 = vor.u32 %v5706_v40, %v4521_v39 }
 0x12b   :  { %8573 = vst [vmem:[#allocation25_spill] sm:$0xff] %v6722_v0 }
 0x12c   :  { %v2730_v50 = vpop.f32.mrf.mxu2 }
 0x12d   :  { %v2731_v57 = vadd.f32 %v2730_v50, %v2562_v19  ;;  %v2899_v60 = vpop.f32.mrf.mxu3 }
 0x12e   :  { %v2564_v51 = vpop.f32.mrf.mxu1 }
 0x12f   :  { %v2900_v10 = vadd.f32 %v2899_v60, %v2731_v57  ;;  %v2565_v36 = vadd.f32 %v2564_v51, %v6413_v45  ;;  %v4549_v45 = vld [vmem:[%s8547_s0 + $0x2d8] sm:$0xf]  ;;  %v4546_v60 = vor.u32 %v5709_v9, %v4543_v25 }
 0x130   :  { %v3071_v13 = vpop.f32.mrf.mxu0 }
 0x131   :  { %2603 = vmatmul.bf16.gmra.mxu1 %v4510_v17  ;;  %2772 = vmatmul.bf16.gmra.mxu2 %v4514_v11  ;;  %v6743_v30 = vadd.f32 %v3068_v15, %v2900_v10 }
 0x132   :  { %2941 = vmatmul.bf16.gmra.mxu3 %v4518_v12 }
 0x133   :  { %3110 = vmatmul.bf16.gmra.mxu0 %v4522_v29 }
 0x134   :  { %v2733_v0 = vpop.f32.mrf.mxu2 }
 0x135   :  { %v2734_v20 = vadd.f32 %v2733_v0, %v2565_v36  ;;  %v2902_v16 = vpop.f32.mrf.mxu3  ;;  %v5714_v0 = vld [vmem:[%s8547_s0 + $0x2f8] sm:$0xf0]  ;;  %v5967_v36 = vld [vmem:[%s8546_s1 + $0x1e0] sm:$0xff] }
 0x136   :  { %v2566_v19 = vpop.f32.mrf.mxu1  ;;  %v4550_v17 = vor.u32 %v5714_v0, %v4549_v45  ;;  %3567 = vmatpush.bf16.msra.mxu3 %v5967_v36 }
 0x137   :  { %v2903_v50 = vadd.f32 %v2902_v16, %v2734_v20  ;;  %v5710_v16 = vld [vmem:[%s8547_s0 + $0x2dc] sm:$0xf]  ;;  %v2567_v20 = vadd.f32 %v2566_v19, %v6421_v49  ;;  %v4558_v49 = vor.u32 %v5715_v33, %v4557_v47  ;;  %v4585_v33 = vld [vmem:[%s8547_s0 + $0x320] sm:$0xf] }
 0x138   :  { %v3073_v6 = vpop.f32.mrf.mxu0  ;;  %v4554_v51 = vor.u32 %v5710_v16, %v4551_v27  ;;  %v5951_v16 = vld [vmem:[%s8546_s1 + $0x160] sm:$0xff] }
 0x139   :  { %v6752_v15 = vadd.f32 %v3071_v13, %v2903_v50  ;;  %v5959_v13 = vld [vmem:[%s8546_s1 + $0x1a0] sm:$0xff]  ;;  %3229 = vmatpush.bf16.msra.mxu1 %v5951_v16 }
 0x13a   :  { %3398 = vmatpush.bf16.msra.mxu2 %v5959_v13  ;;  %v4579_v27 = vld [vmem:[%s8547_s0 + $0x33c] sm:$0xf0] }
 0x13c   :  { %v2735_v39 = vpop.f32.mrf.mxu2 }
 0x13d   :  { %v2736_v40 = vadd.f32 %v2735_v39, %v2567_v20  ;;  %v2904_v57 = vpop.f32.mrf.mxu3  ;;  %v5975_v20 = vld [vmem:[%s8546_s1 + $0x220] sm:$0xff] }
 0x13e   :  { %v2569_v11 = vpop.f32.mrf.mxu1  ;;  %3736 = vmatpush.bf16.msra.mxu0 %v5975_v20  ;;  %v5723_v39 = vld [vmem:[%s8547_s0 + $0x340] sm:$0xf0] }
 0x13f   :  { %v2905_v12 = vadd.f32 %v2904_v57, %v2736_v40  ;;  %v2570_v19 = vadd.f32 %v2569_v11, %v6453_v1  ;;  %v5718_v1 = vld [vmem:[%s8547_s0 + $0x31c] sm:$0xf]  ;;  %v5719_v40 = vld [vmem:[%s8547_s0 + $0x324] sm:$0xf]  ;;  %v5724_v11 = vld [vmem:[%s8547_s0 + $0x348] sm:$0xf0]  ;;  %v4586_v13 = vor.u32 %v5723_v39, %v4585_v33 }
 0x140   :  { %v3076_v29 = vpop.f32.mrf.mxu0  ;;  %v4615_v33 = vld [vmem:[%s8547_s0 + $0x384] sm:$0xf0]  ;;  %v5732_v39 = vld [vmem:[%s8547_s0 + $0x388] sm:$0xf0] }
 0x141   :  { %2608 = vmatmul.bf16.gmra.mxu1 %v4546_v60  ;;  %2777 = vmatmul.bf16.gmra.mxu2 %v4550_v17  ;;  %v6773_v10 = vadd.f32 %v3073_v6, %v2905_v12  ;;  %v4587_v60 = vld [vmem:[%s8547_s0 + $0x344] sm:$0xf0] }
 0x142   :  { %2946 = vmatmul.bf16.gmra.mxu3 %v4554_v51  ;;  %v4593_v17 = vld [vmem:[%s8547_s0 + $0x328] sm:$0xf] }
 0x143   :  { %3115 = vmatmul.bf16.gmra.mxu0 %v4558_v49 }
 0x144   :  { %v2738_v50 = vpop.f32.mrf.mxu2 }
 0x145   :  { %v2739_v9 = vadd.f32 %v2738_v50, %v2570_v19  ;;  %v2907_v25 = vpop.f32.mrf.mxu3  ;;  %v4590_v19 = vor.u32 %v5719_v40, %v4587_v60  ;;  %v5728_v40 = vld [vmem:[%s8547_s0 + $0x36c] sm:$0xf] }
 0x146   :  { %v2571_v45 = vpop.f32.mrf.mxu1 }
 0x147   :  { %v2908_v6 = vadd.f32 %v2907_v25, %v2739_v9  ;;  %v2572_v57 = vadd.f32 %v2571_v45, %v6470_v8  ;;  %v4594_v8 = vor.u32 %v5724_v11, %v4593_v17  ;;  %v4623_v17 = vld [vmem:[%s8547_s0 + $0x38c] sm:$0xf0] }
 0x148   :  { %v3078_v0 = vpop.f32.mrf.mxu0  ;;  %v4629_v11 = vld [vmem:[%s8547_s0 + $0x370] sm:$0xf] }
 0x149   :  { %v6794_v47 = vadd.f32 %v3076_v29, %v2908_v6  ;;  %v4582_v29 = vor.u32 %v5718_v1, %v4579_v27  ;;  %v5727_v27 = vld [vmem:[%s8547_s0 + $0x364] sm:$0xf] }
 0x14c   :  { %v2740_v51 = vpop.f32.mrf.mxu2 }
 0x14d   :  { %v2741_v49 = vadd.f32 %v2740_v51, %v2572_v57  ;;  %v2909_v12 = vpop.f32.mrf.mxu3 }
 0x14e   :  { %v2574_v36 = vpop.f32.mrf.mxu1 }
 0x14f   :  { %v2910_v50 = vadd.f32 %v2909_v12, %v2741_v49  ;;  %v2575_v45 = vadd.f32 %v2574_v36, %v6505_v31  ;;  %v4621_v31 = vld [vmem:[%s8547_s0 + $0x368] sm:$0xf]  ;;  %v5733_v49 = vld [vmem:[%s8547_s0 + $0x390] sm:$0xf0]  ;;  %v4618_v36 = vor.u32 %v5727_v27, %v4615_v33  ;;  %v5736_v33 = vld [vmem:[%s8547_s0 + $0x3ac] sm:$0xf] }
 0x150   :  { %v3081_v9 = vpop.f32.mrf.mxu0 }
 0x151   :  { %2613 = vmatmul.bf16.gmra.mxu1 %v4582_v29  ;;  %2782 = vmatmul.bf16.gmra.mxu2 %v4586_v13  ;;  %v6815_v25 = vadd.f32 %v3078_v0, %v2910_v50  ;;  %v4626_v50 = vor.u32 %v5728_v40, %v4623_v17  ;;  %v5737_v40 = vld [vmem:[%s8547_s0 + $0x3b4] sm:$0xf] }
 0x152   :  { %2951 = vmatmul.bf16.gmra.mxu3 %v4590_v19  ;;  %v4622_v19 = vor.u32 %v5732_v39, %v4621_v31  ;;  %v4651_v31 = vld [vmem:[%s8547_s0 + $0x3cc] sm:$0xf0]  ;;  %v5741_v39 = vld [vmem:[%s8547_s0 + $0x3d0] sm:$0xf0] }
 0x153   :  { %3120 = vmatmul.bf16.gmra.mxu0 %v4594_v8 }
 0x154   :  { %v2743_v6 = vpop.f32.mrf.mxu2 }
 0x155   :  { %v2744_v16 = vadd.f32 %v2743_v6, %v2575_v45  ;;  %v2912_v20 = vpop.f32.mrf.mxu3 }
 0x156   :  { %v2576_v57 = vpop.f32.mrf.mxu1 }
 0x157   :  { %v2913_v51 = vadd.f32 %v2912_v20, %v2744_v16  ;;  %v2577_v60 = vadd.f32 %v2576_v57, %v6513_v35  ;;  %v4630_v35 = vor.u32 %v5733_v49, %v4629_v11  ;;  %v4659_v11 = vld [vmem:[%s8547_s0 + $0x3d4] sm:$0xf0] }
 0x158   :  { %v3083_v1 = vpop.f32.mrf.mxu0  ;;  %v4665_v49 = vld [vmem:[%s8547_s0 + $0x3b8] sm:$0xf] }
 0x159   :  { %v6824_v0 = vadd.f32 %v3081_v9, %v2913_v51 }
 0x15c   :  { %v2745_v12 = vpop.f32.mrf.mxu2 }
 0x15d   :  { %v2746_v29 = vadd.f32 %v2745_v12, %v2577_v60  ;;  %v2914_v13 = vpop.f32.mrf.mxu3 }
 0x15e   :  { %v2579_v8 = vpop.f32.mrf.mxu1 }
 0x15f   :  { %v2915_v9 = vadd.f32 %v2914_v13, %v2746_v29  ;;  %v2580_v16 = vadd.f32 %v2579_v8, %v6545_v61  ;;  %v4657_v61 = vld [vmem:[%s8547_s0 + $0x3b0] sm:$0xf]  ;;  %v5742_v29 = vld [vmem:[%s8547_s0 + $0x3d8] sm:$0xf0]  ;;  %v4654_v8 = vor.u32 %v5736_v33, %v4651_v31  ;;  %v5745_v31 = vld [vmem:[%s8547_s0 + $0x3f4] sm:$0xf] }
 0x160   :  { %v3086_v45 = vpop.f32.mrf.mxu0 }
 0x161   :  { %2618 = vmatmul.bf16.gmra.mxu1 %v4618_v36  ;;  %2787 = vmatmul.bf16.gmra.mxu2 %v4622_v19  ;;  %v6845_v6 = vadd.f32 %v3083_v1, %v2915_v9  ;;  %v4662_v9 = vor.u32 %v5737_v40, %v4659_v11  ;;  %v5746_v40 = vld [vmem:[%s8547_s0 + $0x3fc] sm:$0xf] }
 0x162   :  { %2956 = vmatmul.bf16.gmra.mxu3 %v4626_v50  ;;  %v4658_v50 = vor.u32 %v5741_v39, %v4657_v61  ;;  %v4687_v61 = vld [vmem:[%s8547_s0 + $0x414] sm:$0xf0]  ;;  %v5750_v39 = vld [vmem:[%s8547_s0 + $0x418] sm:$0xf0] }
 0x163   :  { %3125 = vmatmul.bf16.gmra.mxu0 %v4630_v35 }
 0x164   :  { %v2748_v20 = vpop.f32.mrf.mxu2 }
 0x165   :  { %v2749_v57 = vadd.f32 %v2748_v20, %v2580_v16  ;;  %v2917_v51 = vpop.f32.mrf.mxu3 }
 0x166   :  { %v2581_v60 = vpop.f32.mrf.mxu1 }
 0x167   :  { %v2918_v12 = vadd.f32 %v2917_v51, %v2749_v57  ;;  %v2582_v17 = vadd.f32 %v2581_v60, %v6553_v3  ;;  %v4666_v3 = vor.u32 %v5742_v29, %v4665_v49  ;;  %v4695_v49 = vld [vmem:[%s8547_s0 + $0x41c] sm:$0xf0] }
 0x168   :  { %v3088_v27 = vpop.f32.mrf.mxu0  ;;  %v4701_v29 = vld [vmem:[%s8547_s0 + $0x400] sm:$0xf] }
 0x169   :  { %v6854_v1 = vadd.f32 %v3086_v45, %v2918_v12 }
 0x16c   :  { %v2750_v13 = vpop.f32.mrf.mxu2 }
 0x16d   :  { %v2751_v36 = vadd.f32 %v2750_v13, %v2582_v17  ;;  %v2919_v19 = vpop.f32.mrf.mxu3 }
 0x16e   :  { %v2584_v35 = vpop.f32.mrf.mxu1 }
 0x16f   :  { %v2920_v45 = vadd.f32 %v2919_v19, %v2751_v36  ;;  %v2585_v57 = vadd.f32 %v2584_v35, %v6585_v37  ;;  %v4693_v37 = vld [vmem:[%s8547_s0 + $0x3f8] sm:$0xf]  ;;  %v5751_v36 = vld [vmem:[%s8547_s0 + $0x420] sm:$0xf0]  ;;  %v4690_v35 = vor.u32 %v5745_v31, %v4687_v61 }
 0x170   :  { %v3091_v16 = vpop.f32.mrf.mxu0 }
 0x171   :  { %2623 = vmatmul.bf16.gmra.mxu1 %v4654_v8  ;;  %2792 = vmatmul.bf16.gmra.mxu2 %v4658_v50  ;;  %v6875_v20 = vadd.f32 %v3088_v27, %v2920_v45  ;;  %v4698_v45 = vor.u32 %v5746_v40, %v4695_v49  ;;  %v5950_v40 = vld [vmem:[%s8546_s1 + $0x158] sm:$0xff]  ;;  %v4723_v49 = vld [vmem:[%s8547_s0 + $0x45c] sm:$0xf0] }
 0x172   :  { %2961 = vmatmul.bf16.gmra.mxu3 %v4662_v9  ;;  %v4694_v9 = vor.u32 %v5750_v39, %v4693_v37  ;;  %3230 = vmatpush.bf16.msra.mxu1 %v5950_v40 }
 0x173   :  { %3130 = vmatmul.bf16.gmra.mxu0 %v4666_v3 }
 0x174   :  { %v2753_v51 = vpop.f32.mrf.mxu2 }
 0x175   :  { %v2754_v60 = vadd.f32 %v2753_v51, %v2585_v57  ;;  %v2922_v12 = vpop.f32.mrf.mxu3 }
 0x176   :  { %v2586_v17 = vpop.f32.mrf.mxu1 }
 0x177   :  { %v2923_v13 = vadd.f32 %v2922_v12, %v2754_v60  ;;  %v2587_v11 = vadd.f32 %v2586_v17, %v6593_v44  ;;  %v4702_v44 = vor.u32 %v5751_v36, %v4701_v29  ;;  %v5958_v60 = vld [vmem:[%s8546_s1 + $0x198] sm:$0xff]  ;;  %v4729_v36 = vld [vmem:[%s8547_s0 + $0x440] sm:$0xf] }
 0x178   :  { %v3093_v33 = vpop.f32.mrf.mxu0  ;;  %v5966_v12 = vld [vmem:[%s8546_s1 + $0x1d8] sm:$0xff]  ;;  %3399 = vmatpush.bf16.msra.mxu2 %v5958_v60 }
 0x179   :  { %v6884_v27 = vadd.f32 %v3091_v16, %v2923_v13  ;;  %3568 = vmatpush.bf16.msra.mxu3 %v5966_v12 }
 0x17c   :  { %v2755_v19 = vpop.f32.mrf.mxu2 }
 0x17d   :  { %v2756_v8 = vadd.f32 %v2755_v19, %v2587_v11  ;;  %v2924_v50 = vpop.f32.mrf.mxu3  ;;  %v5974_v11 = vld [vmem:[%s8546_s1 + $0x218] sm:$0xff]  ;;  %v5759_v19 = vld [vmem:[%s8547_s0 + $0x460] sm:$0xf0] }
 0x17e   :  { %v2589_v3 = vpop.f32.mrf.mxu1  ;;  %3737 = vmatpush.bf16.msra.mxu0 %v5974_v11  ;;  %v4730_v60 = vor.u32 %v5759_v19, %v4729_v36  ;;  %v4759_v36 = vld [vmem:[%s8547_s0 + $0x4a4] sm:$0xf0]  ;;  %v5768_v19 = vld [vmem:[%s8547_s0 + $0x4a8] sm:$0xf0] }
 0x17f   :  { %v2925_v16 = vadd.f32 %v2924_v50, %v2756_v8  ;;  %v2590_v17 = vadd.f32 %v2589_v3, %v6625_v21  ;;  %v5754_v21 = vld [vmem:[%s8547_s0 + $0x43c] sm:$0xf]  ;;  %v5755_v8 = vld [vmem:[%s8547_s0 + $0x444] sm:$0xf]  ;;  %v5760_v3 = vld [vmem:[%s8547_s0 + $0x468] sm:$0xf0] }
 0x180   :  { %v3096_v57 = vpop.f32.mrf.mxu0 }
 0x181   :  { %2628 = vmatmul.bf16.gmra.mxu1 %v4690_v35  ;;  %2797 = vmatmul.bf16.gmra.mxu2 %v4694_v9  ;;  %v6905_v51 = vadd.f32 %v3093_v33, %v2925_v16  ;;  %v4731_v35 = vld [vmem:[%s8547_s0 + $0x464] sm:$0xf0] }
 0x182   :  { %2966 = vmatmul.bf16.gmra.mxu3 %v4698_v45  ;;  %v4737_v9 = vld [vmem:[%s8547_s0 + $0x448] sm:$0xf] }
 0x183   :  { %3135 = vmatmul.bf16.gmra.mxu0 %v4702_v44 }
 0x184   :  { %v2758_v13 = vpop.f32.mrf.mxu2 }
 0x185   :  { %v2759_v31 = vadd.f32 %v2758_v13, %v2590_v17  ;;  %v2927_v61 = vpop.f32.mrf.mxu3  ;;  %v4734_v17 = vor.u32 %v5755_v8, %v4731_v35  ;;  %v5764_v8 = vld [vmem:[%s8547_s0 + $0x48c] sm:$0xf] }
 0x186   :  { %v2591_v37 = vpop.f32.mrf.mxu1 }
 0x187   :  { %v2928_v33 = vadd.f32 %v2927_v61, %v2759_v31  ;;  %v2592_v50 = vadd.f32 %v2591_v37, %v6639_v55  ;;  %v4738_v55 = vor.u32 %v5760_v3, %v4737_v9  ;;  %v4767_v9 = vld [vmem:[%s8547_s0 + $0x4ac] sm:$0xf0] }
 0x188   :  { %v3098_v39 = vpop.f32.mrf.mxu0  ;;  %v4773_v3 = vld [vmem:[%s8547_s0 + $0x490] sm:$0xf] }
 0x189   :  { %v6926_v29 = vadd.f32 %v3096_v57, %v2928_v33  ;;  %v4726_v57 = vor.u32 %v5754_v21, %v4723_v49  ;;  %v5763_v49 = vld [vmem:[%s8547_s0 + $0x484] sm:$0xf] }
 0x18c   :  { %v2760_v45 = vpop.f32.mrf.mxu2 }
 0x18d   :  { %v2761_v44 = vadd.f32 %v2760_v45, %v2592_v50  ;;  %v2929_v16 = vpop.f32.mrf.mxu3 }
 0x18e   :  { %v2594_v12 = vpop.f32.mrf.mxu1 }
 0x18f   :  { %v2930_v13 = vadd.f32 %v2929_v16, %v2761_v44  ;;  %v2595_v37 = vadd.f32 %v2594_v12, %v6677_v53  ;;  %v4765_v53 = vld [vmem:[%s8547_s0 + $0x488] sm:$0xf]  ;;  %v5769_v44 = vld [vmem:[%s8547_s0 + $0x4b0] sm:$0xf0]  ;;  %v4762_v12 = vor.u32 %v5763_v49, %v4759_v36  ;;  %v5772_v36 = vld [vmem:[%s8547_s0 + $0x4cc] sm:$0xf] }
 0x190   :  { %v3101_v31 = vpop.f32.mrf.mxu0 }
 0x191   :  { %2633 = vmatmul.bf16.gmra.mxu1 %v4726_v57  ;;  %2802 = vmatmul.bf16.gmra.mxu2 %v4730_v60  ;;  %v6947_v61 = vadd.f32 %v3098_v39, %v2930_v13  ;;  %v4770_v13 = vor.u32 %v5764_v8, %v4767_v9  ;;  %v5773_v8 = vld [vmem:[%s8547_s0 + $0x4d4] sm:$0xf] }
 0x192   :  { %2971 = vmatmul.bf16.gmra.mxu3 %v4734_v17  ;;  %v4766_v17 = vor.u32 %v5768_v19, %v4765_v53  ;;  %v4795_v53 = vld [vmem:[%s8547_s0 + $0x4ec] sm:$0xf0]  ;;  %v5777_v19 = vld [vmem:[%s8547_s0 + $0x4f0] sm:$0xf0] }
 0x193   :  { %3140 = vmatmul.bf16.gmra.mxu0 %v4738_v55 }
 0x194   :  { %v2763_v33 = vpop.f32.mrf.mxu2 }
 0x195   :  { %v2764_v40 = vadd.f32 %v2763_v33, %v2595_v37  ;;  %v2932_v11 = vpop.f32.mrf.mxu3 }
 0x196   :  { %v2596_v50 = vpop.f32.mrf.mxu1 }
 0x197   :  { %v2933_v45 = vadd.f32 %v2932_v11, %v2764_v40  ;;  %v2597_v35 = vadd.f32 %v2596_v50, %v6685_v59  ;;  %v4774_v59 = vor.u32 %v5769_v44, %v4773_v3  ;;  %v4803_v3 = vld [vmem:[%s8547_s0 + $0x4f4] sm:$0xf0] }
 0x198   :  { %v3103_v21 = vpop.f32.mrf.mxu0  ;;  %v4809_v44 = vld [vmem:[%s8547_s0 + $0x4d8] sm:$0xf] }
 0x199   :  { %v6956_v39 = vadd.f32 %v3101_v31, %v2933_v45 }
 0x19c   :  { %v2765_v16 = vpop.f32.mrf.mxu2 }
 0x19d   :  { %v2766_v57 = vadd.f32 %v2765_v16, %v2597_v35  ;;  %v2934_v60 = vpop.f32.mrf.mxu3 }
 0x19e   :  { %v2599_v55 = vpop.f32.mrf.mxu1 }
 0x19f   :  { %v2935_v31 = vadd.f32 %v2934_v60, %v2766_v57  ;;  %v2600_v40 = vadd.f32 %v2599_v55, %v6371_v22  ;;  %v4801_v22 = vld [vmem:[%s8547_s0 + $0x4d0] sm:$0xf]  ;;  %v5778_v57 = vld [vmem:[%s8547_s0 + $0x4f8] sm:$0xf0]  ;;  %v4798_v55 = vor.u32 %v5772_v36, %v4795_v53  ;;  %v5781_v53 = vld [vmem:[%s8547_s0 + $0x514] sm:$0xf] }
 0x1a0   :  { %v3106_v37 = vpop.f32.mrf.mxu0 }
 0x1a1   :  { %2638 = vmatmul.bf16.gmra.mxu1 %v4762_v12  ;;  %2807 = vmatmul.bf16.gmra.mxu2 %v4766_v17  ;;  %v6977_v33 = vadd.f32 %v3103_v21, %v2935_v31  ;;  %v4806_v31 = vor.u32 %v5773_v8, %v4803_v3  ;;  %v5782_v8 = vld [vmem:[%s8547_s0 + $0x51c] sm:$0xf] }
 0x1a2   :  { %2976 = vmatmul.bf16.gmra.mxu3 %v4770_v13  ;;  %v4802_v13 = vor.u32 %v5777_v19, %v4801_v22  ;;  %v4831_v22 = vld [vmem:[%s8547_s0 + $0x534] sm:$0xf0]  ;;  %v5786_v19 = vld [vmem:[%s8547_s0 + $0x538] sm:$0xf0] }
 0x1a3   :  { %3145 = vmatmul.bf16.gmra.mxu0 %v4774_v59 }
 0x1a4   :  { %v2768_v11 = vpop.f32.mrf.mxu2 }
 0x1a5   :  { %v2769_v50 = vadd.f32 %v2768_v11, %v2600_v40  ;;  %v2937_v45 = vpop.f32.mrf.mxu3 }
 0x1a6   :  { %v2601_v35 = vpop.f32.mrf.mxu1 }
 0x1a7   :  { %v2938_v16 = vadd.f32 %v2937_v45, %v2769_v50  ;;  %v2602_v9 = vadd.f32 %v2601_v35, %v6379_v28  ;;  %v4810_v28 = vor.u32 %v5778_v57, %v4809_v44  ;;  %v4839_v44 = vld [vmem:[%s8547_s0 + $0x53c] sm:$0xf0] }
 0x1a8   :  { %v3108_v49 = vpop.f32.mrf.mxu0  ;;  %v4845_v57 = vld [vmem:[%s8547_s0 + $0x520] sm:$0xf] }
 0x1a9   :  { %v6986_v21 = vadd.f32 %v3106_v37, %v2938_v16 }
 0x1ac   :  { %v2770_v60 = vpop.f32.mrf.mxu2 }
 0x1ad   :  { %v2771_v12 = vadd.f32 %v2770_v60, %v2602_v9  ;;  %v2939_v17 = vpop.f32.mrf.mxu3 }
 0x1ae   :  { %v2604_v59 = vpop.f32.mrf.mxu1 }
 0x1af   :  { %v2940_v37 = vadd.f32 %v2939_v17, %v2771_v12  ;;  %v2605_v50 = vadd.f32 %v2604_v59, %v6411_v42  ;;  %v4837_v42 = vld [vmem:[%s8547_s0 + $0x518] sm:$0xf]  ;;  %v5787_v12 = vld [vmem:[%s8547_s0 + $0x540] sm:$0xf0]  ;;  %v4834_v59 = vor.u32 %v5781_v53, %v4831_v22 }
 0x1b0   :  { %v3111_v40 = vpop.f32.mrf.mxu0 }
 0x1b1   :  { %2643 = vmatmul.bf16.gmra.mxu1 %v4798_v55  ;;  %2812 = vmatmul.bf16.gmra.mxu2 %v4802_v13  ;;  %v7007_v11 = vadd.f32 %v3108_v49, %v2940_v37  ;;  %v4842_v37 = vor.u32 %v5782_v8, %v4839_v44  ;;  %v5949_v8 = vld [vmem:[%s8546_s1 + $0x150] sm:$0xff]  ;;  %v4867_v44 = vld [vmem:[%s8547_s0 + $0x57c] sm:$0xf0] }
 0x1b2   :  { %2981 = vmatmul.bf16.gmra.mxu3 %v4806_v31  ;;  %v4838_v31 = vor.u32 %v5786_v19, %v4837_v42  ;;  %3231 = vmatpush.bf16.msra.mxu1 %v5949_v8 }
 0x1b3   :  { %3150 = vmatmul.bf16.gmra.mxu0 %v4810_v28 }
 0x1b4   :  { %v2773_v45 = vpop.f32.mrf.mxu2 }
 0x1b5   :  { %v2774_v35 = vadd.f32 %v2773_v45, %v2605_v50  ;;  %v2942_v16 = vpop.f32.mrf.mxu3 }
 0x1b6   :  { %v2606_v9 = vpop.f32.mrf.mxu1 }
 0x1b7   :  { %v2943_v60 = vadd.f32 %v2942_v16, %v2774_v35  ;;  %v2607_v3 = vadd.f32 %v2606_v9, %v6419_v48  ;;  %v4846_v48 = vor.u32 %v5787_v12, %v4845_v57  ;;  %v5957_v35 = vld [vmem:[%s8546_s1 + $0x190] sm:$0xff]  ;;  %v4873_v12 = vld [vmem:[%s8547_s0 + $0x560] sm:$0xf] }
 0x1b8   :  { %v3113_v36 = vpop.f32.mrf.mxu0  ;;  %v5965_v16 = vld [vmem:[%s8546_s1 + $0x1d0] sm:$0xff]  ;;  %3400 = vmatpush.bf16.msra.mxu2 %v5957_v35 }
 0x1b9   :  { %v7016_v49 = vadd.f32 %v3111_v40, %v2943_v60  ;;  %3569 = vmatpush.bf16.msra.mxu3 %v5965_v16 }
 0x1bc   :  { %v2775_v17 = vpop.f32.mrf.mxu2 }
 0x1bd   :  { %v2776_v55 = vadd.f32 %v2775_v17, %v2607_v3  ;;  %v2944_v13 = vpop.f32.mrf.mxu3  ;;  %v5973_v3 = vld [vmem:[%s8546_s1 + $0x210] sm:$0xff]  ;;  %v5795_v17 = vld [vmem:[%s8547_s0 + $0x580] sm:$0xf0] }
 0x1be   :  { %v2609_v28 = vpop.f32.mrf.mxu1  ;;  %3738 = vmatpush.bf16.msra.mxu0 %v5973_v3  ;;  %v4874_v35 = vor.u32 %v5795_v17, %v4873_v12  ;;  %v4903_v12 = vld [vmem:[%s8547_s0 + $0x5c4] sm:$0xf0]  ;;  %v5804_v17 = vld [vmem:[%s8547_s0 + $0x5c8] sm:$0xf0] }
 0x1bf   :  { %v2945_v40 = vadd.f32 %v2944_v13, %v2776_v55  ;;  %v2610_v9 = vadd.f32 %v2609_v28, %v6451_v62  ;;  %v5790_v62 = vld [vmem:[%s8547_s0 + $0x55c] sm:$0xf]  ;;  %v5791_v55 = vld [vmem:[%s8547_s0 + $0x564] sm:$0xf]  ;;  %v5796_v28 = vld [vmem:[%s8547_s0 + $0x588] sm:$0xf0] }
 0x1c0   :  { %v3116_v50 = vpop.f32.mrf.mxu0 }
 0x1c1   :  { %2648 = vmatmul.bf16.gmra.mxu1 %v4834_v59  ;;  %2817 = vmatmul.bf16.gmra.mxu2 %v4838_v31  ;;  %v7037_v45 = vadd.f32 %v3113_v36, %v2945_v40  ;;  %v4875_v59 = vld [vmem:[%s8547_s0 + $0x584] sm:$0xf0] }
 0x1c2   :  { %2986 = vmatmul.bf16.gmra.mxu3 %v4842_v37  ;;  %v4881_v31 = vld [vmem:[%s8547_s0 + $0x568] sm:$0xf] }
 0x1c3   :  { %3155 = vmatmul.bf16.gmra.mxu0 %v4846_v48 }
 0x1c4   :  { %v2778_v60 = vpop.f32.mrf.mxu2 }
 0x1c5   :  { %v2779_v53 = vadd.f32 %v2778_v60, %v2610_v9  ;;  %v2947_v22 = vpop.f32.mrf.mxu3  ;;  %v4878_v9 = vor.u32 %v5791_v55, %v4875_v59  ;;  %v5800_v55 = vld [vmem:[%s8547_s0 + $0x5ac] sm:$0xf] }
 0x1c6   :  { %v2611_v42 = vpop.f32.mrf.mxu1 }
 0x1c7   :  { %v2948_v36 = vadd.f32 %v2947_v22, %v2779_v53  ;;  %v2612_v13 = vadd.f32 %v2611_v42, %v6468_v7  ;;  %v4882_v7 = vor.u32 %v5796_v28, %v4881_v31  ;;  %v4911_v31 = vld [vmem:[%s8547_s0 + $0x5cc] sm:$0xf0] }
 0x1c8   :  { %v3118_v19 = vpop.f32.mrf.mxu0  ;;  %v4917_v28 = vld [vmem:[%s8547_s0 + $0x5b0] sm:$0xf] }
 0x1c9   :  { %v7058_v57 = vadd.f32 %v3116_v50, %v2948_v36  ;;  %v4870_v50 = vor.u32 %v5790_v62, %v4867_v44  ;;  %v5799_v44 = vld [vmem:[%s8547_s0 + $0x5a4] sm:$0xf] }
 0x1cc   :  { %v2780_v37 = vpop.f32.mrf.mxu2 }
 0x1cd   :  { %v2781_v48 = vadd.f32 %v2780_v37, %v2612_v13  ;;  %v2949_v40 = vpop.f32.mrf.mxu3 }
 0x1ce   :  { %v2614_v16 = vpop.f32.mrf.mxu1 }
 0x1cf   :  { %v2950_v60 = vadd.f32 %v2949_v40, %v2781_v48  ;;  %v2615_v42 = vadd.f32 %v2614_v16, %v6503_v23  ;;  %v4909_v23 = vld [vmem:[%s8547_s0 + $0x5a8] sm:$0xf]  ;;  %v5805_v48 = vld [vmem:[%s8547_s0 + $0x5d0] sm:$0xf0]  ;;  %v4906_v16 = vor.u32 %v5799_v44, %v4903_v12  ;;  %v5808_v12 = vld [vmem:[%s8547_s0 + $0x5ec] sm:$0xf] }
 0x1d0   :  { %v3121_v53 = vpop.f32.mrf.mxu0 }
 0x1d1   :  { %2653 = vmatmul.bf16.gmra.mxu1 %v4870_v50  ;;  %2822 = vmatmul.bf16.gmra.mxu2 %v4874_v35  ;;  %v7079_v22 = vadd.f32 %v3118_v19, %v2950_v60  ;;  %v4914_v60 = vor.u32 %v5800_v55, %v4911_v31  ;;  %v5809_v55 = vld [vmem:[%s8547_s0 + $0x5f4] sm:$0xf] }
 0x1d2   :  { %2991 = vmatmul.bf16.gmra.mxu3 %v4878_v9  ;;  %v4910_v9 = vor.u32 %v5804_v17, %v4909_v23  ;;  %v4939_v23 = vld [vmem:[%s8547_s0 + $0x60c] sm:$0xf0]  ;;  %v5813_v17 = vld [vmem:[%s8547_s0 + $0x610] sm:$0xf0] }
 0x1d3   :  { %3160 = vmatmul.bf16.gmra.mxu0 %v4882_v7 }
 0x1d4   :  { %v2783_v36 = vpop.f32.mrf.mxu2 }
 0x1d5   :  { %v2784_v8 = vadd.f32 %v2783_v36, %v2615_v42  ;;  %v2952_v3 = vpop.f32.mrf.mxu3 }
 0x1d6   :  { %v2616_v13 = vpop.f32.mrf.mxu1 }
 0x1d7   :  { %v2953_v37 = vadd.f32 %v2952_v3, %v2784_v8  ;;  %v2617_v59 = vadd.f32 %v2616_v13, %v6511_v34  ;;  %v4918_v34 = vor.u32 %v5805_v48, %v4917_v28  ;;  %v4947_v28 = vld [vmem:[%s8547_s0 + $0x614] sm:$0xf0] }
 0x1d8   :  { %v3123_v62 = vpop.f32.mrf.mxu0  ;;  %v4953_v48 = vld [vmem:[%s8547_s0 + $0x5f8] sm:$0xf] }
 0x1d9   :  { %v7088_v19 = vadd.f32 %v3121_v53, %v2953_v37 }
 0x1dc   :  { %v2785_v40 = vpop.f32.mrf.mxu2 }
 0x1dd   :  { %v2786_v50 = vadd.f32 %v2785_v40, %v2617_v59  ;;  %v2954_v35 = vpop.f32.mrf.mxu3 }
 0x1de   :  { %v2619_v7 = vpop.f32.mrf.mxu1 }
 0x1df   :  { %v2955_v53 = vadd.f32 %v2954_v35, %v2786_v50  ;;  %v2620_v8 = vadd.f32 %v2619_v7, %v6543_v56  ;;  %v4945_v56 = vld [vmem:[%s8547_s0 + $0x5f0] sm:$0xf]  ;;  %v5814_v50 = vld [vmem:[%s8547_s0 + $0x618] sm:$0xf0]  ;;  %v4942_v7 = vor.u32 %v5808_v12, %v4939_v23  ;;  %v5817_v23 = vld [vmem:[%s8547_s0 + $0x634] sm:$0xf] }
 0x1e0   :  { %v3126_v42 = vpop.f32.mrf.mxu0 }
 0x1e1   :  { %2658 = vmatmul.bf16.gmra.mxu1 %v4906_v16  ;;  %2827 = vmatmul.bf16.gmra.mxu2 %v4910_v9  ;;  %v7109_v36 = vadd.f32 %v3123_v62, %v2955_v53  ;;  %v4950_v53 = vor.u32 %v5809_v55, %v4947_v28  ;;  %v5818_v55 = vld [vmem:[%s8547_s0 + $0x63c] sm:$0xf] }
 0x1e2   :  { %2996 = vmatmul.bf16.gmra.mxu3 %v4914_v60  ;;  %v4946_v60 = vor.u32 %v5813_v17, %v4945_v56  ;;  %v4975_v56 = vld [vmem:[%s8547_s0 + $0x654] sm:$0xf0]  ;;  %v5822_v17 = vld [vmem:[%s8547_s0 + $0x658] sm:$0xf0] }
 0x1e3   :  { %3165 = vmatmul.bf16.gmra.mxu0 %v4918_v34 }
 0x1e4   :  { %v2788_v3 = vpop.f32.mrf.mxu2 }
 0x1e5   :  { %v2789_v13 = vadd.f32 %v2788_v3, %v2620_v8  ;;  %v2957_v37 = vpop.f32.mrf.mxu3 }
 0x1e6   :  { %v2621_v59 = vpop.f32.mrf.mxu1 }
 0x1e7   :  { %v2958_v40 = vadd.f32 %v2957_v37, %v2789_v13  ;;  %v2622_v31 = vadd.f32 %v2621_v59, %v6551_v2  ;;  %v4954_v2 = vor.u32 %v5814_v50, %v4953_v48  ;;  %v4983_v48 = vld [vmem:[%s8547_s0 + $0x65c] sm:$0xf0] }
 0x1e8   :  { %v3128_v44 = vpop.f32.mrf.mxu0  ;;  %v4989_v50 = vld [vmem:[%s8547_s0 + $0x640] sm:$0xf] }
 0x1e9   :  { %v7118_v62 = vadd.f32 %v3126_v42, %v2958_v40 }
 0x1ec   :  { %v2790_v35 = vpop.f32.mrf.mxu2 }
 0x1ed   :  { %v2791_v16 = vadd.f32 %v2790_v35, %v2622_v31  ;;  %v2959_v9 = vpop.f32.mrf.mxu3 }
 0x1ee   :  { %v2624_v34 = vpop.f32.mrf.mxu1 }
 0x1ef   :  { %v2960_v42 = vadd.f32 %v2959_v9, %v2791_v16  ;;  %v2625_v13 = vadd.f32 %v2624_v34, %v6583_v24  ;;  %v4981_v24 = vld [vmem:[%s8547_s0 + $0x638] sm:$0xf]  ;;  %v5823_v16 = vld [vmem:[%s8547_s0 + $0x660] sm:$0xf0]  ;;  %v4978_v34 = vor.u32 %v5817_v23, %v4975_v56 }
 0x1f0   :  { %v3131_v8 = vpop.f32.mrf.mxu0 }
 0x1f1   :  { %2663 = vmatmul.bf16.gmra.mxu1 %v4942_v7  ;;  %2832 = vmatmul.bf16.gmra.mxu2 %v4946_v60  ;;  %v7139_v3 = vadd.f32 %v3128_v44, %v2960_v42  ;;  %v4986_v42 = vor.u32 %v5818_v55, %v4983_v48  ;;  %v5948_v55 = vld [vmem:[%s8546_s1 + $0x148] sm:$0xff]  ;;  %v5011_v48 = vld [vmem:[%s8547_s0 + $0x69c] sm:$0xf0] }
 0x1f2   :  { %3001 = vmatmul.bf16.gmra.mxu3 %v4950_v53  ;;  %v4982_v53 = vor.u32 %v5822_v17, %v4981_v24  ;;  %3232 = vmatpush.bf16.msra.mxu1 %v5948_v55 }
 0x1f3   :  { %3170 = vmatmul.bf16.gmra.mxu0 %v4954_v2 }
 0x1f4   :  { %v2793_v37 = vpop.f32.mrf.mxu2 }
 0x1f5   :  { %v2794_v59 = vadd.f32 %v2793_v37, %v2625_v13  ;;  %v2962_v40 = vpop.f32.mrf.mxu3 }
 0x1f6   :  { %v2626_v31 = vpop.f32.mrf.mxu1 }
 0x1f7   :  { %v2963_v35 = vadd.f32 %v2962_v40, %v2794_v59  ;;  %v2627_v28 = vadd.f32 %v2626_v31, %v6591_v43  ;;  %v4990_v43 = vor.u32 %v5823_v16, %v4989_v50  ;;  %v5956_v59 = vld [vmem:[%s8546_s1 + $0x188] sm:$0xff]  ;;  %v5017_v16 = vld [vmem:[%s8547_s0 + $0x680] sm:$0xf] }
 0x1f8   :  { %v3133_v12 = vpop.f32.mrf.mxu0  ;;  %v5964_v40 = vld [vmem:[%s8546_s1 + $0x1c8] sm:$0xff]  ;;  %3401 = vmatpush.bf16.msra.mxu2 %v5956_v59 }
 0x1f9   :  { %v7148_v44 = vadd.f32 %v3131_v8, %v2963_v35  ;;  %3570 = vmatpush.bf16.msra.mxu3 %v5964_v40 }
 0x1fc   :  { %v2795_v9 = vpop.f32.mrf.mxu2 }
 0x1fd   :  { %v2796_v7 = vadd.f32 %v2795_v9, %v2627_v28  ;;  %v2964_v60 = vpop.f32.mrf.mxu3  ;;  %v5972_v28 = vld [vmem:[%s8546_s1 + $0x208] sm:$0xff]  ;;  %v5831_v9 = vld [vmem:[%s8547_s0 + $0x6a0] sm:$0xf0] }
 0x1fe   :  { %v2629_v2 = vpop.f32.mrf.mxu1  ;;  %3739 = vmatpush.bf16.msra.mxu0 %v5972_v28  ;;  %v5018_v59 = vor.u32 %v5831_v9, %v5017_v16  ;;  %v5047_v16 = vld [vmem:[%s8547_s0 + $0x6e4] sm:$0xf0]  ;;  %v5840_v9 = vld [vmem:[%s8547_s0 + $0x6e8] sm:$0xf0] }
 0x1ff   :  { %v2965_v8 = vadd.f32 %v2964_v60, %v2796_v7  ;;  %v2630_v31 = vadd.f32 %v2629_v2, %v6623_v14  ;;  %v5826_v14 = vld [vmem:[%s8547_s0 + $0x67c] sm:$0xf]  ;;  %v5827_v7 = vld [vmem:[%s8547_s0 + $0x684] sm:$0xf]  ;;  %v5832_v2 = vld [vmem:[%s8547_s0 + $0x6a8] sm:$0xf0] }
 0x200   :  { %v3136_v13 = vpop.f32.mrf.mxu0 }
 0x201   :  { %2668 = vmatmul.bf16.gmra.mxu1 %v4978_v34  ;;  %2837 = vmatmul.bf16.gmra.mxu2 %v4982_v53  ;;  %v7169_v37 = vadd.f32 %v3133_v12, %v2965_v8  ;;  %v5019_v34 = vld [vmem:[%s8547_s0 + $0x6a4] sm:$0xf0] }
 0x202   :  { %3006 = vmatmul.bf16.gmra.mxu3 %v4986_v42  ;;  %v5025_v53 = vld [vmem:[%s8547_s0 + $0x688] sm:$0xf] }
 0x203   :  { %3175 = vmatmul.bf16.gmra.mxu0 %v4990_v43 }
 0x204   :  { %v2798_v35 = vpop.f32.mrf.mxu2 }
 0x205   :  { %v2799_v23 = vadd.f32 %v2798_v35, %v2630_v31  ;;  %v2967_v56 = vpop.f32.mrf.mxu3  ;;  %v5022_v31 = vor.u32 %v5827_v7, %v5019_v34  ;;  %v5836_v7 = vld [vmem:[%s8547_s0 + $0x6cc] sm:$0xf] }
 0x206   :  { %v2631_v24 = vpop.f32.mrf.mxu1 }
 0x207   :  { %v2968_v12 = vadd.f32 %v2967_v56, %v2799_v23  ;;  %v2632_v60 = vadd.f32 %v2631_v24, %v6637_v54  ;;  %v5026_v54 = vor.u32 %v5832_v2, %v5025_v53  ;;  %v5055_v53 = vld [vmem:[%s8547_s0 + $0x6ec] sm:$0xf0] }
 0x208   :  { %v3138_v17 = vpop.f32.mrf.mxu0  ;;  %v5061_v2 = vld [vmem:[%s8547_s0 + $0x6d0] sm:$0xf] }
 0x209   :  { %v7190_v50 = vadd.f32 %v3136_v13, %v2968_v12  ;;  %v5014_v13 = vor.u32 %v5826_v14, %v5011_v48  ;;  %v5835_v48 = vld [vmem:[%s8547_s0 + $0x6c4] sm:$0xf] }
 0x20c   :  { %v2800_v42 = vpop.f32.mrf.mxu2 }
 0x20d   :  { %v2801_v43 = vadd.f32 %v2800_v42, %v2632_v60  ;;  %v2969_v8 = vpop.f32.mrf.mxu3 }
 0x20e   :  { %v2634_v40 = vpop.f32.mrf.mxu1 }
 0x20f   :  { %v2970_v35 = vadd.f32 %v2969_v8, %v2801_v43  ;;  %v2635_v24 = vadd.f32 %v2634_v40, %v6675_v41  ;;  %v5053_v41 = vld [vmem:[%s8547_s0 + $0x6c8] sm:$0xf]  ;;  %v5841_v43 = vld [vmem:[%s8547_s0 + $0x6f0] sm:$0xf0]  ;;  %v5050_v40 = vor.u32 %v5835_v48, %v5047_v16  ;;  %v5844_v16 = vld [vmem:[%s8547_s0 + $0x70c] sm:$0xf] }
 0x210   :  { %v3141_v23 = vpop.f32.mrf.mxu0 }
 0x211   :  { %2673 = vmatmul.bf16.gmra.mxu1 %v5014_v13  ;;  %2842 = vmatmul.bf16.gmra.mxu2 %v5018_v59  ;;  %v7211_v56 = vadd.f32 %v3138_v17, %v2970_v35  ;;  %v5058_v35 = vor.u32 %v5836_v7, %v5055_v53  ;;  %v5845_v7 = vld [vmem:[%s8547_s0 + $0x714] sm:$0xf] }
 0x212   :  { %3011 = vmatmul.bf16.gmra.mxu3 %v5022_v31  ;;  %v5054_v31 = vor.u32 %v5840_v9, %v5053_v41  ;;  %v5083_v41 = vld [vmem:[%s8547_s0 + $0x72c] sm:$0xf0]  ;;  %v5849_v9 = vld [vmem:[%s8547_s0 + $0x730] sm:$0xf0] }
 0x213   :  { %3180 = vmatmul.bf16.gmra.mxu0 %v5026_v54 }
 0x214   :  { %v2803_v12 = vpop.f32.mrf.mxu2 }
 0x215   :  { %v2804_v55 = vadd.f32 %v2803_v12, %v2635_v24  ;;  %v2972_v28 = vpop.f32.mrf.mxu3 }
 0x216   :  { %v2636_v60 = vpop.f32.mrf.mxu1 }
 0x217   :  { %v2973_v42 = vadd.f32 %v2972_v28, %v2804_v55  ;;  %v2637_v34 = vadd.f32 %v2636_v60, %v6683_v5  ;;  %v5062_v5 = vor.u32 %v5841_v43, %v5061_v2  ;;  %v5091_v2 = vld [vmem:[%s8547_s0 + $0x734] sm:$0xf0] }
 0x218   :  { %v3143_v14 = vpop.f32.mrf.mxu0  ;;  %v5097_v43 = vld [vmem:[%s8547_s0 + $0x718] sm:$0xf] }
 0x219   :  { %v7220_v17 = vadd.f32 %v3141_v23, %v2973_v42 }
 0x21c   :  { %v2805_v8 = vpop.f32.mrf.mxu2 }
 0x21d   :  { %v2806_v13 = vadd.f32 %v2805_v8, %v2637_v34  ;;  %v2974_v59 = vpop.f32.mrf.mxu3 }
 0x21e   :  { %v2639_v54 = vpop.f32.mrf.mxu1 }
 0x21f   :  { %v2975_v23 = vadd.f32 %v2974_v59, %v2806_v13  ;;  %v2640_v55 = vadd.f32 %v2639_v54, %v6375_v26  ;;  %v5089_v26 = vld [vmem:[%s8547_s0 + $0x710] sm:$0xf]  ;;  %v5850_v13 = vld [vmem:[%s8547_s0 + $0x738] sm:$0xf0]  ;;  %v5086_v54 = vor.u32 %v5844_v16, %v5083_v41  ;;  %v5853_v41 = vld [vmem:[%s8547_s0 + $0x754] sm:$0xf] }
 0x220   :  { %v3146_v24 = vpop.f32.mrf.mxu0 }
 0x221   :  { %2678 = vmatmul.bf16.gmra.mxu1 %v5050_v40  ;;  %2847 = vmatmul.bf16.gmra.mxu2 %v5054_v31  ;;  %v7241_v12 = vadd.f32 %v3143_v14, %v2975_v23  ;;  %v5094_v23 = vor.u32 %v5845_v7, %v5091_v2  ;;  %v5854_v7 = vld [vmem:[%s8547_s0 + $0x75c] sm:$0xf] }
 0x222   :  { %3016 = vmatmul.bf16.gmra.mxu3 %v5058_v35  ;;  %v5090_v35 = vor.u32 %v5849_v9, %v5089_v26  ;;  %v5119_v26 = vld [vmem:[%s8547_s0 + $0x774] sm:$0xf0]  ;;  %v5858_v9 = vld [vmem:[%s8547_s0 + $0x778] sm:$0xf0] }
 0x223   :  { %3185 = vmatmul.bf16.gmra.mxu0 %v5062_v5 }
 0x224   :  { %v2808_v28 = vpop.f32.mrf.mxu2 }
 0x225   :  { %v2809_v60 = vadd.f32 %v2808_v28, %v2640_v55  ;;  %v2977_v42 = vpop.f32.mrf.mxu3 }
 0x226   :  { %v2641_v34 = vpop.f32.mrf.mxu1 }
 0x227   :  { %v2978_v8 = vadd.f32 %v2977_v42, %v2809_v60  ;;  %v2642_v53 = vadd.f32 %v2641_v34, %v6407_v38  ;;  %v5098_v38 = vor.u32 %v5850_v13, %v5097_v43  ;;  %v5127_v43 = vld [vmem:[%s8547_s0 + $0x77c] sm:$0xf0] }
 0x228   :  { %v3148_v48 = vpop.f32.mrf.mxu0  ;;  %v5133_v13 = vld [vmem:[%s8547_s0 + $0x760] sm:$0xf] }
 0x229   :  { %v7250_v14 = vadd.f32 %v3146_v24, %v2978_v8 }
 0x22c   :  { %v2810_v59 = vpop.f32.mrf.mxu2 }
 0x22d   :  { %v2811_v40 = vadd.f32 %v2810_v59, %v2642_v53  ;;  %v2979_v31 = vpop.f32.mrf.mxu3 }
 0x22e   :  { %v2644_v5 = vpop.f32.mrf.mxu1 }
 0x22f   :  { %v2980_v24 = vadd.f32 %v2979_v31, %v2811_v40  ;;  %v2645_v60 = vadd.f32 %v2644_v5, %v6415_v46  ;;  %v5125_v46 = vld [vmem:[%s8547_s0 + $0x758] sm:$0xf]  ;;  %v5859_v40 = vld [vmem:[%s8547_s0 + $0x780] sm:$0xf0]  ;;  %v5122_v5 = vor.u32 %v5853_v41, %v5119_v26 }
 0x230   :  { %v3151_v55 = vpop.f32.mrf.mxu0 }
 0x231   :  { %2683 = vmatmul.bf16.gmra.mxu1 %v5086_v54  ;;  %2852 = vmatmul.bf16.gmra.mxu2 %v5090_v35  ;;  %v7271_v28 = vadd.f32 %v3148_v48, %v2980_v24  ;;  %v5130_v24 = vor.u32 %v5854_v7, %v5127_v43  ;;  %v5947_v7 = vld [vmem:[%s8546_s1 + $0x140] sm:$0xff] }
 0x232   :  { %3021 = vmatmul.bf16.gmra.mxu3 %v5094_v23  ;;  %v5126_v23 = vor.u32 %v5858_v9, %v5125_v46  ;;  %v5155_v43 = vld [vmem:[%s8547_s0 + $0x7bc] sm:$0xf0]  ;;  %3233 = vmatpush.bf16.msra.mxu1 %v5947_v7 }
 0x233   :  { %3190 = vmatmul.bf16.gmra.mxu0 %v5098_v38 }
 0x234   :  { %v2813_v42 = vpop.f32.mrf.mxu2 }
 0x235   :  { %v2814_v34 = vadd.f32 %v2813_v42, %v2645_v60  ;;  %v2982_v8 = vpop.f32.mrf.mxu3 }
 0x236   :  { %v2646_v53 = vpop.f32.mrf.mxu1 }
 0x237   :  { %v2983_v59 = vadd.f32 %v2982_v8, %v2814_v34  ;;  %v2647_v2 = vadd.f32 %v2646_v53, %v6447_v58  ;;  %v5134_v58 = vor.u32 %v5859_v40, %v5133_v13  ;;  %v5955_v34 = vld [vmem:[%s8546_s1 + $0x180] sm:$0xff] }
 0x238   :  { %v3153_v16 = vpop.f32.mrf.mxu0  ;;  %v5963_v8 = vld [vmem:[%s8546_s1 + $0x1c0] sm:$0xff]  ;;  %3402 = vmatpush.bf16.msra.mxu2 %v5955_v34 }
 0x239   :  { %v7280_v48 = vadd.f32 %v3151_v55, %v2983_v59  ;;  %3571 = vmatpush.bf16.msra.mxu3 %v5963_v8  ;;  %v5161_v40 = vld [vmem:[%s8547_s0 + $0x7a0] sm:$0xf] }
 0x23c   :  { %v2815_v31 = vpop.f32.mrf.mxu2 }
 0x23d   :  { %v2816_v54 = vadd.f32 %v2815_v31, %v2647_v2  ;;  %v2984_v35 = vpop.f32.mrf.mxu3  ;;  %v5971_v2 = vld [vmem:[%s8546_s1 + $0x200] sm:$0xff] }
 0x23e   :  { %v2649_v38 = vpop.f32.mrf.mxu1  ;;  %3740 = vmatpush.bf16.msra.mxu0 %v5971_v2  ;;  %v5867_v31 = vld [vmem:[%s8547_s0 + $0x7c0] sm:$0xf0] }
 0x23f   :  { %v2985_v55 = vadd.f32 %v2984_v35, %v2816_v54  ;;  %v2650_v53 = vadd.f32 %v2649_v38, %v6461_v4  ;;  %v5862_v4 = vld [vmem:[%s8547_s0 + $0x79c] sm:$0xf]  ;;  %v5863_v54 = vld [vmem:[%s8547_s0 + $0x7a4] sm:$0xf]  ;;  %v5868_v38 = vld [vmem:[%s8547_s0 + $0x7c8] sm:$0xf0]  ;;  %v5162_v34 = vor.u32 %v5867_v31, %v5161_v40 }
 0x240   :  { %v3156_v60 = vpop.f32.mrf.mxu0  ;;  %v5191_v40 = vld [vmem:[%s8547_s0 + $0x804] sm:$0xf0]  ;;  %v5876_v31 = vld [vmem:[%s8547_s0 + $0x808] sm:$0xf0] }
 0x241   :  { %2688 = vmatmul.bf16.gmra.mxu1 %v5122_v5  ;;  %2857 = vmatmul.bf16.gmra.mxu2 %v5126_v23  ;;  %v7301_v42 = vadd.f32 %v3153_v16, %v2985_v55  ;;  %v5163_v5 = vld [vmem:[%s8547_s0 + $0x7c4] sm:$0xf0] }
 0x242   :  { %3026 = vmatmul.bf16.gmra.mxu3 %v5130_v24  ;;  %v5169_v23 = vld [vmem:[%s8547_s0 + $0x7a8] sm:$0xf] }
 0x243   :  { %3195 = vmatmul.bf16.gmra.mxu0 %v5134_v58 }
 0x244   :  { %v2818_v59 = vpop.f32.mrf.mxu2 }
 0x245   :  { %v2819_v41 = vadd.f32 %v2818_v59, %v2650_v53  ;;  %v2987_v26 = vpop.f32.mrf.mxu3  ;;  %v5166_v53 = vor.u32 %v5863_v54, %v5163_v5  ;;  %v5872_v54 = vld [vmem:[%s8547_s0 + $0x7ec] sm:$0xf] }
 0x246   :  { %v2651_v46 = vpop.f32.mrf.mxu1 }
 0x247   :  { %v2988_v16 = vadd.f32 %v2987_v26, %v2819_v41  ;;  %v2652_v35 = vadd.f32 %v2651_v46, %v6499_v18  ;;  %v5170_v18 = vor.u32 %v5868_v38, %v5169_v23  ;;  %v5199_v23 = vld [vmem:[%s8547_s0 + $0x80c] sm:$0xf0] }
 0x248   :  { %v3158_v9 = vpop.f32.mrf.mxu0  ;;  %v5205_v38 = vld [vmem:[%s8547_s0 + $0x7f0] sm:$0xf] }
 0x249   :  { %v7322_v13 = vadd.f32 %v3156_v60, %v2988_v16  ;;  %v5158_v60 = vor.u32 %v5862_v4, %v5155_v43  ;;  %v5871_v43 = vld [vmem:[%s8547_s0 + $0x7e4] sm:$0xf] }
 0x24c   :  { %v2820_v24 = vpop.f32.mrf.mxu2 }
 0x24d   :  { %v2821_v58 = vadd.f32 %v2820_v24, %v2652_v35  ;;  %v2989_v55 = vpop.f32.mrf.mxu3 }
 0x24e   :  { %v2654_v8 = vpop.f32.mrf.mxu1 }
 0x24f   :  { %v2990_v59 = vadd.f32 %v2989_v55, %v2821_v58  ;;  %v2655_v46 = vadd.f32 %v2654_v8, %v6507_v32  ;;  %v5197_v32 = vld [vmem:[%s8547_s0 + $0x7e8] sm:$0xf]  ;;  %v5877_v58 = vld [vmem:[%s8547_s0 + $0x810] sm:$0xf0]  ;;  %v5194_v8 = vor.u32 %v5871_v43, %v5191_v40  ;;  %v5880_v40 = vld [vmem:[%s8547_s0 + $0x82c] sm:$0xf] }
 0x250   :  { %v3161_v41 = vpop.f32.mrf.mxu0 }
 0x251   :  { %2693 = vmatmul.bf16.gmra.mxu1 %v5158_v60  ;;  %2862 = vmatmul.bf16.gmra.mxu2 %v5162_v34  ;;  %v7343_v26 = vadd.f32 %v3158_v9, %v2990_v59  ;;  %v5202_v59 = vor.u32 %v5872_v54, %v5199_v23  ;;  %v5881_v54 = vld [vmem:[%s8547_s0 + $0x834] sm:$0xf]  ;;  %v8576_v23 = vld [vmem:[#allocation11_spill] sm:$0xff] }
 0x252   :  { %3031 = vmatmul.bf16.gmra.mxu3 %v5166_v53  ;;  %v5198_v53 = vor.u32 %v5876_v31, %v5197_v32  ;;  %v5227_v32 = vld [vmem:[%s8547_s0 + $0x84c] sm:$0xf0]  ;;  %v5885_v31 = vld [vmem:[%s8547_s0 + $0x850] sm:$0xf0] }
 0x253   :  { %3200 = vmatmul.bf16.gmra.mxu0 %v5170_v18 }
 0x254   :  { %v2823_v16 = vpop.f32.mrf.mxu2 }
 0x255   :  { %v2824_v7 = vadd.f32 %v2823_v16, %v2655_v46  ;;  %v2992_v2 = vpop.f32.mrf.mxu3 }
 0x256   :  { %v2656_v35 = vpop.f32.mrf.mxu1 }
 0x257   :  { %v2993_v24 = vadd.f32 %v2992_v2, %v2824_v7  ;;  %v2657_v5 = vadd.f32 %v2656_v35, %v6539_v52  ;;  %v5206_v52 = vor.u32 %v5877_v58, %v5205_v38  ;;  %v5235_v58 = vld [vmem:[%s8547_s0 + $0x854] sm:$0xf0] }
 0x258   :  { %v3163_v4 = vpop.f32.mrf.mxu0 }
 0x259   :  { %v7352_v9 = vadd.f32 %v3161_v41, %v2993_v24 }
 0x25c   :  { %v2825_v55 = vpop.f32.mrf.mxu2 }
 0x25d   :  { %v2826_v60 = vadd.f32 %v2825_v55, %v2657_v5  ;;  %v2994_v34 = vpop.f32.mrf.mxu3 }
 0x25e   :  { %v2659_v18 = vpop.f32.mrf.mxu1 }
 0x25f   :  { %v2995_v41 = vadd.f32 %v2994_v34, %v2826_v60  ;;  %v2660_v7 = vadd.f32 %v2659_v18, %v6547_v63  ;;  %v5233_v63 = vld [vmem:[%s8547_s0 + $0x830] sm:$0xf]  ;;  %v5241_v60 = vld [vmem:[%s8547_s0 + $0x838] sm:$0xf]  ;;  %v5886_v34 = vld [vmem:[%s8547_s0 + $0x858] sm:$0xf0] }
 0x260   :  { %v3166_v46 = vpop.f32.mrf.mxu0 }
 0x261   :  { %2698 = vmatmul.bf16.gmra.mxu1 %v5194_v8  ;;  %2867 = vmatmul.bf16.gmra.mxu2 %v5198_v53  ;;  %v7373_v16 = vadd.f32 %v3163_v4, %v2995_v41 }
 0x262   :  { %3036 = vmatmul.bf16.gmra.mxu3 %v5202_v59  ;;  %v5230_v59 = vor.u32 %v5880_v40, %v5227_v32  ;;  %v5889_v32 = vld [vmem:[%s8547_s0 + $0x874] sm:$0xf] }
 0x263   :  { %8574 = vst [vmem:[#allocation26_spill] sm:$0xff] %v7373_v16  ;;  %3205 = vmatmul.bf16.gmra.mxu0 %v5206_v52  ;;  %v5234_v52 = vor.u32 %v5885_v31, %v5233_v63  ;;  %v5263_v63 = vld [vmem:[%s8547_s0 + $0x894] sm:$0xf0] }
 0x264   :  { %v2828_v2 = vpop.f32.mrf.mxu2  ;;  %v5269_v31 = vld [vmem:[%s8547_s0 + $0x878] sm:$0xf] }
 0x265   :  { %v2829_v35 = vadd.f32 %v2828_v2, %v2660_v7  ;;  %v2997_v24 = vpop.f32.mrf.mxu3  ;;  %v5242_v7 = vor.u32 %v5886_v34, %v5241_v60  ;;  %v5271_v60 = vld [vmem:[%s8547_s0 + $0x89c] sm:$0xf0] }
 0x266   :  { %v2661_v5 = vpop.f32.mrf.mxu1  ;;  %v5277_v34 = vld [vmem:[%s8547_s0 + $0x880] sm:$0xf] }
 0x267   :  { %v2998_v55 = vadd.f32 %v2997_v24, %v2829_v35  ;;  %v2662_v38 = vadd.f32 %v2661_v5, %v8576_v23  ;;  %v8578_v5 = vld [vmem:[#allocation13_spill] sm:$0xff] }
 0x268   :  { %v3168_v43 = vpop.f32.mrf.mxu0 }
 0x269   :  { %v7382_v4 = vadd.f32 %v3166_v46, %v2998_v55  ;;  %v5238_v46 = vor.u32 %v5881_v54, %v5235_v58  ;;  %v5894_v54 = vld [vmem:[%s8547_s0 + $0x898] sm:$0xf0] }
 0x26b   :  { %8575 = vst [vmem:[#allocation27_spill] sm:$0xff] %v7382_v4 }
 0x26c   :  { %v2830_v8 = vpop.f32.mrf.mxu2 }
 0x26d   :  { %v2831_v53 = vadd.f32 %v2830_v8, %v2662_v38  ;;  %v2999_v18 = vpop.f32.mrf.mxu3 }
 0x26e   :  { %v2664_v41 = vpop.f32.mrf.mxu1 }
 0x26f   :  { %v3000_v2 = vadd.f32 %v2999_v18, %v2831_v53  ;;  %v2665_v55 = vadd.f32 %v2664_v41, %v8578_v5  ;;  %v5895_v53 = vld [vmem:[%s8547_s0 + $0x8a0] sm:$0xf0]  ;;  %v5266_v41 = vor.u32 %v5889_v32, %v5263_v63  ;;  %v5898_v63 = vld [vmem:[%s8547_s0 + $0x8bc] sm:$0xf] }
 0x270   :  { %v3171_v35 = vpop.f32.mrf.mxu0 }
 0x271   :  { %2703 = vmatmul.bf16.gmra.mxu1 %v5230_v59  ;;  %2872 = vmatmul.bf16.gmra.mxu2 %v5234_v52  ;;  %v7403_v24 = vadd.f32 %v3168_v43, %v3000_v2 }
 0x272   :  { %3041 = vmatmul.bf16.gmra.mxu3 %v5238_v46  ;;  %v5270_v46 = vor.u32 %v5894_v54, %v5269_v31  ;;  %v5299_v31 = vld [vmem:[%s8547_s0 + $0x8dc] sm:$0xf0] }
 0x273   :  { %8577 = vst [vmem:[#allocation11_spill] sm:$0xff] %v7403_v24  ;;  %3210 = vmatmul.bf16.gmra.mxu0 %v5242_v7  ;;  %v5305_v54 = vld [vmem:[%s8547_s0 + $0x8c0] sm:$0xf] }
 0x274   :  { %v2833_v23 = vpop.f32.mrf.mxu2 }
 0x275   :  { %v2834_v4 = vadd.f32 %v2833_v23, %v2665_v55  ;;  %v3002_v16 = vpop.f32.mrf.mxu3 }
 0x276   :  { %v2666_v38 = vpop.f32.mrf.mxu1 }
 0x277   :  { %v3003_v8 = vadd.f32 %v3002_v16, %v2834_v4  ;;  %v5890_v16 = vld [vmem:[%s8547_s0 + $0x87c] sm:$0xf]  ;;  %v8580_v4 = vld [vmem:[#allocation15_spill] sm:$0xff] }
 0x278   :  { %v3173_v40 = vpop.f32.mrf.mxu0  ;;  %v2667_v58 = vadd.f32 %v2666_v38, %v8580_v4  ;;  %v5274_v2 = vor.u32 %v5890_v16, %v5271_v60  ;;  %v8582_v38 = vld [vmem:[#allocation17_spill] sm:$0xff]  ;;  %v5903_v16 = vld [vmem:[%s8547_s0 + $0x8e0] sm:$0xf0] }
 0x279   :  { %v7412_v43 = vadd.f32 %v3171_v35, %v3003_v8  ;;  %v5278_v35 = vor.u32 %v5895_v53, %v5277_v34  ;;  %v5307_v34 = vld [vmem:[%s8547_s0 + $0x8e4] sm:$0xf0] }
 0x27a   :  { %v5313_v53 = vld [vmem:[%s8547_s0 + $0x8c8] sm:$0xf] }
 0x27b   :  { %8579 = vst [vmem:[#allocation13_spill] sm:$0xff] %v7412_v43 }
 0x27c   :  { %v2835_v18 = vpop.f32.mrf.mxu2 }
 0x27d   :  { %v2836_v59 = vadd.f32 %v2835_v18, %v2667_v58  ;;  %v3004_v52 = vpop.f32.mrf.mxu3 }
 0x27e   :  { %v2669_v7 = vpop.f32.mrf.mxu1 }
 0x27f   :  { %v3005_v5 = vadd.f32 %v3004_v52, %v2836_v59  ;;  %v2670_v8 = vadd.f32 %v2669_v7, %v8582_v38  ;;  %v5904_v59 = vld [vmem:[%s8547_s0 + $0x8e8] sm:$0xf0]  ;;  %v5302_v7 = vor.u32 %v5898_v63, %v5299_v31  ;;  %v5621_v31 = vld [vmem:[%s8547_s0 + $0x14] sm:$0xf] }
 0x280   :  { %v3176_v55 = vpop.f32.mrf.mxu0 }
 0x281   :  { %2708 = vmatmul.bf16.gmra.mxu1 %v5266_v41  ;;  %2877 = vmatmul.bf16.gmra.mxu2 %v5270_v46  ;;  %v7433_v23 = vadd.f32 %v3173_v40, %v3005_v5 }
 0x282   :  { %3046 = vmatmul.bf16.gmra.mxu3 %v5274_v2  ;;  %v5306_v2 = vor.u32 %v5903_v16, %v5305_v54  ;;  %v4199_v54 = vld [vmem:[%s8547_s0 + $0x34] sm:$0xf0] }
 0x283   :  { %8581 = vst [vmem:[#allocation15_spill] sm:$0xff] %v7433_v23  ;;  %3215 = vmatmul.bf16.gmra.mxu0 %v5278_v35  ;;  %v4205_v16 = vld [vmem:[%s8547_s0 + $0x18] sm:$0xf] }
 0x284   :  { %v2838_v4 = vpop.f32.mrf.mxu2 }
 0x285   :  { %v2839_v43 = vadd.f32 %v2838_v4, %v2670_v8  ;;  %v3007_v24 = vpop.f32.mrf.mxu3 }
 0x286   :  { %v2671_v58 = vpop.f32.mrf.mxu1 }
 0x287   :  { %v3008_v18 = vadd.f32 %v3007_v24, %v2839_v43  ;;  %v5899_v24 = vld [vmem:[%s8547_s0 + $0x8c4] sm:$0xf]  ;;  %v8584_v43 = vld [vmem:[#allocation19_spill] sm:$0xff] }
 0x288   :  { %v3178_v32 = vpop.f32.mrf.mxu0  ;;  %v2672_v60 = vadd.f32 %v2671_v58, %v8584_v43  ;;  %v5310_v5 = vor.u32 %v5899_v24, %v5307_v34  ;;  %v8586_v58 = vld [vmem:[#allocation21_spill] sm:$0xff] }
 0x289   :  { %v7442_v40 = vadd.f32 %v3176_v55, %v3008_v18  ;;  %v5314_v55 = vor.u32 %v5904_v59, %v5313_v53  ;;  %v5626_v24 = vld [vmem:[%s8547_s0 + $0x38] sm:$0xf0]  ;;  %v4207_v53 = vld [vmem:[%s8547_s0 + $0x3c] sm:$0xf0] }
 0x28a   :  { %v4213_v59 = vld [vmem:[%s8547_s0 + $0x20] sm:$0xf] }
 0x28b   :  { %8583 = vst [vmem:[#allocation17_spill] sm:$0xff] %v7442_v40 }
 0x28c   :  { %v2840_v52 = vpop.f32.mrf.mxu2 }
 0x28d   :  { %v2841_v41 = vadd.f32 %v2840_v52, %v2672_v60  ;;  %v3009_v46 = vpop.f32.mrf.mxu3 }
 0x28e   :  { %v2674_v35 = vpop.f32.mrf.mxu1 }
 0x28f   :  { %v3010_v38 = vadd.f32 %v3009_v46, %v2841_v41  ;;  %v2675_v18 = vadd.f32 %v2674_v35, %v8586_v58  ;;  %v5627_v41 = vld [vmem:[%s8547_s0 + $0x40] sm:$0xf0]  ;;  %v4202_v35 = vor.u32 %v5621_v31, %v4199_v54  ;;  %v5630_v54 = vld [vmem:[%s8547_s0 + $0x5c] sm:$0xf] }
 0x290   :  { %v3181_v8 = vpop.f32.mrf.mxu0 }
 0x291   :  { %2713 = vmatmul.bf16.gmra.mxu1 %v5302_v7  ;;  %2882 = vmatmul.bf16.gmra.mxu2 %v5306_v2  ;;  %v7463_v4 = vadd.f32 %v3178_v32, %v3010_v38 }
 0x292   :  { %3051 = vmatmul.bf16.gmra.mxu3 %v5310_v5  ;;  %v4206_v5 = vor.u32 %v5626_v24, %v4205_v16  ;;  %v4235_v16 = vld [vmem:[%s8547_s0 + $0x7c] sm:$0xf0] }
 0x293   :  { %8585 = vst [vmem:[#allocation19_spill] sm:$0xff] %v7463_v4  ;;  %3220 = vmatmul.bf16.gmra.mxu0 %v5314_v55  ;;  %v4241_v24 = vld [vmem:[%s8547_s0 + $0x60] sm:$0xf] }
 0x294   :  { %v2843_v43 = vpop.f32.mrf.mxu2 }
 0x295   :  { %v2844_v40 = vadd.f32 %v2843_v43, %v2675_v18  ;;  %v3012_v23 = vpop.f32.mrf.mxu3 }
 0x296   :  { %v2676_v60 = vpop.f32.mrf.mxu1 }
 0x297   :  { %v3013_v52 = vadd.f32 %v3012_v23, %v2844_v40  ;;  %v5622_v23 = vld [vmem:[%s8547_s0 + $0x1c] sm:$0xf]  ;;  %v8588_v40 = vld [vmem:[#allocation23_spill] sm:$0xff] }
 0x298   :  { %v3183_v63 = vpop.f32.mrf.mxu0  ;;  %v2677_v34 = vadd.f32 %v2676_v60, %v8588_v40  ;;  %v4210_v38 = vor.u32 %v5622_v23, %v4207_v53  ;;  %v8590_v60 = vld [vmem:[#allocation2_spill] sm:$0xff] }
 0x299   :  { %v7472_v32 = vadd.f32 %v3181_v8, %v3013_v52  ;;  %v4214_v8 = vor.u32 %v5627_v41, %v4213_v59  ;;  %v5635_v23 = vld [vmem:[%s8547_s0 + $0x80] sm:$0xf0]  ;;  %v4243_v59 = vld [vmem:[%s8547_s0 + $0x84] sm:$0xf0] }
 0x29a   :  { %v4249_v41 = vld [vmem:[%s8547_s0 + $0x68] sm:$0xf] }
 0x29b   :  { %8587 = vst [vmem:[#allocation21_spill] sm:$0xff] %v7472_v32 }
 0x29c   :  { %v2845_v46 = vpop.f32.mrf.mxu2 }
 0x29d   :  { %v2846_v7 = vadd.f32 %v2845_v46, %v2677_v34  ;;  %v3014_v2 = vpop.f32.mrf.mxu3 }
 0x29e   :  { %v2679_v55 = vpop.f32.mrf.mxu1 }
 0x29f   :  { %v3015_v58 = vadd.f32 %v3014_v2, %v2846_v7  ;;  %v2680_v52 = vadd.f32 %v2679_v55, %v8590_v60  ;;  %v5636_v7 = vld [vmem:[%s8547_s0 + $0x88] sm:$0xf0]  ;;  %v4238_v55 = vor.u32 %v5630_v54, %v4235_v16  ;;  %v5639_v16 = vld [vmem:[%s8547_s0 + $0xa4] sm:$0xf] }
 0x2a0   :  { %v3186_v18 = vpop.f32.mrf.mxu0 }
 0x2a1   :  { %3234 = vmatmul.bf16.vlgmr.msra.gmra.mxu1 %v4202_v35  ;;  %3403 = vmatmul.bf16.vlgmr.msra.gmra.mxu2 %v4206_v5  ;;  %v7493_v43 = vadd.f32 %v3183_v63, %v3015_v58 }
 0x2a2   :  { %3572 = vmatmul.bf16.vlgmr.msra.gmra.mxu3 %v4210_v38  ;;  %v4242_v38 = vor.u32 %v5635_v23, %v4241_v24  ;;  %v4271_v24 = vld [vmem:[%s8547_s0 + $0xc4] sm:$0xf0] }
 0x2a3   :  { %8589 = vst [vmem:[#allocation23_spill] sm:$0xff] %v7493_v43  ;;  %3741 = vmatmul.bf16.vlgmr.msra.gmra.mxu0 %v4214_v8  ;;  %v4277_v23 = vld [vmem:[%s8547_s0 + $0xa8] sm:$0xf] }
 0x2a4   :  { %v2848_v40 = vpop.f32.mrf.mxu2 }
 0x2a5   :  { %v2849_v32 = vadd.f32 %v2848_v40, %v2680_v52  ;;  %v3017_v4 = vpop.f32.mrf.mxu3 }
 0x2a6   :  { %v2681_v34 = vpop.f32.mrf.mxu1 }
 0x2a7   :  { %v3018_v46 = vadd.f32 %v3017_v4, %v2849_v32  ;;  %v5631_v4 = vld [vmem:[%s8547_s0 + $0x64] sm:$0xf]  ;;  %v8592_v32 = vld [vmem:[#allocation3_spill] sm:$0xff] }
 0x2a8   :  { %v3188_v31 = vpop.f32.mrf.mxu0  ;;  %v2682_v53 = vadd.f32 %v2681_v34, %v8592_v32  ;;  %v4246_v58 = vor.u32 %v5631_v4, %v4243_v59  ;;  %v8594_v34 = vld [vmem:[#allocation4_spill] sm:$0xff]  ;;  %v5644_v4 = vld [vmem:[%s8547_s0 + $0xc8] sm:$0xf0] }
 0x2a9   :  { %v7502_v63 = vadd.f32 %v3186_v18, %v3018_v46  ;;  %v4250_v18 = vor.u32 %v5636_v7, %v4249_v41  ;;  %v4279_v41 = vld [vmem:[%s8547_s0 + $0xcc] sm:$0xf0] }
 0x2aa   :  { %v4285_v7 = vld [vmem:[%s8547_s0 + $0xb0] sm:$0xf] }
 0x2ab   :  { %8591 = vst [vmem:[#allocation2_spill] sm:$0xff] %v7502_v63 }
 0x2ac   :  { %v2850_v2 = vpop.f32.mrf.mxu2 }
 0x2ad   :  { %v2851_v35 = vadd.f32 %v2850_v2, %v2682_v53  ;;  %v3019_v5 = vpop.f32.mrf.mxu3 }
 0x2ae   :  { %v2684_v8 = vpop.f32.mrf.mxu1 }
 0x2af   :  { %v3020_v60 = vadd.f32 %v3019_v5, %v2851_v35  ;;  %v2685_v46 = vadd.f32 %v2684_v8, %v8594_v34  ;;  %v5645_v35 = vld [vmem:[%s8547_s0 + $0xd0] sm:$0xf0]  ;;  %v4274_v8 = vor.u32 %v5639_v16, %v4271_v24  ;;  %v5648_v24 = vld [vmem:[%s8547_s0 + $0xec] sm:$0xf] }
 0x2b0   :  { %v3191_v52 = vpop.f32.mrf.mxu0 }
 0x2b1   :  { %3239 = vmatmul.bf16.gmra.mxu1 %v4238_v55  ;;  %3408 = vmatmul.bf16.gmra.mxu2 %v4242_v38  ;;  %v7523_v40 = vadd.f32 %v3188_v31, %v3020_v60 }
 0x2b2   :  { %3577 = vmatmul.bf16.gmra.mxu3 %v4246_v58  ;;  %v4278_v58 = vor.u32 %v5644_v4, %v4277_v23  ;;  %v4307_v23 = vld [vmem:[%s8547_s0 + $0x10c] sm:$0xf0] }
 0x2b3   :  { %8593 = vst [vmem:[#allocation3_spill] sm:$0xff] %v7523_v40  ;;  %3746 = vmatmul.bf16.gmra.mxu0 %v4250_v18  ;;  %v4313_v4 = vld [vmem:[%s8547_s0 + $0xf0] sm:$0xf] }
 0x2b4   :  { %v2853_v32 = vpop.f32.mrf.mxu2 }
 0x2b5   :  { %v2854_v63 = vadd.f32 %v2853_v32, %v2685_v46  ;;  %v3022_v43 = vpop.f32.mrf.mxu3 }
 0x2b6   :  { %v2686_v53 = vpop.f32.mrf.mxu1 }
 0x2b7   :  { %v3023_v2 = vadd.f32 %v3022_v43, %v2854_v63  ;;  %v5640_v43 = vld [vmem:[%s8547_s0 + $0xac] sm:$0xf]  ;;  %v8596_v63 = vld [vmem:[#allocation5_spill] sm:$0xff] }
 0x2b8   :  { %v3193_v54 = vpop.f32.mrf.mxu0  ;;  %v2687_v59 = vadd.f32 %v2686_v53, %v8596_v63  ;;  %v4282_v60 = vor.u32 %v5640_v43, %v4279_v41  ;;  %v8598_v53 = vld [vmem:[#allocation6_spill] sm:$0xff]  ;;  %v5653_v43 = vld [vmem:[%s8547_s0 + $0x110] sm:$0xf0] }
 0x2b9   :  { %v7532_v31 = vadd.f32 %v3191_v52, %v3023_v2  ;;  %v4286_v52 = vor.u32 %v5645_v35, %v4285_v7  ;;  %v4315_v7 = vld [vmem:[%s8547_s0 + $0x114] sm:$0xf0] }
 0x2ba   :  { %v4321_v35 = vld [vmem:[%s8547_s0 + $0xf8] sm:$0xf] }
 0x2bb   :  { %8595 = vst [vmem:[#allocation4_spill] sm:$0xff] %v7532_v31 }
 0x2bc   :  { %v2855_v5 = vpop.f32.mrf.mxu2 }
 0x2bd   :  { %v2856_v55 = vadd.f32 %v2855_v5, %v2687_v59  ;;  %v3024_v38 = vpop.f32.mrf.mxu3 }
 0x2be   :  { %v2689_v18 = vpop.f32.mrf.mxu1 }
 0x2bf   :  { %v3025_v34 = vadd.f32 %v3024_v38, %v2856_v55  ;;  %v2690_v2 = vadd.f32 %v2689_v18, %v8598_v53  ;;  %v5654_v55 = vld [vmem:[%s8547_s0 + $0x118] sm:$0xf0]  ;;  %v4310_v18 = vor.u32 %v5648_v24, %v4307_v23  ;;  %v5657_v23 = vld [vmem:[%s8547_s0 + $0x134] sm:$0xf] }
 0x2c0   :  { %v3196_v46 = vpop.f32.mrf.mxu0 }
 0x2c1   :  { %3244 = vmatmul.bf16.gmra.mxu1 %v4274_v8  ;;  %3413 = vmatmul.bf16.gmra.mxu2 %v4278_v58  ;;  %v7553_v32 = vadd.f32 %v3193_v54, %v3025_v34 }
 0x2c2   :  { %3582 = vmatmul.bf16.gmra.mxu3 %v4282_v60  ;;  %v4314_v60 = vor.u32 %v5653_v43, %v4313_v4  ;;  %v4343_v4 = vld [vmem:[%s8547_s0 + $0x154] sm:$0xf0] }
 0x2c3   :  { %8597 = vst [vmem:[#allocation5_spill] sm:$0xff] %v7553_v32  ;;  %3751 = vmatmul.bf16.gmra.mxu0 %v4286_v52  ;;  %v4349_v43 = vld [vmem:[%s8547_s0 + $0x138] sm:$0xf] }
 0x2c4   :  { %v2858_v63 = vpop.f32.mrf.mxu2 }
 0x2c5   :  { %v2859_v31 = vadd.f32 %v2858_v63, %v2690_v2  ;;  %v3027_v40 = vpop.f32.mrf.mxu3 }
 0x2c6   :  { %v2691_v59 = vpop.f32.mrf.mxu1 }
 0x2c7   :  { %v3028_v5 = vadd.f32 %v3027_v40, %v2859_v31  ;;  %v5649_v40 = vld [vmem:[%s8547_s0 + $0xf4] sm:$0xf]  ;;  %v8600_v31 = vld [vmem:[#allocation7_spill] sm:$0xff] }
 0x2c8   :  { %v3198_v16 = vpop.f32.mrf.mxu0  ;;  %v2692_v41 = vadd.f32 %v2691_v59, %v8600_v31  ;;  %v4318_v34 = vor.u32 %v5649_v40, %v4315_v7  ;;  %v8602_v59 = vld [vmem:[#allocation8_spill] sm:$0xff]  ;;  %v5662_v40 = vld [vmem:[%s8547_s0 + $0x158] sm:$0xf0] }
 0x2c9   :  { %v7562_v54 = vadd.f32 %v3196_v46, %v3028_v5  ;;  %v4322_v46 = vor.u32 %v5654_v55, %v4321_v35  ;;  %v4351_v35 = vld [vmem:[%s8547_s0 + $0x15c] sm:$0xf0] }
 0x2ca   :  { %v4357_v55 = vld [vmem:[%s8547_s0 + $0x140] sm:$0xf] }
 0x2cb   :  { %8599 = vst [vmem:[#allocation6_spill] sm:$0xff] %v7562_v54 }
 0x2cc   :  { %v2860_v38 = vpop.f32.mrf.mxu2 }
 0x2cd   :  { %v2861_v8 = vadd.f32 %v2860_v38, %v2692_v41  ;;  %v3029_v58 = vpop.f32.mrf.mxu3 }
 0x2ce   :  { %v2694_v52 = vpop.f32.mrf.mxu1 }
 0x2cf   :  { %v3030_v53 = vadd.f32 %v3029_v58, %v2861_v8  ;;  %v2695_v5 = vadd.f32 %v2694_v52, %v8602_v59  ;;  %v5663_v8 = vld [vmem:[%s8547_s0 + $0x160] sm:$0xf0]  ;;  %v4346_v52 = vor.u32 %v5657_v23, %v4343_v4  ;;  %v5666_v4 = vld [vmem:[%s8547_s0 + $0x17c] sm:$0xf] }
 0x2d0   :  { %v3201_v2 = vpop.f32.mrf.mxu0 }
 0x2d1   :  { %3249 = vmatmul.bf16.gmra.mxu1 %v4310_v18  ;;  %3418 = vmatmul.bf16.gmra.mxu2 %v4314_v60  ;;  %v7583_v63 = vadd.f32 %v3198_v16, %v3030_v53 }
 0x2d2   :  { %3587 = vmatmul.bf16.gmra.mxu3 %v4318_v34  ;;  %v4350_v34 = vor.u32 %v5662_v40, %v4349_v43  ;;  %v4379_v43 = vld [vmem:[%s8547_s0 + $0x19c] sm:$0xf0] }
 0x2d3   :  { %8601 = vst [vmem:[#allocation7_spill] sm:$0xff] %v7583_v63  ;;  %3756 = vmatmul.bf16.gmra.mxu0 %v4322_v46  ;;  %v4385_v40 = vld [vmem:[%s8547_s0 + $0x180] sm:$0xf] }
 0x2d4   :  { %v2863_v31 = vpop.f32.mrf.mxu2 }
 0x2d5   :  { %v2864_v54 = vadd.f32 %v2863_v31, %v2695_v5  ;;  %v3032_v32 = vpop.f32.mrf.mxu3 }
 0x2d6   :  { %v2696_v41 = vpop.f32.mrf.mxu1 }
 0x2d7   :  { %v3033_v38 = vadd.f32 %v3032_v32, %v2864_v54  ;;  %v5658_v32 = vld [vmem:[%s8547_s0 + $0x13c] sm:$0xf] }
 0x2d8   :  { %v3203_v24 = vpop.f32.mrf.mxu0  ;;  %v8604_v54 = vld [vmem:[#allocation9_spill] sm:$0xff]  ;;  %v4354_v53 = vor.u32 %v5658_v32, %v4351_v35  ;;  %v5671_v32 = vld [vmem:[%s8547_s0 + $0x1a0] sm:$0xf0] }
 0x2d9   :  { %v7592_v16 = vadd.f32 %v3201_v2, %v3033_v38  ;;  %v2697_v7 = vadd.f32 %v2696_v41, %v8604_v54  ;;  %v4358_v2 = vor.u32 %v5663_v8, %v4357_v55  ;;  %v8606_v41 = vld [vmem:[#allocation10_spill] sm:$0xff]  ;;  %v4387_v55 = vld [vmem:[%s8547_s0 + $0x1a4] sm:$0xf0] }
 0x2da   :  { %v4393_v8 = vld [vmem:[%s8547_s0 + $0x188] sm:$0xf] }
 0x2db   :  { %8603 = vst [vmem:[#allocation8_spill] sm:$0xff] %v7592_v16 }
 0x2dc   :  { %v2865_v58 = vpop.f32.mrf.mxu2 }
 0x2dd   :  { %v2866_v18 = vadd.f32 %v2865_v58, %v2697_v7  ;;  %v3034_v60 = vpop.f32.mrf.mxu3 }
 0x2de   :  { %v2699_v46 = vpop.f32.mrf.mxu1 }
 0x2df   :  { %v3035_v59 = vadd.f32 %v3034_v60, %v2866_v18  ;;  %v2700_v38 = vadd.f32 %v2699_v46, %v8606_v41  ;;  %v5672_v18 = vld [vmem:[%s8547_s0 + $0x1a8] sm:$0xf0]  ;;  %v4382_v46 = vor.u32 %v5666_v4, %v4379_v43  ;;  %v5675_v43 = vld [vmem:[%s8547_s0 + $0x1c4] sm:$0xf] }
 0x2e0   :  { %v3206_v5 = vpop.f32.mrf.mxu0 }
 0x2e1   :  { %3254 = vmatmul.bf16.gmra.mxu1 %v4346_v52  ;;  %3423 = vmatmul.bf16.gmra.mxu2 %v4350_v34  ;;  %v7613_v31 = vadd.f32 %v3203_v24, %v3035_v59 }
 0x2e2   :  { %3592 = vmatmul.bf16.gmra.mxu3 %v4354_v53  ;;  %v4386_v53 = vor.u32 %v5671_v32, %v4385_v40  ;;  %v4415_v40 = vld [vmem:[%s8547_s0 + $0x1e4] sm:$0xf0] }
 0x2e3   :  { %8605 = vst [vmem:[#allocation9_spill] sm:$0xff] %v7613_v31  ;;  %3761 = vmatmul.bf16.gmra.mxu0 %v4358_v2  ;;  %v4421_v32 = vld [vmem:[%s8547_s0 + $0x1c8] sm:$0xf] }
 0x2e4   :  { %v2868_v54 = vpop.f32.mrf.mxu2 }
 0x2e5   :  { %v2869_v16 = vadd.f32 %v2868_v54, %v2700_v38  ;;  %v3037_v63 = vpop.f32.mrf.mxu3 }
 0x2e6   :  { %v2701_v7 = vpop.f32.mrf.mxu1 }
 0x2e7   :  { %v3038_v58 = vadd.f32 %v3037_v63, %v2869_v16  ;;  %v5667_v63 = vld [vmem:[%s8547_s0 + $0x184] sm:$0xf]  ;;  %v8608_v16 = vld [vmem:[#allocation12_spill] sm:$0xff] }
 0x2e8   :  { %v3208_v23 = vpop.f32.mrf.mxu0  ;;  %v2702_v35 = vadd.f32 %v2701_v7, %v8608_v16  ;;  %v4390_v59 = vor.u32 %v5667_v63, %v4387_v55  ;;  %v8610_v7 = vld [vmem:[#allocation14_spill] sm:$0xff]  ;;  %v5680_v63 = vld [vmem:[%s8547_s0 + $0x1e8] sm:$0xf0] }
 0x2e9   :  { %v7622_v24 = vadd.f32 %v3206_v5, %v3038_v58  ;;  %v4394_v5 = vor.u32 %v5672_v18, %v4393_v8  ;;  %v4423_v8 = vld [vmem:[%s8547_s0 + $0x1ec] sm:$0xf0] }
 0x2ea   :  { %v4429_v18 = vld [vmem:[%s8547_s0 + $0x1d0] sm:$0xf] }
 0x2eb   :  { %8607 = vst [vmem:[#allocation10_spill] sm:$0xff] %v7622_v24 }
 0x2ec   :  { %v2870_v60 = vpop.f32.mrf.mxu2 }
 0x2ed   :  { %v2871_v52 = vadd.f32 %v2870_v60, %v2702_v35  ;;  %v3039_v34 = vpop.f32.mrf.mxu3 }
 0x2ee   :  { %v2704_v2 = vpop.f32.mrf.mxu1 }
 0x2ef   :  { %v3040_v41 = vadd.f32 %v3039_v34, %v2871_v52  ;;  %v2705_v58 = vadd.f32 %v2704_v2, %v8610_v7  ;;  %v5681_v52 = vld [vmem:[%s8547_s0 + $0x1f0] sm:$0xf0]  ;;  %v4418_v2 = vor.u32 %v5675_v43, %v4415_v40  ;;  %v5684_v40 = vld [vmem:[%s8547_s0 + $0x20c] sm:$0xf] }
 0x2f0   :  { %v3211_v38 = vpop.f32.mrf.mxu0 }
 0x2f1   :  { %3259 = vmatmul.bf16.gmra.mxu1 %v4382_v46  ;;  %3428 = vmatmul.bf16.gmra.mxu2 %v4386_v53  ;;  %v7643_v54 = vadd.f32 %v3208_v23, %v3040_v41 }
 0x2f2   :  { %3597 = vmatmul.bf16.gmra.mxu3 %v4390_v59  ;;  %v4422_v59 = vor.u32 %v5680_v63, %v4421_v32  ;;  %v4451_v32 = vld [vmem:[%s8547_s0 + $0x22c] sm:$0xf0] }
 0x2f3   :  { %8609 = vst [vmem:[#allocation12_spill] sm:$0xff] %v7643_v54  ;;  %3766 = vmatmul.bf16.gmra.mxu0 %v4394_v5  ;;  %v4457_v63 = vld [vmem:[%s8547_s0 + $0x210] sm:$0xf] }
 0x2f4   :  { %v2873_v16 = vpop.f32.mrf.mxu2 }
 0x2f5   :  { %v2874_v24 = vadd.f32 %v2873_v16, %v2705_v58  ;;  %v3042_v31 = vpop.f32.mrf.mxu3 }
 0x2f6   :  { %v2706_v35 = vpop.f32.mrf.mxu1 }
 0x2f7   :  { %v3043_v60 = vadd.f32 %v3042_v31, %v2874_v24  ;;  %v5676_v31 = vld [vmem:[%s8547_s0 + $0x1cc] sm:$0xf]  ;;  %v8612_v24 = vld [vmem:[#allocation16_spill] sm:$0xff] }
 0x2f8   :  { %v3213_v4 = vpop.f32.mrf.mxu0  ;;  %v2707_v55 = vadd.f32 %v2706_v35, %v8612_v24  ;;  %v4426_v41 = vor.u32 %v5676_v31, %v4423_v8  ;;  %v8614_v35 = vld [vmem:[#allocation18_spill] sm:$0xff]  ;;  %v5689_v31 = vld [vmem:[%s8547_s0 + $0x230] sm:$0xf0] }
 0x2f9   :  { %v7652_v23 = vadd.f32 %v3211_v38, %v3043_v60  ;;  %v4430_v38 = vor.u32 %v5681_v52, %v4429_v18  ;;  %v4459_v18 = vld [vmem:[%s8547_s0 + $0x234] sm:$0xf0] }
 0x2fa   :  { %v4465_v52 = vld [vmem:[%s8547_s0 + $0x218] sm:$0xf] }
 0x2fb   :  { %8611 = vst [vmem:[#allocation14_spill] sm:$0xff] %v7652_v23 }
 0x2fc   :  { %v2875_v34 = vpop.f32.mrf.mxu2 }
 0x2fd   :  { %v2876_v46 = vadd.f32 %v2875_v34, %v2707_v55  ;;  %v3044_v53 = vpop.f32.mrf.mxu3 }
 0x2fe   :  { %v2709_v5 = vpop.f32.mrf.mxu1 }
 0x2ff   :  { %v3045_v7 = vadd.f32 %v3044_v53, %v2876_v46  ;;  %v2710_v60 = vadd.f32 %v2709_v5, %v8614_v35  ;;  %v5690_v46 = vld [vmem:[%s8547_s0 + $0x238] sm:$0xf0]  ;;  %v4454_v5 = vor.u32 %v5684_v40, %v4451_v32  ;;  %v5693_v32 = vld [vmem:[%s8547_s0 + $0x254] sm:$0xf] }
 0x300   :  { %v3216_v58 = vpop.f32.mrf.mxu0 }
 0x301   :  { %3264 = vmatmul.bf16.gmra.mxu1 %v4418_v2  ;;  %3433 = vmatmul.bf16.gmra.mxu2 %v4422_v59  ;;  %v7673_v16 = vadd.f32 %v3213_v4, %v3045_v7 }
 0x302   :  { %3602 = vmatmul.bf16.gmra.mxu3 %v4426_v41  ;;  %v4458_v41 = vor.u32 %v5689_v31, %v4457_v63  ;;  %v4487_v63 = vld [vmem:[%s8547_s0 + $0x274] sm:$0xf0] }
 0x303   :  { %8613 = vst [vmem:[#allocation16_spill] sm:$0xff] %v7673_v16  ;;  %3771 = vmatmul.bf16.gmra.mxu0 %v4430_v38  ;;  %v4493_v31 = vld [vmem:[%s8547_s0 + $0x258] sm:$0xf] }
 0x304   :  { %v2878_v24 = vpop.f32.mrf.mxu2 }
 0x305   :  { %v2879_v23 = vadd.f32 %v2878_v24, %v2710_v60  ;;  %v3047_v54 = vpop.f32.mrf.mxu3 }
 0x306   :  { %v2711_v55 = vpop.f32.mrf.mxu1 }
 0x307   :  { %v3048_v34 = vadd.f32 %v3047_v54, %v2879_v23  ;;  %v5685_v54 = vld [vmem:[%s8547_s0 + $0x214] sm:$0xf] }
 0x308   :  { %v3218_v43 = vpop.f32.mrf.mxu0  ;;  %v8616_v23 = vld [vmem:[#allocation20_spill] sm:$0xff]  ;;  %v4462_v7 = vor.u32 %v5685_v54, %v4459_v18  ;;  %v5698_v54 = vld [vmem:[%s8547_s0 + $0x278] sm:$0xf0] }
 0x309   :  { %v7682_v4 = vadd.f32 %v3216_v58, %v3048_v34  ;;  %v2712_v8 = vadd.f32 %v2711_v55, %v8616_v23  ;;  %v4466_v58 = vor.u32 %v5690_v46, %v4465_v52  ;;  %v8618_v55 = vld [vmem:[#allocation22_spill] sm:$0xff] }
 0x30a   :  { %v4495_v52 = vld [vmem:[%s8547_s0 + $0x27c] sm:$0xf0] }
 0x30b   :  { %8615 = vst [vmem:[#allocation18_spill] sm:$0xff] %v7682_v4  ;;  %v4501_v46 = vld [vmem:[%s8547_s0 + $0x260] sm:$0xf] }
 0x30c   :  { %v2880_v53 = vpop.f32.mrf.mxu2 }
 0x30d   :  { %v2881_v2 = vadd.f32 %v2880_v53, %v2712_v8  ;;  %v3049_v59 = vpop.f32.mrf.mxu3 }
 0x30e   :  { %v2714_v38 = vpop.f32.mrf.mxu1 }
 0x30f   :  { %v3050_v35 = vadd.f32 %v3049_v59, %v2881_v2  ;;  %v2715_v34 = vadd.f32 %v2714_v38, %v8618_v55  ;;  %v5699_v2 = vld [vmem:[%s8547_s0 + $0x280] sm:$0xf0]  ;;  %v4490_v38 = vor.u32 %v5693_v32, %v4487_v63 }
 0x310   :  { %v3221_v60 = vpop.f32.mrf.mxu0 }
 0x311   :  { %3269 = vmatmul.bf16.gmra.mxu1 %v4454_v5  ;;  %3438 = vmatmul.bf16.gmra.mxu2 %v4458_v41  ;;  %v7703_v24 = vadd.f32 %v3218_v43, %v3050_v35 }
 0x312   :  { %3607 = vmatmul.bf16.gmra.mxu3 %v4462_v7  ;;  %v4494_v7 = vor.u32 %v5698_v54, %v4493_v31  ;;  %v5702_v31 = vld [vmem:[%s8547_s0 + $0x29c] sm:$0xf]  ;;  %v4529_v54 = vld [vmem:[%s8547_s0 + $0x2a0] sm:$0xf] }
 0x313   :  { %8617 = vst [vmem:[#allocation20_spill] sm:$0xff] %v7703_v24  ;;  %3776 = vmatmul.bf16.gmra.mxu0 %v4466_v58 }
 0x314   :  { %v2883_v23 = vpop.f32.mrf.mxu2 }
 0x315   :  { %v2884_v4 = vadd.f32 %v2883_v23, %v2715_v34  ;;  %v3052_v16 = vpop.f32.mrf.mxu3 }
 0x316   :  { %v2716_v8 = vpop.f32.mrf.mxu1 }
 0x317   :  { %v3053_v53 = vadd.f32 %v3052_v16, %v2884_v4  ;;  %v5694_v16 = vld [vmem:[%s8547_s0 + $0x25c] sm:$0xf]  ;;  %v8620_v4 = vld [vmem:[#allocation24_spill] sm:$0xff] }
 0x318   :  { %v3223_v40 = vpop.f32.mrf.mxu0  ;;  %v2717_v18 = vadd.f32 %v2716_v8, %v8620_v4  ;;  %v4498_v35 = vor.u32 %v5694_v16, %v4495_v52  ;;  %v8621_v8 = vld [vmem:[#allocation25_spill] sm:$0xff]  ;;  %v5707_v16 = vld [vmem:[%s8547_s0 + $0x2c0] sm:$0xf0]  ;;  %v4531_v52 = vld [vmem:[%s8547_s0 + $0x2c4] sm:$0xf0] }
 0x319   :  { %v7712_v43 = vadd.f32 %v3221_v60, %v3053_v53  ;;  %v4502_v60 = vor.u32 %v5699_v2, %v4501_v46  ;;  %v4537_v46 = vld [vmem:[%s8547_s0 + $0x2a8] sm:$0xf]  ;;  %v5708_v2 = vld [vmem:[%s8547_s0 + $0x2c8] sm:$0xf0] }
 0x31b   :  { %8619 = vst [vmem:[#allocation22_spill] sm:$0xff] %v7712_v43 }
 0x31c   :  { %v2885_v59 = vpop.f32.mrf.mxu2 }
 0x31d   :  { %v2886_v5 = vadd.f32 %v2885_v59, %v2717_v18  ;;  %v3054_v41 = vpop.f32.mrf.mxu3 }
 0x31e   :  { %v3235_v58 = vpop.f32.mrf.mxu1 }
 0x31f   :  { %v3055_v55 = vadd.f32 %v3054_v41, %v2886_v5  ;;  %v3236_v53 = vadd.f32 %v3235_v58, %v8621_v8  ;;  %v4530_v58 = vor.u32 %v5707_v16, %v4529_v54 }
 0x320   :  { %v3742_v34 = vpop.f32.mrf.mxu0 }
 0x321   :  { %3274 = vmatmul.bf16.gmra.mxu1 %v4490_v38  ;;  %3443 = vmatmul.bf16.gmra.mxu2 %v4494_v7  ;;  %v7733_v23 = vadd.f32 %v3223_v40, %v3055_v55  ;;  %v4523_v40 = vld [vmem:[%s8547_s0 + $0x2bc] sm:$0xf0] }
 0x322   :  { %3612 = vmatmul.bf16.gmra.mxu3 %v4498_v35  ;;  %v4526_v7 = vor.u32 %v5702_v31, %v4523_v40 }
 0x323   :  { %3781 = vmatmul.bf16.gmra.mxu0 %v4502_v60 }
 0x324   :  { %v3404_v4 = vpop.f32.mrf.mxu2 }
 0x325   :  { %v3405_v43 = vadd.f32 %v3404_v4, %v3236_v53  ;;  %v3573_v24 = vpop.f32.mrf.mxu3 }
 0x326   :  { %v3237_v18 = vpop.f32.mrf.mxu1 }
 0x327   :  { %v3574_v59 = vadd.f32 %v3573_v24, %v3405_v43  ;;  %v5703_v24 = vld [vmem:[%s8547_s0 + $0x2a4] sm:$0xf]  ;;  %v3238_v43 = vadd.f32 %v3237_v18, %v6743_v30  ;;  %v4538_v30 = vor.u32 %v5708_v2, %v4537_v46  ;;  %v4559_v2 = vld [vmem:[%s8547_s0 + $0x304] sm:$0xf0] }
 0x328   :  { %v3744_v32 = vpop.f32.mrf.mxu0  ;;  %v4534_v60 = vor.u32 %v5703_v24, %v4531_v52  ;;  %v5711_v46 = vld [vmem:[%s8547_s0 + $0x2e4] sm:$0xf] }
 0x329   :  { %v3743_v63 = vadd.f32 %v3742_v34, %v3574_v59 }
 0x32b   :  { %3902 = vst [vmem:[%s8548_s2] sm:$0xff] %v3743_v63  ;;  %v4035_v53 = vmul.f32 %v3743_v63, %v3743_v63 }
 0x32c   :  { %v3406_v5 = vpop.f32.mrf.mxu2 }
 0x32d   :  { %v3407_v41 = vadd.f32 %v3406_v5, %v3238_v43  ;;  %v3575_v38 = vpop.f32.mrf.mxu3  ;;  %v5712_v5 = vld [vmem:[%s8547_s0 + $0x2ec] sm:$0xf] }
 0x32e   :  { %v3240_v35 = vpop.f32.mrf.mxu1 }
 0x32f   :  { %v3576_v55 = vadd.f32 %v3575_v38, %v3407_v41  ;;  %v3241_v59 = vadd.f32 %v3240_v35, %v6752_v15  ;;  %v4565_v15 = vld [vmem:[%s8547_s0 + $0x2e8] sm:$0xf]  ;;  %v4567_v41 = vld [vmem:[%s8547_s0 + $0x30c] sm:$0xf0] }
 0x330   :  { %v3747_v34 = vpop.f32.mrf.mxu0  ;;  %v4573_v35 = vld [vmem:[%s8547_s0 + $0x2f0] sm:$0xf] }
 0x331   :  { %v3745_v8 = vadd.f32 %v3744_v32, %v3576_v55  ;;  %3279 = vmatmul.bf16.gmra.mxu1 %v4526_v7  ;;  %3448 = vmatmul.bf16.gmra.mxu2 %v4530_v58 }
 0x332   :  { %3617 = vmatmul.bf16.gmra.mxu3 %v4534_v60  ;;  %v5717_v60 = vld [vmem:[%s8547_s0 + $0x310] sm:$0xf0] }
 0x333   :  { %3786 = vmatmul.bf16.gmra.mxu0 %v4538_v30  ;;  %3903 = vst [vmem:[%s8548_s2 + $0x8] sm:$0xff] %v3745_v8  ;;  %v3966_v4 = vadd.f32 %v3745_v8, %v3743_v63  ;;  %v4036_v18 = vmul.f32 %v3745_v8, %v3745_v8  ;;  %v5716_v63 = vld [vmem:[%s8547_s0 + $0x308] sm:$0xf0] }
 0x334   :  { %v3409_v31 = vpop.f32.mrf.mxu2 }
 0x335   :  { %v4099_v40 = vadd.f32 %v4036_v18, %v4035_v53  ;;  %v3410_v54 = vadd.f32 %v3409_v31, %v3241_v59  ;;  %v3578_v16 = vpop.f32.mrf.mxu3  ;;  %v4562_v53 = vor.u32 %v5711_v46, %v4559_v2  ;;  %v4566_v18 = vor.u32 %v5716_v63, %v4565_v15 }
 0x336   :  { %v3242_v24 = vpop.f32.mrf.mxu1  ;;  %v4570_v31 = vor.u32 %v5712_v5, %v4567_v41 }
 0x337   :  { %v3579_v43 = vadd.f32 %v3578_v16, %v3410_v54  ;;  %v3243_v58 = vadd.f32 %v3242_v24, %v6773_v10 }
 0x338   :  { %v3749_v32 = vpop.f32.mrf.mxu0 }
 0x339   :  { %v3748_v52 = vadd.f32 %v3747_v34, %v3579_v43 }
 0x33b   :  { %3904 = vst [vmem:[%s8548_s2 + $0x10] sm:$0xff] %v3748_v52  ;;  %v3967_v38 = vadd.f32 %v3966_v4, %v3748_v52  ;;  %v4037_v7 = vmul.f32 %v3748_v52, %v3748_v52  ;;  %v4574_v4 = vor.u32 %v5717_v60, %v4573_v35  ;;  %v5721_v35 = vld [vmem:[%s8547_s0 + $0x334] sm:$0xf]  ;;  %v4603_v60 = vld [vmem:[%s8547_s0 + $0x354] sm:$0xf0] }
 0x33c   :  { %v3411_v30 = vpop.f32.mrf.mxu2 }
 0x33d   :  { %v4100_v55 = vadd.f32 %v4099_v40, %v4037_v7  ;;  %v3412_v34 = vadd.f32 %v3411_v30, %v3243_v58  ;;  %v3580_v8 = vpop.f32.mrf.mxu3  ;;  %v5720_v7 = vld [vmem:[%s8547_s0 + $0x32c] sm:$0xf]  ;;  %v4595_v58 = vld [vmem:[%s8547_s0 + $0x34c] sm:$0xf0] }
 0x33e   :  { %v3245_v59 = vpop.f32.mrf.mxu1 }
 0x33f   :  { %v3581_v54 = vadd.f32 %v3580_v8, %v3412_v34  ;;  %v3246_v43 = vadd.f32 %v3245_v59, %v6794_v47  ;;  %v4601_v47 = vld [vmem:[%s8547_s0 + $0x330] sm:$0xf]  ;;  %v4609_v8 = vld [vmem:[%s8547_s0 + $0x338] sm:$0xf] }
 0x340   :  { %v3752_v16 = vpop.f32.mrf.mxu0 }
 0x341   :  { %v3750_v10 = vadd.f32 %v3749_v32, %v3581_v54  ;;  %3284 = vmatmul.bf16.gmra.mxu1 %v4562_v53  ;;  %3453 = vmatmul.bf16.gmra.mxu2 %v4566_v18  ;;  %v5726_v53 = vld [vmem:[%s8547_s0 + $0x358] sm:$0xf0]  ;;  %v4598_v54 = vor.u32 %v5720_v7, %v4595_v58 }
 0x342   :  { %3622 = vmatmul.bf16.gmra.mxu3 %v4570_v31 }
 0x343   :  { %3791 = vmatmul.bf16.gmra.mxu0 %v4574_v4  ;;  %3905 = vst [vmem:[%s8548_s2 + $0x18] sm:$0xff] %v3750_v10  ;;  %v3968_v24 = vadd.f32 %v3967_v38, %v3750_v10  ;;  %v4038_v40 = vmul.f32 %v3750_v10, %v3750_v10  ;;  %v5725_v38 = vld [vmem:[%s8547_s0 + $0x350] sm:$0xf0] }
 0x344   :  { %v3414_v52 = vpop.f32.mrf.mxu2 }
 0x345   :  { %v4101_v46 = vadd.f32 %v4100_v55, %v4038_v40  ;;  %v3415_v2 = vadd.f32 %v3414_v52, %v3246_v43  ;;  %v3583_v15 = vpop.f32.mrf.mxu3  ;;  %v4606_v40 = vor.u32 %v5721_v35, %v4603_v60  ;;  %v5729_v35 = vld [vmem:[%s8547_s0 + $0x374] sm:$0xf]  ;;  %v4631_v60 = vld [vmem:[%s8547_s0 + $0x394] sm:$0xf0] }
 0x346   :  { %v3247_v63 = vpop.f32.mrf.mxu1 }
 0x347   :  { %v3584_v5 = vadd.f32 %v3583_v15, %v3415_v2  ;;  %v3248_v34 = vadd.f32 %v3247_v63, %v6815_v25 }
 0x348   :  { %v3754_v41 = vpop.f32.mrf.mxu0 }
 0x349   :  { %v3753_v32 = vadd.f32 %v3752_v16, %v3584_v5  ;;  %v4602_v16 = vor.u32 %v5725_v38, %v4601_v47 }
 0x34b   :  { %3906 = vst [vmem:[%s8548_s2 + $0x20] sm:$0xff] %v3753_v32  ;;  %v3969_v30 = vadd.f32 %v3968_v24, %v3753_v32  ;;  %v4039_v55 = vmul.f32 %v3753_v32, %v3753_v32  ;;  %v4610_v24 = vor.u32 %v5726_v53, %v4609_v8 }
 0x34c   :  { %v3416_v18 = vpop.f32.mrf.mxu2 }
 0x34d   :  { %v4102_v59 = vadd.f32 %v4101_v46, %v4039_v55  ;;  %v3417_v31 = vadd.f32 %v3416_v18, %v3248_v34  ;;  %v3585_v4 = vpop.f32.mrf.mxu3  ;;  %v5730_v55 = vld [vmem:[%s8547_s0 + $0x37c] sm:$0xf]  ;;  %v4639_v34 = vld [vmem:[%s8547_s0 + $0x39c] sm:$0xf0] }
 0x34e   :  { %v3250_v10 = vpop.f32.mrf.mxu1 }
 0x34f   :  { %v3586_v43 = vadd.f32 %v3585_v4, %v3417_v31  ;;  %v3251_v15 = vadd.f32 %v3250_v10, %v6824_v0  ;;  %v4637_v0 = vld [vmem:[%s8547_s0 + $0x378] sm:$0xf]  ;;  %v5735_v31 = vld [vmem:[%s8547_s0 + $0x3a0] sm:$0xf0] }
 0x350   :  { %v3757_v52 = vpop.f32.mrf.mxu0 }
 0x351   :  { %v3755_v25 = vadd.f32 %v3754_v41, %v3586_v43  ;;  %3289 = vmatmul.bf16.gmra.mxu1 %v4598_v54  ;;  %3458 = vmatmul.bf16.gmra.mxu2 %v4602_v16 }
 0x352   :  { %3627 = vmatmul.bf16.gmra.mxu3 %v4606_v40  ;;  %v4634_v40 = vor.u32 %v5729_v35, %v4631_v60 }
 0x353   :  { %3796 = vmatmul.bf16.gmra.mxu0 %v4610_v24  ;;  %3907 = vst [vmem:[%s8548_s2 + $0x28] sm:$0xff] %v3755_v25  ;;  %v3970_v2 = vadd.f32 %v3969_v30, %v3755_v25  ;;  %v4040_v46 = vmul.f32 %v3755_v25, %v3755_v25  ;;  %v5734_v30 = vld [vmem:[%s8547_s0 + $0x398] sm:$0xf0] }
 0x354   :  { %v3419_v63 = vpop.f32.mrf.mxu2  ;;  %v4638_v24 = vor.u32 %v5734_v30, %v4637_v0  ;;  %v5738_v0 = vld [vmem:[%s8547_s0 + $0x3bc] sm:$0xf]  ;;  %v4667_v30 = vld [vmem:[%s8547_s0 + $0x3dc] sm:$0xf0] }
 0x355   :  { %v4103_v5 = vadd.f32 %v4102_v59, %v4040_v46  ;;  %v3420_v32 = vadd.f32 %v3419_v63, %v3251_v15  ;;  %v3588_v7 = vpop.f32.mrf.mxu3  ;;  %v4645_v59 = vld [vmem:[%s8547_s0 + $0x380] sm:$0xf] }
 0x356   :  { %v3252_v58 = vpop.f32.mrf.mxu1  ;;  %v4646_v25 = vor.u32 %v5735_v31, %v4645_v59  ;;  %v4681_v31 = vld [vmem:[%s8547_s0 + $0x3c8] sm:$0xf] }
 0x357   :  { %v3589_v47 = vadd.f32 %v3588_v7, %v3420_v32  ;;  %v3253_v18 = vadd.f32 %v3252_v58, %v6845_v6 }
 0x358   :  { %v3759_v38 = vpop.f32.mrf.mxu0 }
 0x359   :  { %v3758_v41 = vadd.f32 %v3757_v52, %v3589_v47  ;;  %v4642_v52 = vor.u32 %v5730_v55, %v4639_v34  ;;  %v5743_v55 = vld [vmem:[%s8547_s0 + $0x3e0] sm:$0xf0] }
 0x35a   :  { %v5739_v34 = vld [vmem:[%s8547_s0 + $0x3c4] sm:$0xf] }
 0x35b   :  { %3908 = vst [vmem:[%s8548_s2 + $0x30] sm:$0xff] %v3758_v41  ;;  %v3971_v8 = vadd.f32 %v3970_v2, %v3758_v41  ;;  %v4041_v53 = vmul.f32 %v3758_v41, %v3758_v41 }
 0x35c   :  { %v3421_v4 = vpop.f32.mrf.mxu2 }
 0x35d   :  { %v4104_v54 = vadd.f32 %v4103_v5, %v4041_v53  ;;  %v3422_v16 = vadd.f32 %v3421_v4, %v3253_v18  ;;  %v3590_v10 = vpop.f32.mrf.mxu3  ;;  %v5744_v4 = vld [vmem:[%s8547_s0 + $0x3e8] sm:$0xf0] }
 0x35e   :  { %v3255_v43 = vpop.f32.mrf.mxu1 }
 0x35f   :  { %v3591_v2 = vadd.f32 %v3590_v10, %v3422_v16  ;;  %v3256_v5 = vadd.f32 %v3255_v43, %v6854_v1  ;;  %v4673_v1 = vld [vmem:[%s8547_s0 + $0x3c0] sm:$0xf] }
 0x360   :  { %v3762_v46 = vpop.f32.mrf.mxu0  ;;  %v4674_v43 = vor.u32 %v5743_v55, %v4673_v1  ;;  %v5752_v1 = vld [vmem:[%s8547_s0 + $0x428] sm:$0xf0] }
 0x361   :  { %v3760_v6 = vadd.f32 %v3759_v38, %v3591_v2  ;;  %3294 = vmatmul.bf16.gmra.mxu1 %v4634_v40  ;;  %3463 = vmatmul.bf16.gmra.mxu2 %v4638_v24  ;;  %v4670_v24 = vor.u32 %v5738_v0, %v4667_v30  ;;  %v4682_v2 = vor.u32 %v5744_v4, %v4681_v31  ;;  %v5747_v0 = vld [vmem:[%s8547_s0 + $0x404] sm:$0xf]  ;;  %v4703_v30 = vld [vmem:[%s8547_s0 + $0x424] sm:$0xf0]  ;;  %v5748_v55 = vld [vmem:[%s8547_s0 + $0x40c] sm:$0xf] }
 0x362   :  { %3632 = vmatmul.bf16.gmra.mxu3 %v4642_v52  ;;  %v5753_v31 = vld [vmem:[%s8547_s0 + $0x430] sm:$0xf0] }
 0x363   :  { %3801 = vmatmul.bf16.gmra.mxu0 %v4646_v25  ;;  %3909 = vst [vmem:[%s8548_s2 + $0x38] sm:$0xff] %v3760_v6  ;;  %v3972_v15 = vadd.f32 %v3971_v8, %v3760_v6  ;;  %v4042_v63 = vmul.f32 %v3760_v6, %v3760_v6  ;;  %v4675_v8 = vld [vmem:[%s8547_s0 + $0x3e4] sm:$0xf0] }
 0x364   :  { %v3424_v32 = vpop.f32.mrf.mxu2  ;;  %v4678_v25 = vor.u32 %v5739_v34, %v4675_v8  ;;  %v4711_v34 = vld [vmem:[%s8547_s0 + $0x42c] sm:$0xf0] }
 0x365   :  { %v4105_v7 = vadd.f32 %v4104_v54, %v4042_v63  ;;  %v3425_v58 = vadd.f32 %v3424_v32, %v3256_v5  ;;  %v3593_v47 = vpop.f32.mrf.mxu3 }
 0x366   :  { %v3257_v41 = vpop.f32.mrf.mxu1 }
 0x367   :  { %v3594_v35 = vadd.f32 %v3593_v47, %v3425_v58  ;;  %v3258_v59 = vadd.f32 %v3257_v41, %v6875_v20 }
 0x368   :  { %v3764_v60 = vpop.f32.mrf.mxu0 }
 0x369   :  { %v3763_v38 = vadd.f32 %v3762_v46, %v3594_v35 }
 0x36b   :  { %3910 = vst [vmem:[%s8548_s2 + $0x40] sm:$0xff] %v3763_v38  ;;  %v3973_v53 = vadd.f32 %v3972_v15, %v3763_v38  ;;  %v4043_v18 = vmul.f32 %v3763_v38, %v3763_v38 }
 0x36c   :  { %v3426_v54 = vpop.f32.mrf.mxu2 }
 0x36d   :  { %v4106_v16 = vadd.f32 %v4105_v7, %v4043_v18  ;;  %v3427_v10 = vadd.f32 %v3426_v54, %v3258_v59  ;;  %v3595_v40 = vpop.f32.mrf.mxu3  ;;  %v4717_v59 = vld [vmem:[%s8547_s0 + $0x410] sm:$0xf] }
 0x36e   :  { %v3260_v52 = vpop.f32.mrf.mxu1 }
 0x36f   :  { %v3596_v46 = vadd.f32 %v3595_v40, %v3427_v10  ;;  %v3261_v5 = vadd.f32 %v3260_v52, %v6884_v27  ;;  %v4709_v27 = vld [vmem:[%s8547_s0 + $0x408] sm:$0xf]  ;;  %v4706_v40 = vor.u32 %v5747_v0, %v4703_v30  ;;  %v4714_v52 = vor.u32 %v5748_v55, %v4711_v34  ;;  %v5761_v0 = vld [vmem:[%s8547_s0 + $0x470] sm:$0xf0] }
 0x370   :  { %v3767_v6 = vpop.f32.mrf.mxu0  ;;  %v5757_v30 = vld [vmem:[%s8547_s0 + $0x454] sm:$0xf] }
 0x371   :  { %v3765_v20 = vadd.f32 %v3764_v60, %v3596_v46  ;;  %3299 = vmatmul.bf16.gmra.mxu1 %v4670_v24  ;;  %3468 = vmatmul.bf16.gmra.mxu2 %v4674_v43  ;;  %v4710_v24 = vor.u32 %v5752_v1, %v4709_v27  ;;  %v4747_v27 = vld [vmem:[%s8547_s0 + $0x474] sm:$0xf0] }
 0x372   :  { %3637 = vmatmul.bf16.gmra.mxu3 %v4678_v25  ;;  %v4718_v25 = vor.u32 %v5753_v31, %v4717_v59 }
 0x373   :  { %3806 = vmatmul.bf16.gmra.mxu0 %v4682_v2  ;;  %3911 = vst [vmem:[%s8548_s2 + $0x48] sm:$0xff] %v3765_v20  ;;  %v3974_v15 = vadd.f32 %v3973_v53, %v3765_v20  ;;  %v4044_v63 = vmul.f32 %v3765_v20, %v3765_v20 }
 0x374   :  { %v3429_v32 = vpop.f32.mrf.mxu2 }
 0x375   :  { %v4107_v7 = vadd.f32 %v4106_v16, %v4044_v63  ;;  %v3430_v58 = vadd.f32 %v3429_v32, %v3261_v5  ;;  %v3598_v47 = vpop.f32.mrf.mxu3 }
 0x376   :  { %v3262_v41 = vpop.f32.mrf.mxu1 }
 0x377   :  { %v3599_v35 = vadd.f32 %v3598_v47, %v3430_v58  ;;  %v3263_v18 = vadd.f32 %v3262_v41, %v6905_v51 }
 0x378   :  { %v3769_v38 = vpop.f32.mrf.mxu0 }
 0x379   :  { %v3768_v60 = vadd.f32 %v3767_v6, %v3599_v35 }
 0x37b   :  { %3912 = vst [vmem:[%s8548_s2 + $0x50] sm:$0xff] %v3768_v60  ;;  %v3975_v8 = vadd.f32 %v3974_v15, %v3768_v60  ;;  %v4045_v53 = vmul.f32 %v3768_v60, %v3768_v60  ;;  %v4739_v60 = vld [vmem:[%s8547_s0 + $0x46c] sm:$0xf0] }
 0x37c   :  { %v3431_v4 = vpop.f32.mrf.mxu2 }
 0x37d   :  { %v4108_v54 = vadd.f32 %v4107_v7, %v4045_v53  ;;  %v3432_v16 = vadd.f32 %v3431_v4, %v3263_v18  ;;  %v3600_v10 = vpop.f32.mrf.mxu3  ;;  %v5762_v53 = vld [vmem:[%s8547_s0 + $0x478] sm:$0xf0] }
 0x37e   :  { %v3265_v43 = vpop.f32.mrf.mxu1 }
 0x37f   :  { %v3601_v2 = vadd.f32 %v3600_v10, %v3432_v16  ;;  %v3266_v15 = vadd.f32 %v3265_v43, %v6926_v29  ;;  %v4745_v29 = vld [vmem:[%s8547_s0 + $0x450] sm:$0xf] }
 0x380   :  { %v3772_v46 = vpop.f32.mrf.mxu0  ;;  %v4746_v16 = vor.u32 %v5761_v0, %v4745_v29 }
 0x381   :  { %v3770_v51 = vadd.f32 %v3769_v38, %v3601_v2  ;;  %3304 = vmatmul.bf16.gmra.mxu1 %v4706_v40  ;;  %3473 = vmatmul.bf16.gmra.mxu2 %v4710_v24  ;;  %v5756_v38 = vld [vmem:[%s8547_s0 + $0x44c] sm:$0xf]  ;;  %v4750_v40 = vor.u32 %v5757_v30, %v4747_v27  ;;  %v4789_v30 = vld [vmem:[%s8547_s0 + $0x4a0] sm:$0xf]  ;;  %v5771_v27 = vld [vmem:[%s8547_s0 + $0x4c0] sm:$0xf0] }
 0x382   :  { %3642 = vmatmul.bf16.gmra.mxu3 %v4714_v52 }
 0x383   :  { %3811 = vmatmul.bf16.gmra.mxu0 %v4718_v25  ;;  %3913 = vst [vmem:[%s8548_s2 + $0x58] sm:$0xff] %v3770_v51  ;;  %v3976_v6 = vadd.f32 %v3975_v8, %v3770_v51  ;;  %v4046_v20 = vmul.f32 %v3770_v51, %v3770_v51  ;;  %v4753_v8 = vld [vmem:[%s8547_s0 + $0x458] sm:$0xf] }
 0x384   :  { %v3434_v63 = vpop.f32.mrf.mxu2  ;;  %v4754_v24 = vor.u32 %v5762_v53, %v4753_v8 }
 0x385   :  { %v4109_v5 = vadd.f32 %v4108_v54, %v4046_v20  ;;  %v3435_v32 = vadd.f32 %v3434_v63, %v3266_v15  ;;  %v3603_v7 = vpop.f32.mrf.mxu3  ;;  %v4742_v54 = vor.u32 %v5756_v38, %v4739_v60  ;;  %v4783_v38 = vld [vmem:[%s8547_s0 + $0x4bc] sm:$0xf0] }
 0x386   :  { %v3267_v58 = vpop.f32.mrf.mxu1 }
 0x387   :  { %v3604_v47 = vadd.f32 %v3603_v7, %v3435_v32  ;;  %v3268_v34 = vadd.f32 %v3267_v58, %v6947_v61  ;;  %v5765_v58 = vld [vmem:[%s8547_s0 + $0x494] sm:$0xf] }
 0x388   :  { %v3774_v41 = vpop.f32.mrf.mxu0 }
 0x389   :  { %v3773_v35 = vadd.f32 %v3772_v46, %v3604_v47  ;;  %v4775_v47 = vld [vmem:[%s8547_s0 + $0x4b4] sm:$0xf0] }
 0x38a   :  { %v4778_v53 = vor.u32 %v5765_v58, %v4775_v47 }
 0x38b   :  { %3914 = vst [vmem:[%s8548_s2 + $0x60] sm:$0xff] %v3773_v35  ;;  %v3977_v1 = vadd.f32 %v3976_v6, %v3773_v35  ;;  %v4047_v55 = vmul.f32 %v3773_v35, %v3773_v35  ;;  %v5766_v35 = vld [vmem:[%s8547_s0 + $0x49c] sm:$0xf] }
 0x38c   :  { %v3436_v18 = vpop.f32.mrf.mxu2 }
 0x38d   :  { %v4110_v59 = vadd.f32 %v4109_v5, %v4047_v55  ;;  %v3437_v31 = vadd.f32 %v3436_v18, %v3268_v34  ;;  %v3605_v4 = vpop.f32.mrf.mxu3 }
 0x38e   :  { %v3270_v10 = vpop.f32.mrf.mxu1 }
 0x38f   :  { %v3606_v43 = vadd.f32 %v3605_v4, %v3437_v31  ;;  %v3271_v46 = vadd.f32 %v3270_v10, %v6956_v39  ;;  %v4781_v39 = vld [vmem:[%s8547_s0 + $0x498] sm:$0xf]  ;;  %v4786_v31 = vor.u32 %v5766_v35, %v4783_v38  ;;  %v4790_v4 = vor.u32 %v5771_v27, %v4789_v30 }
 0x390   :  { %v3777_v52 = vpop.f32.mrf.mxu0 }
 0x391   :  { %v3775_v61 = vadd.f32 %v3774_v41, %v3606_v43  ;;  %3309 = vmatmul.bf16.gmra.mxu1 %v4742_v54  ;;  %3478 = vmatmul.bf16.gmra.mxu2 %v4746_v16  ;;  %v5770_v41 = vld [vmem:[%s8547_s0 + $0x4b8] sm:$0xf0] }
 0x392   :  { %3647 = vmatmul.bf16.gmra.mxu3 %v4750_v40  ;;  %v4782_v18 = vor.u32 %v5770_v41, %v4781_v39  ;;  %v4825_v39 = vld [vmem:[%s8547_s0 + $0x4e8] sm:$0xf]  ;;  %v5780_v41 = vld [vmem:[%s8547_s0 + $0x508] sm:$0xf0] }
 0x393   :  { %3816 = vmatmul.bf16.gmra.mxu0 %v4754_v24  ;;  %3915 = vst [vmem:[%s8548_s2 + $0x68] sm:$0xff] %v3775_v61  ;;  %v3978_v25 = vadd.f32 %v3977_v1, %v3775_v61  ;;  %v4048_v2 = vmul.f32 %v3775_v61, %v3775_v61 }
 0x394   :  { %v3439_v51 = vpop.f32.mrf.mxu2 }
 0x395   :  { %v4111_v6 = vadd.f32 %v4110_v59, %v4048_v2  ;;  %v3440_v20 = vadd.f32 %v3439_v51, %v3271_v46  ;;  %v3608_v15 = vpop.f32.mrf.mxu3 }
 0x396   :  { %v3272_v63 = vpop.f32.mrf.mxu1 }
 0x397   :  { %v3609_v5 = vadd.f32 %v3608_v15, %v3440_v20  ;;  %v3273_v0 = vadd.f32 %v3272_v63, %v6977_v33  ;;  %v5774_v20 = vld [vmem:[%s8547_s0 + $0x4dc] sm:$0xf]  ;;  %v4811_v15 = vld [vmem:[%s8547_s0 + $0x4fc] sm:$0xf0]  ;;  %v5779_v63 = vld [vmem:[%s8547_s0 + $0x500] sm:$0xf0] }
 0x398   :  { %v3779_v32 = vpop.f32.mrf.mxu0 }
 0x399   :  { %v3778_v7 = vadd.f32 %v3777_v52, %v3609_v5  ;;  %v5775_v5 = vld [vmem:[%s8547_s0 + $0x4e4] sm:$0xf] }
 0x39b   :  { %3916 = vst [vmem:[%s8548_s2 + $0x70] sm:$0xff] %v3778_v7  ;;  %v3979_v60 = vadd.f32 %v3978_v25, %v3778_v7  ;;  %v4049_v29 = vmul.f32 %v3778_v7, %v3778_v7 }
 0x39c   :  { %v3441_v1 = vpop.f32.mrf.mxu2 }
 0x39d   :  { %v4112_v55 = vadd.f32 %v4111_v6, %v4049_v29  ;;  %v3442_v34 = vadd.f32 %v3441_v1, %v3273_v0  ;;  %v3610_v8 = vpop.f32.mrf.mxu3  ;;  %v4814_v0 = vor.u32 %v5774_v20, %v4811_v15  ;;  %v4861_v20 = vld [vmem:[%s8547_s0 + $0x530] sm:$0xf]  ;;  %v5789_v15 = vld [vmem:[%s8547_s0 + $0x550] sm:$0xf0] }
 0x39e   :  { %v3275_v59 = vpop.f32.mrf.mxu1 }
 0x39f   :  { %v3611_v54 = vadd.f32 %v3610_v8, %v3442_v34  ;;  %v3276_v24 = vadd.f32 %v3275_v59, %v6986_v21  ;;  %v4817_v21 = vld [vmem:[%s8547_s0 + $0x4e0] sm:$0xf] }
 0x3a0   :  { %v3782_v16 = vpop.f32.mrf.mxu0  ;;  %v4818_v30 = vor.u32 %v5779_v63, %v4817_v21 }
 0x3a1   :  { %v3780_v33 = vadd.f32 %v3779_v32, %v3611_v54  ;;  %3314 = vmatmul.bf16.gmra.mxu1 %v4778_v53  ;;  %3483 = vmatmul.bf16.gmra.mxu2 %v4782_v18  ;;  %v4819_v32 = vld [vmem:[%s8547_s0 + $0x504] sm:$0xf0] }
 0x3a2   :  { %3652 = vmatmul.bf16.gmra.mxu3 %v4786_v31  ;;  %v4822_v1 = vor.u32 %v5775_v5, %v4819_v32 }
 0x3a3   :  { %3821 = vmatmul.bf16.gmra.mxu0 %v4790_v4  ;;  %3917 = vst [vmem:[%s8548_s2 + $0x78] sm:$0xff] %v3780_v33  ;;  %v3980_v10 = vadd.f32 %v3979_v60, %v3780_v33  ;;  %v4050_v40 = vmul.f32 %v3780_v33, %v3780_v33 }
 0x3a4   :  { %v3444_v43 = vpop.f32.mrf.mxu2 }
 0x3a5   :  { %v4113_v52 = vadd.f32 %v4112_v55, %v4050_v40  ;;  %v3445_v61 = vadd.f32 %v3444_v43, %v3276_v24  ;;  %v3613_v25 = vpop.f32.mrf.mxu3  ;;  %v4826_v55 = vor.u32 %v5780_v41, %v4825_v39  ;;  %v5783_v43 = vld [vmem:[%s8547_s0 + $0x524] sm:$0xf]  ;;  %v4862_v41 = vor.u32 %v5789_v15, %v4861_v20 }
 0x3a6   :  { %v3277_v2 = vpop.f32.mrf.mxu1 }
 0x3a7   :  { %v3614_v46 = vadd.f32 %v3613_v25, %v3445_v61  ;;  %v3278_v47 = vadd.f32 %v3277_v2, %v7007_v11  ;;  %v5788_v61 = vld [vmem:[%s8547_s0 + $0x548] sm:$0xf0]  ;;  %v4855_v2 = vld [vmem:[%s8547_s0 + $0x54c] sm:$0xf0] }
 0x3a8   :  { %v3784_v51 = vpop.f32.mrf.mxu0  ;;  %v5784_v25 = vld [vmem:[%s8547_s0 + $0x52c] sm:$0xf] }
 0x3a9   :  { %v3783_v6 = vadd.f32 %v3782_v16, %v3614_v46  ;;  %v4858_v39 = vor.u32 %v5784_v25, %v4855_v2 }
 0x3ab   :  { %3918 = vst [vmem:[%s8548_s2 + $0x80] sm:$0xff] %v3783_v6  ;;  %v3981_v7 = vadd.f32 %v3980_v10, %v3783_v6  ;;  %v4051_v58 = vmul.f32 %v3783_v6, %v3783_v6 }
 0x3ac   :  { %v3446_v35 = vpop.f32.mrf.mxu2 }
 0x3ad   :  { %v4114_v38 = vadd.f32 %v4113_v52, %v4051_v58  ;;  %v3447_v60 = vadd.f32 %v3446_v35, %v3278_v47  ;;  %v3615_v29 = vpop.f32.mrf.mxu3  ;;  %v4847_v52 = vld [vmem:[%s8547_s0 + $0x544] sm:$0xf0] }
 0x3ae   :  { %v3280_v27 = vpop.f32.mrf.mxu1 }
 0x3af   :  { %v3616_v34 = vadd.f32 %v3615_v29, %v3447_v60  ;;  %v3281_v59 = vadd.f32 %v3280_v27, %v7016_v49  ;;  %v4853_v49 = vld [vmem:[%s8547_s0 + $0x528] sm:$0xf] }
 0x3b0   :  { %v3787_v8 = vpop.f32.mrf.mxu0  ;;  %v4854_v58 = vor.u32 %v5788_v61, %v4853_v49 }
 0x3b1   :  { %v3785_v11 = vadd.f32 %v3784_v51, %v3616_v34  ;;  %3319 = vmatmul.bf16.gmra.mxu1 %v4814_v0  ;;  %3488 = vmatmul.bf16.gmra.mxu2 %v4818_v30 }
 0x3b2   :  { %3657 = vmatmul.bf16.gmra.mxu3 %v4822_v1 }
 0x3b3   :  { %3826 = vmatmul.bf16.gmra.mxu0 %v4826_v55  ;;  %3919 = vst [vmem:[%s8548_s2 + $0x88] sm:$0xff] %v3785_v11  ;;  %v3982_v53 = vadd.f32 %v3981_v7, %v3785_v11  ;;  %v4052_v18 = vmul.f32 %v3785_v11, %v3785_v11  ;;  %v4850_v7 = vor.u32 %v5783_v43, %v4847_v52 }
 0x3b4   :  { %v3449_v31 = vpop.f32.mrf.mxu2 }
 0x3b5   :  { %v4115_v4 = vadd.f32 %v4114_v38, %v4052_v18  ;;  %v3450_v54 = vadd.f32 %v3449_v31, %v3281_v59  ;;  %v3618_v16 = vpop.f32.mrf.mxu3  ;;  %v5792_v18 = vld [vmem:[%s8547_s0 + $0x56c] sm:$0xf]  ;;  %v4883_v59 = vld [vmem:[%s8547_s0 + $0x58c] sm:$0xf0]  ;;  %v5797_v31 = vld [vmem:[%s8547_s0 + $0x590] sm:$0xf0] }
 0x3b6   :  { %v3282_v33 = vpop.f32.mrf.mxu1  ;;  %v4886_v25 = vor.u32 %v5792_v18, %v4883_v59 }
 0x3b7   :  { %v3619_v10 = vadd.f32 %v3618_v16, %v3450_v54  ;;  %v3283_v6 = vadd.f32 %v3282_v33, %v7037_v45  ;;  %v4891_v54 = vld [vmem:[%s8547_s0 + $0x594] sm:$0xf0] }
 0x3b8   :  { %v3789_v40 = vpop.f32.mrf.mxu0 }
 0x3b9   :  { %v3788_v24 = vadd.f32 %v3787_v8, %v3619_v10 }
 0x3bb   :  { %3920 = vst [vmem:[%s8548_s2 + $0x90] sm:$0xff] %v3788_v24  ;;  %v3983_v46 = vadd.f32 %v3982_v53, %v3788_v24  ;;  %v4053_v51 = vmul.f32 %v3788_v24, %v3788_v24  ;;  %v5798_v24 = vld [vmem:[%s8547_s0 + $0x598] sm:$0xf0] }
 0x3bc   :  { %v3451_v21 = vpop.f32.mrf.mxu2 }
 0x3bd   :  { %v4116_v63 = vadd.f32 %v4115_v4, %v4053_v51  ;;  %v3452_v5 = vadd.f32 %v3451_v21, %v3283_v6  ;;  %v3620_v32 = vpop.f32.mrf.mxu3  ;;  %v5793_v4 = vld [vmem:[%s8547_s0 + $0x574] sm:$0xf] }
 0x3be   :  { %v3285_v47 = vpop.f32.mrf.mxu1  ;;  %v4894_v51 = vor.u32 %v5793_v4, %v4891_v54 }
 0x3bf   :  { %v3621_v35 = vadd.f32 %v3620_v32, %v3452_v5  ;;  %v3286_v0 = vadd.f32 %v3285_v47, %v7058_v57  ;;  %v4889_v57 = vld [vmem:[%s8547_s0 + $0x570] sm:$0xf] }
 0x3c0   :  { %v3792_v38 = vpop.f32.mrf.mxu0  ;;  %v4890_v2 = vor.u32 %v5797_v31, %v4889_v57 }
 0x3c1   :  { %v3790_v45 = vadd.f32 %v3789_v40, %v3621_v35  ;;  %3324 = vmatmul.bf16.gmra.mxu1 %v4850_v7  ;;  %3493 = vmatmul.bf16.gmra.mxu2 %v4854_v58  ;;  %v4897_v40 = vld [vmem:[%s8547_s0 + $0x578] sm:$0xf] }
 0x3c2   :  { %3662 = vmatmul.bf16.gmra.mxu3 %v4858_v39  ;;  %v4898_v6 = vor.u32 %v5798_v24, %v4897_v40 }
 0x3c3   :  { %3831 = vmatmul.bf16.gmra.mxu0 %v4862_v41  ;;  %3921 = vst [vmem:[%s8548_s2 + $0x98] sm:$0xff] %v3790_v45  ;;  %v3984_v60 = vadd.f32 %v3983_v46, %v3790_v45  ;;  %v4054_v29 = vmul.f32 %v3790_v45, %v3790_v45  ;;  %v5801_v45 = vld [vmem:[%s8547_s0 + $0x5b4] sm:$0xf] }
 0x3c4   :  { %v3454_v30 = vpop.f32.mrf.mxu2 }
 0x3c5   :  { %v4117_v27 = vadd.f32 %v4116_v63, %v4054_v29  ;;  %v3455_v1 = vadd.f32 %v3454_v30, %v3286_v0  ;;  %v3623_v55 = vpop.f32.mrf.mxu3  ;;  %v5806_v29 = vld [vmem:[%s8547_s0 + $0x5d8] sm:$0xf0]  ;;  %v4927_v30 = vld [vmem:[%s8547_s0 + $0x5dc] sm:$0xf0] }
 0x3c6   :  { %v3287_v34 = vpop.f32.mrf.mxu1  ;;  %v5802_v0 = vld [vmem:[%s8547_s0 + $0x5bc] sm:$0xf] }
 0x3c7   :  { %v3624_v8 = vadd.f32 %v3623_v55, %v3455_v1  ;;  %v3288_v10 = vadd.f32 %v3287_v34, %v7079_v22  ;;  %v4933_v34 = vld [vmem:[%s8547_s0 + $0x5c0] sm:$0xf]  ;;  %v4930_v54 = vor.u32 %v5802_v0, %v4927_v30 }
 0x3c8   :  { %v3794_v11 = vpop.f32.mrf.mxu0 }
 0x3c9   :  { %v3793_v53 = vadd.f32 %v3792_v38, %v3624_v8  ;;  %v5807_v8 = vld [vmem:[%s8547_s0 + $0x5e0] sm:$0xf0] }
 0x3cb   :  { %3922 = vst [vmem:[%s8548_s2 + $0xa0] sm:$0xff] %v3793_v53  ;;  %v3985_v16 = vadd.f32 %v3984_v60, %v3793_v53  ;;  %v4055_v33 = vmul.f32 %v3793_v53, %v3793_v53  ;;  %v4919_v60 = vld [vmem:[%s8547_s0 + $0x5d4] sm:$0xf0] }
 0x3cc   :  { %v3456_v43 = vpop.f32.mrf.mxu2  ;;  %v4922_v57 = vor.u32 %v5801_v45, %v4919_v60 }
 0x3cd   :  { %v4118_v52 = vadd.f32 %v4117_v27, %v4055_v33  ;;  %v3457_v49 = vadd.f32 %v3456_v43, %v3288_v10  ;;  %v3625_v61 = vpop.f32.mrf.mxu3 }
 0x3ce   :  { %v3290_v46 = vpop.f32.mrf.mxu1 }
 0x3cf   :  { %v3626_v20 = vadd.f32 %v3625_v61, %v3457_v49  ;;  %v3291_v5 = vadd.f32 %v3290_v46, %v7088_v19  ;;  %v4925_v19 = vld [vmem:[%s8547_s0 + $0x5b8] sm:$0xf] }
 0x3d0   :  { %v3797_v15 = vpop.f32.mrf.mxu0  ;;  %v4926_v31 = vor.u32 %v5806_v29, %v4925_v19 }
 0x3d1   :  { %v3795_v22 = vadd.f32 %v3794_v11, %v3626_v20  ;;  %3329 = vmatmul.bf16.gmra.mxu1 %v4886_v25  ;;  %3498 = vmatmul.bf16.gmra.mxu2 %v4890_v2  ;;  %v5810_v20 = vld [vmem:[%s8547_s0 + $0x5fc] sm:$0xf] }
 0x3d2   :  { %3667 = vmatmul.bf16.gmra.mxu3 %v4894_v51 }
 0x3d3   :  { %3836 = vmatmul.bf16.gmra.mxu0 %v4898_v6  ;;  %3923 = vst [vmem:[%s8548_s2 + $0xa8] sm:$0xff] %v3795_v22  ;;  %v3986_v21 = vadd.f32 %v3985_v16, %v3795_v22  ;;  %v4056_v63 = vmul.f32 %v3795_v22, %v3795_v22  ;;  %v4934_v16 = vor.u32 %v5807_v8, %v4933_v34  ;;  %v5815_v22 = vld [vmem:[%s8547_s0 + $0x620] sm:$0xf0] }
 0x3d4   :  { %v3459_v32 = vpop.f32.mrf.mxu2 }
 0x3d5   :  { %v4119_v7 = vadd.f32 %v4118_v52, %v4056_v63  ;;  %v3460_v58 = vadd.f32 %v3459_v32, %v3291_v5  ;;  %v3628_v47 = vpop.f32.mrf.mxu3  ;;  %v4963_v63 = vld [vmem:[%s8547_s0 + $0x624] sm:$0xf0] }
 0x3d6   :  { %v3292_v39 = vpop.f32.mrf.mxu1 }
 0x3d7   :  { %v3629_v41 = vadd.f32 %v3628_v47, %v3460_v58  ;;  %v3293_v55 = vadd.f32 %v3292_v39, %v7109_v36  ;;  %v4969_v58 = vld [vmem:[%s8547_s0 + $0x608] sm:$0xf]  ;;  %v5816_v47 = vld [vmem:[%s8547_s0 + $0x628] sm:$0xf0] }
 0x3d8   :  { %v3799_v35 = vpop.f32.mrf.mxu0  ;;  %v4970_v0 = vor.u32 %v5816_v47, %v4969_v58 }
 0x3d9   :  { %v3798_v38 = vadd.f32 %v3797_v15, %v3629_v41  ;;  %v4955_v15 = vld [vmem:[%s8547_s0 + $0x61c] sm:$0xf0] }
 0x3da   :  { %v4958_v45 = vor.u32 %v5810_v20, %v4955_v15 }
 0x3db   :  { %3924 = vst [vmem:[%s8548_s2 + $0xb0] sm:$0xff] %v3798_v38  ;;  %v3987_v27 = vadd.f32 %v3986_v21, %v3798_v38  ;;  %v4057_v1 = vmul.f32 %v3798_v38, %v3798_v38  ;;  %v5811_v21 = vld [vmem:[%s8547_s0 + $0x604] sm:$0xf] }
 0x3dc   :  { %v3461_v11 = vpop.f32.mrf.mxu2  ;;  %v4966_v29 = vor.u32 %v5811_v21, %v4963_v63 }
 0x3dd   :  { %v4120_v53 = vadd.f32 %v4119_v7, %v4057_v1  ;;  %v3462_v18 = vadd.f32 %v3461_v11, %v3293_v55  ;;  %v3630_v59 = vpop.f32.mrf.mxu3 }
 0x3de   :  { %v3295_v4 = vpop.f32.mrf.mxu1 }
 0x3df   :  { %v3631_v33 = vadd.f32 %v3630_v59, %v3462_v18  ;;  %v3296_v43 = vadd.f32 %v3295_v4, %v7118_v62  ;;  %v4961_v62 = vld [vmem:[%s8547_s0 + $0x600] sm:$0xf] }
 0x3e0   :  { %v3802_v10 = vpop.f32.mrf.mxu0  ;;  %v4962_v60 = vor.u32 %v5815_v22, %v4961_v62 }
 0x3e1   :  { %v3800_v36 = vadd.f32 %v3799_v35, %v3631_v33  ;;  %3334 = vmatmul.bf16.gmra.mxu1 %v4922_v57  ;;  %3503 = vmatmul.bf16.gmra.mxu2 %v4926_v31  ;;  %v5824_v33 = vld [vmem:[%s8547_s0 + $0x668] sm:$0xf0] }
 0x3e2   :  { %3672 = vmatmul.bf16.gmra.mxu3 %v4930_v54  ;;  %v5819_v54 = vld [vmem:[%s8547_s0 + $0x644] sm:$0xf] }
 0x3e3   :  { %3841 = vmatmul.bf16.gmra.mxu0 %v4934_v16  ;;  %3925 = vst [vmem:[%s8548_s2 + $0xb8] sm:$0xff] %v3800_v36  ;;  %v3988_v40 = vadd.f32 %v3987_v27, %v3800_v36  ;;  %v4058_v24 = vmul.f32 %v3800_v36, %v3800_v36  ;;  %v4991_v16 = vld [vmem:[%s8547_s0 + $0x664] sm:$0xf0]  ;;  %v4999_v36 = vld [vmem:[%s8547_s0 + $0x66c] sm:$0xf0] }
 0x3e4   :  { %v3464_v52 = vpop.f32.mrf.mxu2 }
 0x3e5   :  { %v4121_v49 = vadd.f32 %v4120_v53, %v4058_v24  ;;  %v3465_v61 = vadd.f32 %v3464_v52, %v3296_v43  ;;  %v3633_v25 = vpop.f32.mrf.mxu3  ;;  %v5005_v52 = vld [vmem:[%s8547_s0 + $0x650] sm:$0xf] }
 0x3e6   :  { %v3297_v2 = vpop.f32.mrf.mxu1 }
 0x3e7   :  { %v3634_v46 = vadd.f32 %v3633_v25, %v3465_v61  ;;  %v3298_v7 = vadd.f32 %v3297_v2, %v7139_v3 }
 0x3e8   :  { %v3804_v51 = vpop.f32.mrf.mxu0 }
 0x3e9   :  { %v3803_v6 = vadd.f32 %v3802_v10, %v3634_v46  ;;  %v5820_v10 = vld [vmem:[%s8547_s0 + $0x64c] sm:$0xf] }
 0x3ea   :  { %v5002_v15 = vor.u32 %v5820_v10, %v4999_v36 }
 0x3eb   :  { %3926 = vst [vmem:[%s8548_s2 + $0xc0] sm:$0xff] %v3803_v6  ;;  %v3989_v5 = vadd.f32 %v3988_v40, %v3803_v6  ;;  %v4059_v32 = vmul.f32 %v3803_v6, %v3803_v6 }
 0x3ec   :  { %v3466_v39 = vpop.f32.mrf.mxu2 }
 0x3ed   :  { %v4122_v41 = vadd.f32 %v4121_v49, %v4059_v32  ;;  %v3467_v35 = vadd.f32 %v3466_v39, %v3298_v7  ;;  %v3635_v38 = vpop.f32.mrf.mxu3  ;;  %v5825_v49 = vld [vmem:[%s8547_s0 + $0x670] sm:$0xf0] }
 0x3ee   :  { %v3300_v19 = vpop.f32.mrf.mxu1  ;;  %v5006_v62 = vor.u32 %v5825_v49, %v5005_v52 }
 0x3ef   :  { %v3636_v30 = vadd.f32 %v3635_v38, %v3467_v35  ;;  %v3301_v34 = vadd.f32 %v3300_v19, %v7148_v44  ;;  %v4997_v44 = vld [vmem:[%s8547_s0 + $0x648] sm:$0xf]  ;;  %v5027_v19 = vld [vmem:[%s8547_s0 + $0x6ac] sm:$0xf0] }
 0x3f0   :  { %v3807_v27 = vpop.f32.mrf.mxu0  ;;  %v4998_v6 = vor.u32 %v5824_v33, %v4997_v44 }
 0x3f1   :  { %v3805_v3 = vadd.f32 %v3804_v51, %v3636_v30  ;;  %3339 = vmatmul.bf16.gmra.mxu1 %v4958_v45  ;;  %3508 = vmatmul.bf16.gmra.mxu2 %v4962_v60  ;;  %v4994_v51 = vor.u32 %v5819_v54, %v4991_v16  ;;  %v5828_v60 = vld [vmem:[%s8547_s0 + $0x68c] sm:$0xf]  ;;  %v5035_v30 = vld [vmem:[%s8547_s0 + $0x6b4] sm:$0xf0] }
 0x3f2   :  { %3677 = vmatmul.bf16.gmra.mxu3 %v4966_v29  ;;  %v5833_v29 = vld [vmem:[%s8547_s0 + $0x6b0] sm:$0xf0] }
 0x3f3   :  { %3846 = vmatmul.bf16.gmra.mxu0 %v4970_v0  ;;  %3927 = vst [vmem:[%s8548_s2 + $0xc8] sm:$0xff] %v3805_v3  ;;  %v3990_v1 = vadd.f32 %v3989_v5, %v3805_v3  ;;  %v4060_v55 = vmul.f32 %v3805_v3, %v3805_v3  ;;  %v5829_v0 = vld [vmem:[%s8547_s0 + $0x694] sm:$0xf] }
 0x3f4   :  { %v3469_v8 = vpop.f32.mrf.mxu2 }
 0x3f5   :  { %v4123_v11 = vadd.f32 %v4122_v41, %v4060_v55  ;;  %v3470_v53 = vadd.f32 %v3469_v8, %v3301_v34  ;;  %v3638_v18 = vpop.f32.mrf.mxu3  ;;  %v5041_v55 = vld [vmem:[%s8547_s0 + $0x698] sm:$0xf]  ;;  %v5834_v34 = vld [vmem:[%s8547_s0 + $0x6b8] sm:$0xf0] }
 0x3f6   :  { %v3302_v59 = vpop.f32.mrf.mxu1  ;;  %v5042_v54 = vor.u32 %v5834_v34, %v5041_v55 }
 0x3f7   :  { %v3639_v57 = vadd.f32 %v3638_v18, %v3470_v53  ;;  %v3303_v43 = vadd.f32 %v3302_v59, %v7169_v37  ;;  %v5030_v59 = vor.u32 %v5828_v60, %v5027_v19 }
 0x3f8   :  { %v3809_v31 = vpop.f32.mrf.mxu0 }
 0x3f9   :  { %v3808_v4 = vadd.f32 %v3807_v27, %v3639_v57 }
 0x3fb   :  { %3928 = vst [vmem:[%s8548_s2 + $0xd0] sm:$0xff] %v3808_v4  ;;  %v3991_v40 = vadd.f32 %v3990_v1, %v3808_v4  ;;  %v4061_v24 = vmul.f32 %v3808_v4, %v3808_v4  ;;  %v5038_v4 = vor.u32 %v5829_v0, %v5035_v30 }
 0x3fc   :  { %v3471_v61 = vpop.f32.mrf.mxu2 }
 0x3fd   :  { %v4124_v25 = vadd.f32 %v4123_v11, %v4061_v24  ;;  %v3472_v2 = vadd.f32 %v3471_v61, %v3303_v43  ;;  %v3640_v46 = vpop.f32.mrf.mxu3 }
 0x3fe   :  { %v3305_v20 = vpop.f32.mrf.mxu1 }
 0x3ff   :  { %v3641_v22 = vadd.f32 %v3640_v46, %v3472_v2  ;;  %v3306_v32 = vadd.f32 %v3305_v20, %v7190_v50  ;;  %v5033_v50 = vld [vmem:[%s8547_s0 + $0x690] sm:$0xf]  ;;  %v5837_v46 = vld [vmem:[%s8547_s0 + $0x6d4] sm:$0xf]  ;;  %v5838_v20 = vld [vmem:[%s8547_s0 + $0x6dc] sm:$0xf] }
 0x400   :  { %v3812_v21 = vpop.f32.mrf.mxu0  ;;  %v5034_v57 = vor.u32 %v5833_v29, %v5033_v50 }
 0x401   :  { %v3810_v37 = vadd.f32 %v3809_v31, %v3641_v22  ;;  %3344 = vmatmul.bf16.gmra.mxu1 %v4994_v51  ;;  %3513 = vmatmul.bf16.gmra.mxu2 %v4998_v6  ;;  %v5063_v51 = vld [vmem:[%s8547_s0 + $0x6f4] sm:$0xf0]  ;;  %v5842_v6 = vld [vmem:[%s8547_s0 + $0x6f8] sm:$0xf0] }
 0x402   :  { %3682 = vmatmul.bf16.gmra.mxu3 %v5002_v15  ;;  %v5071_v15 = vld [vmem:[%s8547_s0 + $0x6fc] sm:$0xf0] }
 0x403   :  { %3851 = vmatmul.bf16.gmra.mxu0 %v5006_v62  ;;  %3929 = vst [vmem:[%s8548_s2 + $0xd8] sm:$0xff] %v3810_v37  ;;  %v3992_v63 = vadd.f32 %v3991_v40, %v3810_v37  ;;  %v4062_v5 = vmul.f32 %v3810_v37, %v3810_v37  ;;  %v5077_v37 = vld [vmem:[%s8547_s0 + $0x6e0] sm:$0xf] }
 0x404   :  { %v3474_v7 = vpop.f32.mrf.mxu2 }
 0x405   :  { %v4125_v58 = vadd.f32 %v4124_v25, %v4062_v5  ;;  %v3475_v47 = vadd.f32 %v3474_v7, %v3306_v32  ;;  %v3643_v39 = vpop.f32.mrf.mxu3 }
 0x406   :  { %v3307_v41 = vpop.f32.mrf.mxu1 }
 0x407   :  { %v3644_v35 = vadd.f32 %v3643_v39, %v3475_v47  ;;  %v3308_v1 = vadd.f32 %v3307_v41, %v7211_v56  ;;  %v5066_v47 = vor.u32 %v5837_v46, %v5063_v51 }
 0x408   :  { %v3814_v38 = vpop.f32.mrf.mxu0 }
 0x409   :  { %v3813_v45 = vadd.f32 %v3812_v21, %v3644_v35  ;;  %v5074_v35 = vor.u32 %v5838_v20, %v5071_v15 }
 0x40b   :  { %3930 = vst [vmem:[%s8548_s2 + $0xe0] sm:$0xff] %v3813_v45  ;;  %v3993_v27 = vadd.f32 %v3992_v63, %v3813_v45  ;;  %v4063_v3 = vmul.f32 %v3813_v45, %v3813_v45  ;;  %v5843_v63 = vld [vmem:[%s8547_s0 + $0x700] sm:$0xf0] }
 0x40c   :  { %v3476_v8 = vpop.f32.mrf.mxu2 }
 0x40d   :  { %v4126_v11 = vadd.f32 %v4125_v58, %v4063_v3  ;;  %v3477_v53 = vadd.f32 %v3476_v8, %v3308_v1  ;;  %v3645_v18 = vpop.f32.mrf.mxu3 }
 0x40e   :  { %v3310_v31 = vpop.f32.mrf.mxu1 }
 0x40f   :  { %v3646_v16 = vadd.f32 %v3645_v18, %v3477_v53  ;;  %v3311_v36 = vadd.f32 %v3310_v31, %v7220_v17  ;;  %v5069_v17 = vld [vmem:[%s8547_s0 + $0x6d8] sm:$0xf]  ;;  %v5099_v53 = vld [vmem:[%s8547_s0 + $0x73c] sm:$0xf0]  ;;  %v5851_v18 = vld [vmem:[%s8547_s0 + $0x740] sm:$0xf0] }
 0x410   :  { %v3817_v44 = vpop.f32.mrf.mxu0  ;;  %v5070_v39 = vor.u32 %v5842_v6, %v5069_v17 }
 0x411   :  { %v3815_v56 = vadd.f32 %v3814_v38, %v3646_v16  ;;  %3349 = vmatmul.bf16.gmra.mxu1 %v5030_v59  ;;  %3518 = vmatmul.bf16.gmra.mxu2 %v5034_v57  ;;  %v5078_v38 = vor.u32 %v5843_v63, %v5077_v37  ;;  %v5847_v59 = vld [vmem:[%s8547_s0 + $0x724] sm:$0xf]  ;;  %v5107_v57 = vld [vmem:[%s8547_s0 + $0x744] sm:$0xf0] }
 0x412   :  { %3687 = vmatmul.bf16.gmra.mxu3 %v5038_v4  ;;  %v5113_v16 = vld [vmem:[%s8547_s0 + $0x728] sm:$0xf]  ;;  %v5855_v63 = vld [vmem:[%s8547_s0 + $0x764] sm:$0xf] }
 0x413   :  { %3856 = vmatmul.bf16.gmra.mxu0 %v5042_v54  ;;  %3931 = vst [vmem:[%s8548_s2 + $0xe8] sm:$0xff] %v3815_v56  ;;  %v3994_v33 = vadd.f32 %v3993_v27, %v3815_v56  ;;  %v4064_v10 = vmul.f32 %v3815_v56, %v3815_v56 }
 0x414   :  { %v3479_v40 = vpop.f32.mrf.mxu2 }
 0x415   :  { %v4127_v24 = vadd.f32 %v4126_v11, %v4064_v10  ;;  %v3480_v43 = vadd.f32 %v3479_v40, %v3311_v36  ;;  %v3648_v52 = vpop.f32.mrf.mxu3  ;;  %v5846_v11 = vld [vmem:[%s8547_s0 + $0x71c] sm:$0xf] }
 0x416   :  { %v3312_v49 = vpop.f32.mrf.mxu1  ;;  %v5102_v40 = vor.u32 %v5846_v11, %v5099_v53 }
 0x417   :  { %v3649_v61 = vadd.f32 %v3648_v52, %v3480_v43  ;;  %v3313_v21 = vadd.f32 %v3312_v49, %v7241_v12  ;;  %v5110_v52 = vor.u32 %v5847_v59, %v5107_v57 }
 0x418   :  { %v3819_v25 = vpop.f32.mrf.mxu0 }
 0x419   :  { %v3818_v2 = vadd.f32 %v3817_v44, %v3649_v61  ;;  %v5852_v44 = vld [vmem:[%s8547_s0 + $0x748] sm:$0xf0] }
 0x41a   :  { %v5114_v49 = vor.u32 %v5852_v44, %v5113_v16  ;;  %v5171_v16 = vld [vmem:[%s8547_s0 + $0x7cc] sm:$0xf0]  ;;  %v5869_v44 = vld [vmem:[%s8547_s0 + $0x7d0] sm:$0xf0] }
 0x41b   :  { %3932 = vst [vmem:[%s8548_s2 + $0xf0] sm:$0xff] %v3818_v2  ;;  %v3995_v62 = vadd.f32 %v3994_v33, %v3818_v2  ;;  %v4065_v22 = vmul.f32 %v3818_v2, %v3818_v2 }
 0x41c   :  { %v3481_v5 = vpop.f32.mrf.mxu2 }
 0x41d   :  { %v4128_v32 = vadd.f32 %v4127_v24, %v4065_v22  ;;  %v3482_v7 = vadd.f32 %v3481_v5, %v3313_v21  ;;  %v3650_v58 = vpop.f32.mrf.mxu3  ;;  %v5135_v5 = vld [vmem:[%s8547_s0 + $0x784] sm:$0xf0] }
 0x41e   :  { %v3315_v41 = vpop.f32.mrf.mxu1 }
 0x41f   :  { %v3651_v45 = vadd.f32 %v3650_v58, %v3482_v7  ;;  %v3316_v29 = vadd.f32 %v3315_v41, %v7250_v14  ;;  %v5105_v14 = vld [vmem:[%s8547_s0 + $0x720] sm:$0xf]  ;;  %v5856_v7 = vld [vmem:[%s8547_s0 + $0x76c] sm:$0xf]  ;;  %v5143_v58 = vld [vmem:[%s8547_s0 + $0x78c] sm:$0xf0] }
 0x420   :  { %v3822_v60 = vpop.f32.mrf.mxu0  ;;  %v5106_v24 = vor.u32 %v5851_v18, %v5105_v14 }
 0x421   :  { %v3820_v12 = vadd.f32 %v3819_v25, %v3651_v45  ;;  %3354 = vmatmul.bf16.gmra.mxu1 %v5066_v47  ;;  %3523 = vmatmul.bf16.gmra.mxu2 %v5070_v39 }
 0x422   :  { %3692 = vmatmul.bf16.gmra.mxu3 %v5074_v35  ;;  %v5149_v35 = vld [vmem:[%s8547_s0 + $0x770] sm:$0xf] }
 0x423   :  { %3861 = vmatmul.bf16.gmra.mxu0 %v5078_v38  ;;  %3933 = vst [vmem:[%s8548_s2 + $0xf8] sm:$0xff] %v3820_v12  ;;  %v3996_v19 = vadd.f32 %v3995_v62, %v3820_v12  ;;  %v4066_v50 = vmul.f32 %v3820_v12, %v3820_v12  ;;  %v5861_v38 = vld [vmem:[%s8547_s0 + $0x790] sm:$0xf0] }
 0x424   :  { %v3484_v0 = vpop.f32.mrf.mxu2 }
 0x425   :  { %v4129_v30 = vadd.f32 %v4128_v32, %v4066_v50  ;;  %v3485_v27 = vadd.f32 %v3484_v0, %v3316_v29  ;;  %v3653_v3 = vpop.f32.mrf.mxu3  ;;  %v5860_v32 = vld [vmem:[%s8547_s0 + $0x788] sm:$0xf0]  ;;  %v5138_v50 = vor.u32 %v5855_v63, %v5135_v5 }
 0x426   :  { %v3317_v1 = vpop.f32.mrf.mxu1 }
 0x427   :  { %v3654_v55 = vadd.f32 %v3653_v3, %v3485_v27  ;;  %v3318_v54 = vadd.f32 %v3317_v1, %v7271_v28  ;;  %v5150_v27 = vor.u32 %v5861_v38, %v5149_v35  ;;  %v5874_v35 = vld [vmem:[%s8547_s0 + $0x7fc] sm:$0xf]  ;;  %v5215_v38 = vld [vmem:[%s8547_s0 + $0x81c] sm:$0xf0] }
 0x428   :  { %v3824_v34 = vpop.f32.mrf.mxu0 }
 0x429   :  { %v3823_v8 = vadd.f32 %v3822_v60, %v3654_v55 }
 0x42b   :  { %3934 = vst [vmem:[%s8548_s2 + $0x100] sm:$0xff] %v3823_v8  ;;  %v3997_v31 = vadd.f32 %v3996_v19, %v3823_v8  ;;  %v4067_v4 = vmul.f32 %v3823_v8, %v3823_v8 }
 0x42c   :  { %v3486_v56 = vpop.f32.mrf.mxu2 }
 0x42d   :  { %v4130_v33 = vadd.f32 %v4129_v30, %v4067_v4  ;;  %v3487_v10 = vadd.f32 %v3486_v56, %v3318_v54  ;;  %v3655_v36 = vpop.f32.mrf.mxu3  ;;  %v5146_v30 = vor.u32 %v5856_v7, %v5143_v58  ;;  %v5864_v54 = vld [vmem:[%s8547_s0 + $0x7ac] sm:$0xf]  ;;  %v5865_v56 = vld [vmem:[%s8547_s0 + $0x7b4] sm:$0xf] }
 0x42e   :  { %v3320_v43 = vpop.f32.mrf.mxu1 }
 0x42f   :  { %v3656_v61 = vadd.f32 %v3655_v36, %v3487_v10  ;;  %v3321_v51 = vadd.f32 %v3320_v43, %v7280_v48  ;;  %v5141_v48 = vld [vmem:[%s8547_s0 + $0x768] sm:$0xf]  ;;  %v5870_v43 = vld [vmem:[%s8547_s0 + $0x7d8] sm:$0xf0] }
 0x430   :  { %v3827_v25 = vpop.f32.mrf.mxu0  ;;  %v5142_v29 = vor.u32 %v5860_v32, %v5141_v48 }
 0x431   :  { %v3825_v28 = vadd.f32 %v3824_v34, %v3656_v61  ;;  %3359 = vmatmul.bf16.gmra.mxu1 %v5102_v40  ;;  %3528 = vmatmul.bf16.gmra.mxu2 %v5106_v24  ;;  %v5185_v24 = vld [vmem:[%s8547_s0 + $0x7b8] sm:$0xf] }
 0x432   :  { %3697 = vmatmul.bf16.gmra.mxu3 %v5110_v52 }
 0x433   :  { %3866 = vmatmul.bf16.gmra.mxu0 %v5114_v49  ;;  %3935 = vst [vmem:[%s8548_s2 + $0x108] sm:$0xff] %v3825_v28  ;;  %v3998_v2 = vadd.f32 %v3997_v31, %v3825_v28  ;;  %v4068_v46 = vmul.f32 %v3825_v28, %v3825_v28  ;;  %v5174_v28 = vor.u32 %v5864_v54, %v5171_v16 }
 0x434   :  { %v3489_v17 = vpop.f32.mrf.mxu2 }
 0x435   :  { %v4131_v6 = vadd.f32 %v4130_v33, %v4068_v46  ;;  %v3490_v20 = vadd.f32 %v3489_v17, %v3321_v51  ;;  %v3658_v15 = vpop.f32.mrf.mxu3  ;;  %v5179_v33 = vld [vmem:[%s8547_s0 + $0x7d4] sm:$0xf0]  ;;  %v5186_v17 = vor.u32 %v5870_v43, %v5185_v24  ;;  %v5249_v24 = vld [vmem:[%s8547_s0 + $0x840] sm:$0xf]  ;;  %v5887_v43 = vld [vmem:[%s8547_s0 + $0x860] sm:$0xf0] }
 0x436   :  { %v3322_v62 = vpop.f32.mrf.mxu1  ;;  %v5182_v51 = vor.u32 %v5865_v56, %v5179_v33 }
 0x437   :  { %v3659_v22 = vadd.f32 %v3658_v15, %v3490_v20  ;;  %v3323_v41 = vadd.f32 %v3322_v62, %v7301_v42 }
 0x438   :  { %v3829_v21 = vpop.f32.mrf.mxu0 }
 0x439   :  { %v3828_v37 = vadd.f32 %v3827_v25, %v3659_v22 }
 0x43b   :  { %3936 = vst [vmem:[%s8548_s2 + $0x110] sm:$0xff] %v3828_v37  ;;  %v3999_v47 = vadd.f32 %v3998_v2, %v3828_v37  ;;  %v4069_v39 = vmul.f32 %v3828_v37, %v3828_v37 }
 0x43c   :  { %v3491_v45 = vpop.f32.mrf.mxu2 }
 0x43d   :  { %v4132_v60 = vadd.f32 %v4131_v6, %v4069_v39  ;;  %v3492_v12 = vadd.f32 %v3491_v45, %v3323_v41  ;;  %v3660_v19 = vpop.f32.mrf.mxu3  ;;  %v5207_v39 = vld [vmem:[%s8547_s0 + $0x814] sm:$0xf0]  ;;  %v5878_v41 = vld [vmem:[%s8547_s0 + $0x818] sm:$0xf0] }
 0x43e   :  { %v3325_v0 = vpop.f32.mrf.mxu1 }
 0x43f   :  { %v3661_v3 = vadd.f32 %v3660_v19, %v3492_v12  ;;  %v3326_v8 = vadd.f32 %v3325_v0, %v7322_v13  ;;  %v5177_v13 = vld [vmem:[%s8547_s0 + $0x7b0] sm:$0xf]  ;;  %v8622_v12 = vld [vmem:[#allocation26_spill] sm:$0xff] }
 0x440   :  { %v3832_v1 = vpop.f32.mrf.mxu0  ;;  %v5178_v2 = vor.u32 %v5869_v44, %v5177_v13 }
 0x441   :  { %v3830_v42 = vadd.f32 %v3829_v21, %v3661_v3  ;;  %3364 = vmatmul.bf16.gmra.mxu1 %v5138_v50  ;;  %3533 = vmatmul.bf16.gmra.mxu2 %v5142_v29  ;;  %v5221_v50 = vld [vmem:[%s8547_s0 + $0x800] sm:$0xf]  ;;  %v5879_v29 = vld [vmem:[%s8547_s0 + $0x820] sm:$0xf0] }
 0x442   :  { %3702 = vmatmul.bf16.gmra.mxu3 %v5146_v30 }
 0x443   :  { %3871 = vmatmul.bf16.gmra.mxu0 %v5150_v27  ;;  %3937 = vst [vmem:[%s8548_s2 + $0x118] sm:$0xff] %v3830_v42  ;;  %v4000_v55 = vadd.f32 %v3999_v47, %v3830_v42  ;;  %v4070_v34 = vmul.f32 %v3830_v42, %v3830_v42  ;;  %v5873_v47 = vld [vmem:[%s8547_s0 + $0x7f4] sm:$0xf] }
 0x444   :  { %v3494_v11 = vpop.f32.mrf.mxu2 }
 0x445   :  { %v4133_v53 = vadd.f32 %v4132_v60, %v4070_v34  ;;  %v3495_v14 = vadd.f32 %v3494_v11, %v3326_v8  ;;  %v3663_v18 = vpop.f32.mrf.mxu3  ;;  %v5218_v34 = vor.u32 %v5874_v35, %v5215_v38  ;;  %v5222_v8 = vor.u32 %v5879_v29, %v5221_v50  ;;  %v5279_v50 = vld [vmem:[%s8547_s0 + $0x8a4] sm:$0xf0] }
 0x446   :  { %v3327_v59 = vpop.f32.mrf.mxu1  ;;  %v5285_v29 = vld [vmem:[%s8547_s0 + $0x888] sm:$0xf] }
 0x447   :  { %v3664_v57 = vadd.f32 %v3663_v18, %v3495_v14  ;;  %v3328_v40 = vadd.f32 %v3327_v59, %v7343_v26 }
 0x448   :  { %v3834_v31 = vpop.f32.mrf.mxu0 }
 0x449   :  { %v3833_v4 = vadd.f32 %v3832_v1, %v3664_v57  ;;  %v5210_v1 = vor.u32 %v5873_v47, %v5207_v39  ;;  %v8623_v57 = vld [vmem:[#allocation27_spill] sm:$0xff] }
 0x44b   :  { %3938 = vst [vmem:[%s8548_s2 + $0x120] sm:$0xff] %v3833_v4  ;;  %v4001_v10 = vadd.f32 %v4000_v55, %v3833_v4  ;;  %v4071_v36 = vmul.f32 %v3833_v4, %v3833_v4 }
 0x44c   :  { %v3496_v52 = vpop.f32.mrf.mxu2 }
 0x44d   :  { %v4134_v49 = vadd.f32 %v4133_v53, %v4071_v36  ;;  %v3497_v61 = vadd.f32 %v3496_v52, %v3328_v40  ;;  %v3665_v25 = vpop.f32.mrf.mxu3  ;;  %v5882_v36 = vld [vmem:[%s8547_s0 + $0x83c] sm:$0xf]  ;;  %v5243_v40 = vld [vmem:[%s8547_s0 + $0x85c] sm:$0xf0]  ;;  %v5883_v52 = vld [vmem:[%s8547_s0 + $0x844] sm:$0xf] }
 0x44e   :  { %v3330_v46 = vpop.f32.mrf.mxu1 }
 0x44f   :  { %v3666_v6 = vadd.f32 %v3665_v25, %v3497_v61  ;;  %v3331_v22 = vadd.f32 %v3330_v46, %v7352_v9  ;;  %v5213_v9 = vld [vmem:[%s8547_s0 + $0x7f8] sm:$0xf]  ;;  %v5257_v46 = vld [vmem:[%s8547_s0 + $0x848] sm:$0xf] }
 0x450   :  { %v3837_v20 = vpop.f32.mrf.mxu0  ;;  %v5214_v42 = vor.u32 %v5878_v41, %v5213_v9 }
 0x451   :  { %v3835_v26 = vadd.f32 %v3834_v31, %v3666_v6  ;;  %3369 = vmatmul.bf16.gmra.mxu1 %v5174_v28  ;;  %3538 = vmatmul.bf16.gmra.mxu2 %v5178_v2  ;;  %v8624_v28 = vld [vmem:[#allocation11_spill] sm:$0xff] }
 0x452   :  { %3707 = vmatmul.bf16.gmra.mxu3 %v5182_v51  ;;  %v5888_v51 = vld [vmem:[%s8547_s0 + $0x868] sm:$0xf0] }
 0x453   :  { %3876 = vmatmul.bf16.gmra.mxu0 %v5186_v17  ;;  %3939 = vst [vmem:[%s8548_s2 + $0x128] sm:$0xff] %v3835_v26  ;;  %v4002_v15 = vadd.f32 %v4001_v10, %v3835_v26  ;;  %v4072_v62 = vmul.f32 %v3835_v26, %v3835_v26 }
 0x454   :  { %v3499_v21 = vpop.f32.mrf.mxu2 }
 0x455   :  { %v4135_v37 = vadd.f32 %v4134_v49, %v4072_v62  ;;  %v3500_v63 = vadd.f32 %v3499_v21, %v3331_v22  ;;  %v3668_v5 = vpop.f32.mrf.mxu3  ;;  %v5251_v49 = vld [vmem:[%s8547_s0 + $0x864] sm:$0xf0]  ;;  %v5250_v62 = vor.u32 %v5887_v43, %v5249_v24 }
 0x456   :  { %v3332_v48 = vpop.f32.mrf.mxu1  ;;  %v5254_v21 = vor.u32 %v5883_v52, %v5251_v49 }
 0x457   :  { %v3669_v32 = vadd.f32 %v3668_v5, %v3500_v63  ;;  %v3333_v19 = vadd.f32 %v3332_v48, %v8622_v12 }
 0x458   :  { %v3839_v7 = vpop.f32.mrf.mxu0 }
 0x459   :  { %v3838_v58 = vadd.f32 %v3837_v20, %v3669_v32 }
 0x45b   :  { %3940 = vst [vmem:[%s8548_s2 + $0x130] sm:$0xff] %v3838_v58  ;;  %v4003_v45 = vadd.f32 %v4002_v15, %v3838_v58  ;;  %v4073_v60 = vmul.f32 %v3838_v58, %v3838_v58  ;;  %v5246_v15 = vor.u32 %v5882_v36, %v5243_v40  ;;  %v8625_v58 = vld [vmem:[#allocation13_spill] sm:$0xff] }
 0x45c   :  { %v3501_v0 = vpop.f32.mrf.mxu2 }
 0x45d   :  { %v4136_v30 = vadd.f32 %v4135_v37, %v4073_v60  ;;  %v3502_v27 = vadd.f32 %v3501_v0, %v3333_v19  ;;  %v3670_v3 = vpop.f32.mrf.mxu3  ;;  %v5258_v37 = vor.u32 %v5888_v51, %v5257_v46  ;;  %v5891_v19 = vld [vmem:[%s8547_s0 + $0x884] sm:$0xf]  ;;  %v5896_v0 = vld [vmem:[%s8547_s0 + $0x8a8] sm:$0xf0]  ;;  %v5315_v46 = vld [vmem:[%s8547_s0 + $0x8ec] sm:$0xf0] }
 0x45e   :  { %v3335_v55 = vpop.f32.mrf.mxu1  ;;  %v5321_v51 = vld [vmem:[%s8547_s0 + $0x8d0] sm:$0xf] }
 0x45f   :  { %v3671_v11 = vadd.f32 %v3670_v3, %v3502_v27  ;;  %v3336_v31 = vadd.f32 %v3335_v55, %v8623_v57  ;;  %v5287_v27 = vld [vmem:[%s8547_s0 + $0x8ac] sm:$0xf0]  ;;  %v5286_v57 = vor.u32 %v5896_v0, %v5285_v29 }
 0x460   :  { %v3842_v53 = vpop.f32.mrf.mxu0 }
 0x461   :  { %v3840_v14 = vadd.f32 %v3839_v7, %v3671_v11  ;;  %3374 = vmatmul.bf16.gmra.mxu1 %v5210_v1  ;;  %3543 = vmatmul.bf16.gmra.mxu2 %v5214_v42  ;;  %v8626_v42 = vld [vmem:[#allocation15_spill] sm:$0xff] }
 0x462   :  { %3712 = vmatmul.bf16.gmra.mxu3 %v5218_v34  ;;  %v5293_v34 = vld [vmem:[%s8547_s0 + $0x890] sm:$0xf] }
 0x463   :  { %3881 = vmatmul.bf16.gmra.mxu0 %v5222_v8  ;;  %3941 = vst [vmem:[%s8548_s2 + $0x138] sm:$0xff] %v3840_v14  ;;  %v4004_v18 = vadd.f32 %v4003_v45, %v3840_v14  ;;  %v4074_v59 = vmul.f32 %v3840_v14, %v3840_v14  ;;  %v5897_v8 = vld [vmem:[%s8547_s0 + $0x8b0] sm:$0xf0] }
 0x464   :  { %v3504_v4 = vpop.f32.mrf.mxu2 }
 0x465   :  { %v4137_v54 = vadd.f32 %v4136_v30, %v4074_v59  ;;  %v3505_v16 = vadd.f32 %v3504_v4, %v3336_v31  ;;  %v3673_v13 = vpop.f32.mrf.mxu3  ;;  %v5892_v30 = vld [vmem:[%s8547_s0 + $0x88c] sm:$0xf]  ;;  %v5282_v59 = vor.u32 %v5891_v19, %v5279_v50 }
 0x466   :  { %v3337_v44 = vpop.f32.mrf.mxu1  ;;  %v5290_v4 = vor.u32 %v5892_v30, %v5287_v27 }
 0x467   :  { %v3674_v56 = vadd.f32 %v3673_v13, %v3505_v16  ;;  %v3338_v2 = vadd.f32 %v3337_v44, %v8624_v28 }
 0x468   :  { %v3844_v33 = vpop.f32.mrf.mxu0 }
 0x469   :  { %v3843_v10 = vadd.f32 %v3842_v53, %v3674_v56 }
 0x46b   :  { %3942 = vst [vmem:[%s8548_s2 + $0x140] sm:$0xff] %v3843_v10  ;;  %v4005_v61 = vadd.f32 %v4004_v18, %v3843_v10  ;;  %v4075_v25 = vmul.f32 %v3843_v10, %v3843_v10  ;;  %v8627_v10 = vld [vmem:[#allocation17_spill] sm:$0xff] }
 0x46c   :  { %v3506_v17 = vpop.f32.mrf.mxu2 }
 0x46d   :  { %v4138_v6 = vadd.f32 %v4137_v54, %v4075_v25  ;;  %v3507_v20 = vadd.f32 %v3506_v17, %v3338_v2  ;;  %v3675_v26 = vpop.f32.mrf.mxu3  ;;  %v5294_v54 = vor.u32 %v5897_v8, %v5293_v34  ;;  %v5900_v2 = vld [vmem:[%s8547_s0 + $0x8cc] sm:$0xf]  ;;  %v5905_v17 = vld [vmem:[%s8547_s0 + $0x8f0] sm:$0xf0] }
 0x46e   :  { %v3340_v22 = vpop.f32.mrf.mxu1  ;;  %v8630_v8 = vld [vmem:[#allocation23_spill] sm:$0xff] }
 0x46f   :  { %v3676_v63 = vadd.f32 %v3675_v26, %v3507_v20  ;;  %v3341_v47 = vadd.f32 %v3340_v22, %v8625_v58  ;;  %v5323_v20 = vld [vmem:[%s8547_s0 + $0x8f4] sm:$0xf0]  ;;  %v5322_v58 = vor.u32 %v5905_v17, %v5321_v51 }
 0x470   :  { %v3847_v5 = vpop.f32.mrf.mxu0 }
 0x471   :  { %v3845_v48 = vadd.f32 %v3844_v33, %v3676_v63  ;;  %3379 = vmatmul.bf16.gmra.mxu1 %v5246_v15  ;;  %3548 = vmatmul.bf16.gmra.mxu2 %v5250_v62  ;;  %v8628_v62 = vld [vmem:[#allocation19_spill] sm:$0xff] }
 0x472   :  { %3717 = vmatmul.bf16.gmra.mxu3 %v5254_v21  ;;  %v5329_v21 = vld [vmem:[%s8547_s0 + $0x8d8] sm:$0xf] }
 0x473   :  { %3886 = vmatmul.bf16.gmra.mxu0 %v5258_v37  ;;  %3943 = vst [vmem:[%s8548_s2 + $0x148] sm:$0xff] %v3845_v48  ;;  %v4006_v32 = vadd.f32 %v4005_v61, %v3845_v48  ;;  %v4076_v7 = vmul.f32 %v3845_v48, %v3845_v48  ;;  %v5906_v37 = vld [vmem:[%s8547_s0 + $0x8f8] sm:$0xf0] }
 0x474   :  { %v3509_v39 = vpop.f32.mrf.mxu2 }
 0x475   :  { %v4139_v9 = vadd.f32 %v4138_v6, %v4076_v7  ;;  %v3510_v41 = vadd.f32 %v3509_v39, %v3341_v47  ;;  %v3678_v35 = vpop.f32.mrf.mxu3  ;;  %v5901_v6 = vld [vmem:[%s8547_s0 + $0x8d4] sm:$0xf]  ;;  %v5318_v7 = vor.u32 %v5900_v2, %v5315_v46 }
 0x476   :  { %v3342_v38 = vpop.f32.mrf.mxu1  ;;  %v5326_v39 = vor.u32 %v5901_v6, %v5323_v20 }
 0x477   :  { %v3679_v45 = vadd.f32 %v3678_v35, %v3510_v41  ;;  %v3343_v55 = vadd.f32 %v3342_v38, %v8626_v42 }
 0x478   :  { %v3849_v60 = vpop.f32.mrf.mxu0 }
 0x479   :  { %v3848_v12 = vadd.f32 %v3847_v5, %v3679_v45 }
 0x47b   :  { %3944 = vst [vmem:[%s8548_s2 + $0x150] sm:$0xff] %v3848_v12  ;;  %v4007_v3 = vadd.f32 %v4006_v32, %v3848_v12  ;;  %v4077_v1 = vmul.f32 %v3848_v12, %v3848_v12  ;;  %v8629_v12 = vld [vmem:[#allocation21_spill] sm:$0xff] }
 0x47c   :  { %v3511_v11 = vpop.f32.mrf.mxu2 }
 0x47d   :  { %v4140_v53 = vadd.f32 %v4139_v9, %v4077_v1  ;;  %v3512_v14 = vadd.f32 %v3511_v11, %v3343_v55  ;;  %v3680_v18 = vpop.f32.mrf.mxu3  ;;  %v5330_v9 = vor.u32 %v5906_v37, %v5329_v21  ;;  %v8633_v37 = vld [vmem:[#allocation4_spill] sm:$0xff] }
 0x47e   :  { %v3345_v31 = vpop.f32.mrf.mxu1 }
 0x47f   :  { %v3681_v16 = vadd.f32 %v3680_v18, %v3512_v14  ;;  %v3346_v36 = vadd.f32 %v3345_v31, %v8627_v10 }
 0x480   :  { %v3852_v13 = vpop.f32.mrf.mxu0 }
 0x481   :  { %v3850_v44 = vadd.f32 %v3849_v60, %v3681_v16  ;;  %3384 = vmatmul.bf16.gmra.mxu1 %v5282_v59  ;;  %3553 = vmatmul.bf16.gmra.mxu2 %v5286_v57 }
 0x482   :  { %3722 = vmatmul.bf16.gmra.mxu3 %v5290_v4 }
 0x483   :  { %3891 = vmatmul.bf16.gmra.mxu0 %v5294_v54  ;;  %3945 = vst [vmem:[%s8548_s2 + $0x158] sm:$0xff] %v3850_v44  ;;  %v4008_v56 = vadd.f32 %v4007_v3, %v3850_v44  ;;  %v4078_v33 = vmul.f32 %v3850_v44, %v3850_v44  ;;  %v8631_v44 = vld [vmem:[#allocation2_spill] sm:$0xff] }
 0x484   :  { %v3514_v40 = vpop.f32.mrf.mxu2 }
 0x485   :  { %v4141_v24 = vadd.f32 %v4140_v53, %v4078_v33  ;;  %v3515_v43 = vadd.f32 %v3514_v40, %v3346_v36  ;;  %v3683_v52 = vpop.f32.mrf.mxu3 }
 0x486   :  { %v3347_v49 = vpop.f32.mrf.mxu1 }
 0x487   :  { %v3684_v61 = vadd.f32 %v3683_v52, %v3515_v43  ;;  %v3348_v22 = vadd.f32 %v3347_v49, %v8628_v62 }
 0x488   :  { %v3854_v25 = vpop.f32.mrf.mxu0 }
 0x489   :  { %v3853_v28 = vadd.f32 %v3852_v13, %v3684_v61 }
 0x48b   :  { %3946 = vst [vmem:[%s8548_s2 + $0x160] sm:$0xff] %v3853_v28  ;;  %v4009_v26 = vadd.f32 %v4008_v56, %v3853_v28  ;;  %v4079_v15 = vmul.f32 %v3853_v28, %v3853_v28  ;;  %v8632_v28 = vld [vmem:[#allocation3_spill] sm:$0xff] }
 0x48c   :  { %v3516_v63 = vpop.f32.mrf.mxu2 }
 0x48d   :  { %v4142_v5 = vadd.f32 %v4141_v24, %v4079_v15  ;;  %v3517_v48 = vadd.f32 %v3516_v63, %v3348_v22  ;;  %v3685_v32 = vpop.f32.mrf.mxu3 }
 0x48e   :  { %v3350_v47 = vpop.f32.mrf.mxu1 }
 0x48f   :  { %v3686_v41 = vadd.f32 %v3685_v32, %v3517_v48  ;;  %v3351_v19 = vadd.f32 %v3350_v47, %v8629_v12 }
 0x490   :  { %v3857_v35 = vpop.f32.mrf.mxu0 }
 0x491   :  { %v3855_v38 = vadd.f32 %v3854_v25, %v3686_v41  ;;  %3389 = vmatmul.bf16.gmra.mxu1 %v5318_v7  ;;  %3558 = vmatmul.bf16.gmra.mxu2 %v5322_v58 }
 0x492   :  { %3727 = vmatmul.bf16.gmra.mxu3 %v5326_v39 }
 0x493   :  { %3896 = vmatmul.bf16.gmra.mxu0 %v5330_v9  ;;  %3947 = vst [vmem:[%s8548_s2 + $0x168] sm:$0xff] %v3855_v38  ;;  %v4010_v45 = vadd.f32 %v4009_v26, %v3855_v38  ;;  %v4080_v60 = vmul.f32 %v3855_v38, %v3855_v38  ;;  %v8634_v38 = vld [vmem:[#allocation5_spill] sm:$0xff] }
 0x494   :  { %v3519_v50 = vpop.f32.mrf.mxu2 }
 0x495   :  { %v4143_v29 = vadd.f32 %v4142_v5, %v4080_v60  ;;  %v3520_v0 = vadd.f32 %v3519_v50, %v3351_v19  ;;  %v3688_v30 = vpop.f32.mrf.mxu3 }
 0x496   :  { %v3352_v27 = vpop.f32.mrf.mxu1 }
 0x497   :  { %v3689_v3 = vadd.f32 %v3688_v30, %v3520_v0  ;;  %v3353_v11 = vadd.f32 %v3352_v27, %v8630_v8 }
 0x498   :  { %v3859_v1 = vpop.f32.mrf.mxu0 }
 0x499   :  { %v3858_v42 = vadd.f32 %v3857_v35, %v3689_v3 }
 0x49b   :  { %3948 = vst [vmem:[%s8548_s2 + $0x170] sm:$0xff] %v3858_v42  ;;  %v4011_v55 = vadd.f32 %v4010_v45, %v3858_v42  ;;  %v4081_v34 = vmul.f32 %v3858_v42, %v3858_v42  ;;  %v8635_v42 = vld [vmem:[#allocation6_spill] sm:$0xff] }
 0x49c   :  { %v3521_v53 = vpop.f32.mrf.mxu2 }
 0x49d   :  { %v4144_v14 = vadd.f32 %v4143_v29, %v4081_v34  ;;  %v3522_v18 = vadd.f32 %v3521_v53, %v3353_v11  ;;  %v3690_v59 = vpop.f32.mrf.mxu3 }
 0x49e   :  { %v3355_v57 = vpop.f32.mrf.mxu1 }
 0x49f   :  { %v3691_v31 = vadd.f32 %v3690_v59, %v3522_v18  ;;  %v3356_v56 = vadd.f32 %v3355_v57, %v8631_v44 }
 0x4a0   :  { %v3862_v4 = vpop.f32.mrf.mxu0 }
 0x4a1   :  { %v3860_v54 = vadd.f32 %v3859_v1, %v3691_v31 }
 0x4a3   :  { %3949 = vst [vmem:[%s8548_s2 + $0x178] sm:$0xff] %v3860_v54  ;;  %v4012_v16 = vadd.f32 %v4011_v55, %v3860_v54  ;;  %v4082_v13 = vmul.f32 %v3860_v54, %v3860_v54  ;;  %v8636_v54 = vld [vmem:[#allocation7_spill] sm:$0xff] }
 0x4a4   :  { %v3524_v33 = vpop.f32.mrf.mxu2 }
 0x4a5   :  { %v4145_v10 = vadd.f32 %v4144_v14, %v4082_v13  ;;  %v3525_v36 = vadd.f32 %v3524_v33, %v3356_v56  ;;  %v3693_v40 = vpop.f32.mrf.mxu3 }
 0x4a6   :  { %v3357_v24 = vpop.f32.mrf.mxu1 }
 0x4a7   :  { %v3694_v43 = vadd.f32 %v3693_v40, %v3525_v36  ;;  %v3358_v2 = vadd.f32 %v3357_v24, %v8632_v28 }
 0x4a8   :  { %v3864_v52 = vpop.f32.mrf.mxu0 }
 0x4a9   :  { %v3863_v49 = vadd.f32 %v3862_v4, %v3694_v43 }
 0x4ab   :  { %3950 = vst [vmem:[%s8548_s2 + $0x180] sm:$0xff] %v3863_v49  ;;  %v4013_v61 = vadd.f32 %v4012_v16, %v3863_v49  ;;  %v4083_v25 = vmul.f32 %v3863_v49, %v3863_v49  ;;  %v8637_v49 = vld [vmem:[#allocation8_spill] sm:$0xff] }
 0x4ac   :  { %v3526_v46 = vpop.f32.mrf.mxu2 }
 0x4ad   :  { %v4146_v51 = vadd.f32 %v4145_v10, %v4083_v25  ;;  %v3527_v17 = vadd.f32 %v3526_v46, %v3358_v2  ;;  %v3695_v6 = vpop.f32.mrf.mxu3 }
 0x4ae   :  { %v3360_v20 = vpop.f32.mrf.mxu1 }
 0x4af   :  { %v3696_v26 = vadd.f32 %v3695_v6, %v3527_v17  ;;  %v3361_v63 = vadd.f32 %v3360_v20, %v8633_v37 }
 0x4b0   :  { %v3867_v15 = vpop.f32.mrf.mxu0 }
 0x4b1   :  { %v3865_v62 = vadd.f32 %v3864_v52, %v3696_v26 }
 0x4b3   :  { %3951 = vst [vmem:[%s8548_s2 + $0x188] sm:$0xff] %v3865_v62  ;;  %v4014_v22 = vadd.f32 %v4013_v61, %v3865_v62  ;;  %v4084_v21 = vmul.f32 %v3865_v62, %v3865_v62  ;;  %v8638_v62 = vld [vmem:[#allocation9_spill] sm:$0xff] }
 0x4b4   :  { %v3529_v5 = vpop.f32.mrf.mxu2 }
 0x4b5   :  { %v4147_v48 = vadd.f32 %v4146_v51, %v4084_v21  ;;  %v3530_v32 = vadd.f32 %v3529_v5, %v3361_v63  ;;  %v3698_v7 = vpop.f32.mrf.mxu3 }
 0x4b6   :  { %v3362_v58 = vpop.f32.mrf.mxu1 }
 0x4b7   :  { %v3699_v47 = vadd.f32 %v3698_v7, %v3530_v32  ;;  %v3363_v45 = vadd.f32 %v3362_v58, %v8634_v38 }
 0x4b8   :  { %v3869_v39 = vpop.f32.mrf.mxu0 }
 0x4b9   :  { %v3868_v9 = vadd.f32 %v3867_v15, %v3699_v47 }
 0x4bb   :  { %3952 = vst [vmem:[%s8548_s2 + $0x190] sm:$0xff] %v3868_v9  ;;  %v4015_v41 = vadd.f32 %v4014_v22, %v3868_v9  ;;  %v4085_v35 = vmul.f32 %v3868_v9, %v3868_v9  ;;  %v8639_v9 = vld [vmem:[#allocation10_spill] sm:$0xff] }
 0x4bc   :  { %v3531_v60 = vpop.f32.mrf.mxu2 }
 0x4bd   :  { %v4148_v12 = vadd.f32 %v4147_v48, %v4085_v35  ;;  %v3532_v19 = vadd.f32 %v3531_v60, %v3363_v45  ;;  %v3700_v50 = vpop.f32.mrf.mxu3 }
 0x4be   :  { %v3365_v29 = vpop.f32.mrf.mxu1 }
 0x4bf   :  { %v3701_v0 = vadd.f32 %v3700_v50, %v3532_v19  ;;  %v3366_v55 = vadd.f32 %v3365_v29, %v8635_v42 }
 0x4c0   :  { %v3872_v30 = vpop.f32.mrf.mxu0 }
 0x4c1   :  { %v3870_v27 = vadd.f32 %v3869_v39, %v3701_v0 }
 0x4c3   :  { %3953 = vst [vmem:[%s8548_s2 + $0x198] sm:$0xff] %v3870_v27  ;;  %v4016_v3 = vadd.f32 %v4015_v41, %v3870_v27  ;;  %v4086_v1 = vmul.f32 %v3870_v27, %v3870_v27  ;;  %v8640_v27 = vld [vmem:[#allocation12_spill] sm:$0xff] }
 0x4c4   :  { %v3534_v34 = vpop.f32.mrf.mxu2 }
 0x4c5   :  { %v4149_v8 = vadd.f32 %v4148_v12, %v4086_v1  ;;  %v3535_v11 = vadd.f32 %v3534_v34, %v3366_v55  ;;  %v3703_v53 = vpop.f32.mrf.mxu3 }
 0x4c6   :  { %v3367_v14 = vpop.f32.mrf.mxu1 }
 0x4c7   :  { %v3704_v18 = vadd.f32 %v3703_v53, %v3535_v11  ;;  %v3368_v16 = vadd.f32 %v3367_v14, %v8636_v54 }
 0x4c8   :  { %v3874_v59 = vpop.f32.mrf.mxu0 }
 0x4c9   :  { %v3873_v57 = vadd.f32 %v3872_v30, %v3704_v18 }
 0x4cb   :  { %3954 = vst [vmem:[%s8548_s2 + $0x1a0] sm:$0xff] %v3873_v57  ;;  %v4017_v31 = vadd.f32 %v4016_v3, %v3873_v57  ;;  %v4087_v4 = vmul.f32 %v3873_v57, %v3873_v57  ;;  %v8641_v57 = vld [vmem:[#allocation14_spill] sm:$0xff] }
 0x4cc   :  { %v3536_v13 = vpop.f32.mrf.mxu2 }
 0x4cd   :  { %v4150_v44 = vadd.f32 %v4149_v8, %v4087_v4  ;;  %v3537_v56 = vadd.f32 %v3536_v13, %v3368_v16  ;;  %v3705_v33 = vpop.f32.mrf.mxu3 }
 0x4ce   :  { %v3370_v10 = vpop.f32.mrf.mxu1 }
 0x4cf   :  { %v3706_v36 = vadd.f32 %v3705_v33, %v3537_v56  ;;  %v3371_v61 = vadd.f32 %v3370_v10, %v8637_v49 }
 0x4d0   :  { %v3877_v40 = vpop.f32.mrf.mxu0 }
 0x4d1   :  { %v3875_v24 = vadd.f32 %v3874_v59, %v3706_v36 }
 0x4d3   :  { %3955 = vst [vmem:[%s8548_s2 + $0x1a8] sm:$0xff] %v3875_v24  ;;  %v4018_v43 = vadd.f32 %v4017_v31, %v3875_v24  ;;  %v4088_v52 = vmul.f32 %v3875_v24, %v3875_v24  ;;  %v8642_v24 = vld [vmem:[#allocation16_spill] sm:$0xff] }
 0x4d4   :  { %v3539_v25 = vpop.f32.mrf.mxu2 }
 0x4d5   :  { %v4151_v28 = vadd.f32 %v4150_v44, %v4088_v52  ;;  %v3540_v2 = vadd.f32 %v3539_v25, %v3371_v61  ;;  %v3708_v46 = vpop.f32.mrf.mxu3 }
 0x4d6   :  { %v3372_v51 = vpop.f32.mrf.mxu1 }
 0x4d7   :  { %v3709_v17 = vadd.f32 %v3708_v46, %v3540_v2  ;;  %v3373_v22 = vadd.f32 %v3372_v51, %v8638_v62 }
 0x4d8   :  { %v3879_v6 = vpop.f32.mrf.mxu0 }
 0x4d9   :  { %v3878_v20 = vadd.f32 %v3877_v40, %v3709_v17 }
 0x4db   :  { %3956 = vst [vmem:[%s8548_s2 + $0x1b0] sm:$0xff] %v3878_v20  ;;  %v4019_v26 = vadd.f32 %v4018_v43, %v3878_v20  ;;  %v4089_v15 = vmul.f32 %v3878_v20, %v3878_v20  ;;  %v8643_v20 = vld [vmem:[#allocation18_spill] sm:$0xff] }
 0x4dc   :  { %v3541_v21 = vpop.f32.mrf.mxu2 }
 0x4dd   :  { %v4152_v37 = vadd.f32 %v4151_v28, %v4089_v15  ;;  %v3542_v63 = vadd.f32 %v3541_v21, %v3373_v22  ;;  %v3710_v5 = vpop.f32.mrf.mxu3 }
 0x4de   :  { %v3375_v48 = vpop.f32.mrf.mxu1 }
 0x4df   :  { %v3711_v32 = vadd.f32 %v3710_v5, %v3542_v63  ;;  %v3376_v41 = vadd.f32 %v3375_v48, %v8639_v9 }
 0x4e0   :  { %v3882_v7 = vpop.f32.mrf.mxu0 }
 0x4e1   :  { %v3880_v58 = vadd.f32 %v3879_v6, %v3711_v32 }
 0x4e3   :  { %3957 = vst [vmem:[%s8548_s2 + $0x1b8] sm:$0xff] %v3880_v58  ;;  %v4020_v47 = vadd.f32 %v4019_v26, %v3880_v58  ;;  %v4090_v39 = vmul.f32 %v3880_v58, %v3880_v58 }
 0x4e4   :  { %v3544_v35 = vpop.f32.mrf.mxu2 }
 0x4e5   :  { %v4153_v38 = vadd.f32 %v4152_v37, %v4090_v39  ;;  %v3545_v45 = vadd.f32 %v3544_v35, %v3376_v41  ;;  %v3713_v60 = vpop.f32.mrf.mxu3 }
 0x4e6   :  { %v3377_v12 = vpop.f32.mrf.mxu1 }
 0x4e7   :  { %v3714_v19 = vadd.f32 %v3713_v60, %v3545_v45  ;;  %v3378_v3 = vadd.f32 %v3377_v12, %v8640_v27 }
 0x4e8   :  { %v3884_v50 = vpop.f32.mrf.mxu0 }
 0x4e9   :  { %v3883_v29 = vadd.f32 %v3882_v7, %v3714_v19  ;;  %v8644_v7 = vld [vmem:[#allocation20_spill] sm:$0xff] }
 0x4eb   :  { %3958 = vst [vmem:[%s8548_s2 + $0x1c0] sm:$0xff] %v3883_v29  ;;  %v4021_v0 = vadd.f32 %v4020_v47, %v3883_v29  ;;  %v4091_v30 = vmul.f32 %v3883_v29, %v3883_v29 }
 0x4ec   :  { %v3546_v1 = vpop.f32.mrf.mxu2 }
 0x4ed   :  { %v4154_v42 = vadd.f32 %v4153_v38, %v4091_v30  ;;  %v3547_v55 = vadd.f32 %v3546_v1, %v3378_v3  ;;  %v3715_v34 = vpop.f32.mrf.mxu3 }
 0x4ee   :  { %v3380_v8 = vpop.f32.mrf.mxu1 }
 0x4ef   :  { %v3716_v11 = vadd.f32 %v3715_v34, %v3547_v55  ;;  %v3381_v31 = vadd.f32 %v3380_v8, %v8641_v57 }
 0x4f0   :  { %v3887_v53 = vpop.f32.mrf.mxu0 }
 0x4f1   :  { %v3885_v14 = vadd.f32 %v3884_v50, %v3716_v11  ;;  %v8645_v50 = vld [vmem:[#allocation22_spill] sm:$0xff] }
 0x4f3   :  { %3959 = vst [vmem:[%s8548_s2 + $0x1c8] sm:$0xff] %v3885_v14  ;;  %v4022_v18 = vadd.f32 %v4021_v0, %v3885_v14  ;;  %v4092_v59 = vmul.f32 %v3885_v14, %v3885_v14 }
 0x4f4   :  { %v3549_v4 = vpop.f32.mrf.mxu2 }
 0x4f5   :  { %v4155_v54 = vadd.f32 %v4154_v42, %v4092_v59  ;;  %v3550_v16 = vadd.f32 %v3549_v4, %v3381_v31  ;;  %v3718_v13 = vpop.f32.mrf.mxu3 }
 0x4f6   :  { %v3382_v44 = vpop.f32.mrf.mxu1 }
 0x4f7   :  { %v3719_v56 = vadd.f32 %v3718_v13, %v3550_v16  ;;  %v3383_v43 = vadd.f32 %v3382_v44, %v8642_v24 }
 0x4f8   :  { %v3889_v33 = vpop.f32.mrf.mxu0 }
 0x4f9   :  { %v3888_v10 = vadd.f32 %v3887_v53, %v3719_v56 }
 0x4fb   :  { %3960 = vst [vmem:[%s8548_s2 + $0x1d0] sm:$0xff] %v3888_v10  ;;  %v4023_v36 = vadd.f32 %v4022_v18, %v3888_v10  ;;  %v4093_v40 = vmul.f32 %v3888_v10, %v3888_v10 }
 0x4fc   :  { %v3551_v52 = vpop.f32.mrf.mxu2 }
 0x4fd   :  { %v4156_v49 = vadd.f32 %v4155_v54, %v4093_v40  ;;  %v3552_v61 = vadd.f32 %v3551_v52, %v3383_v43  ;;  %v3720_v25 = vpop.f32.mrf.mxu3 }
 0x4fe   :  { %v3385_v28 = vpop.f32.mrf.mxu1 }
 0x4ff   :  { %v3721_v2 = vadd.f32 %v3720_v25, %v3552_v61  ;;  %v3386_v26 = vadd.f32 %v3385_v28, %v8643_v20 }
 0x500   :  { %v3892_v51 = vpop.f32.mrf.mxu0 }
 0x501   :  { %v3890_v46 = vadd.f32 %v3889_v33, %v3721_v2 }
 0x503   :  { %3961 = vst [vmem:[%s8548_s2 + $0x1d8] sm:$0xff] %v3890_v46  ;;  %v4024_v17 = vadd.f32 %v4023_v36, %v3890_v46  ;;  %v4094_v6 = vmul.f32 %v3890_v46, %v3890_v46 }
 0x504   :  { %v3554_v15 = vpop.f32.mrf.mxu2 }
 0x505   :  { %v4157_v62 = vadd.f32 %v4156_v49, %v4094_v6  ;;  %v3555_v22 = vadd.f32 %v3554_v15, %v3386_v26  ;;  %v3723_v21 = vpop.f32.mrf.mxu3 }
 0x506   :  { %v3387_v37 = vpop.f32.mrf.mxu1 }
 0x507   :  { %v3724_v63 = vadd.f32 %v3723_v21, %v3555_v22  ;;  %v3388_v58 = vadd.f32 %v3387_v37, %v8644_v7 }
 0x508   :  { %v3894_v47 = vpop.f32.mrf.mxu0 }
 0x509   :  { %v3893_v5 = vadd.f32 %v3892_v51, %v3724_v63 }
 0x50b   :  { %3962 = vst [vmem:[%s8548_s2 + $0x1e0] sm:$0xff] %v3893_v5  ;;  %v4025_v48 = vadd.f32 %v4024_v17, %v3893_v5  ;;  %v4095_v32 = vmul.f32 %v3893_v5, %v3893_v5 }
 0x50c   :  { %v3556_v39 = vpop.f32.mrf.mxu2 }
 0x50d   :  { %v4158_v9 = vadd.f32 %v4157_v62, %v4095_v32  ;;  %v3557_v41 = vadd.f32 %v3556_v39, %v3388_v58  ;;  %v3725_v35 = vpop.f32.mrf.mxu3 }
 0x50e   :  { %v3390_v38 = vpop.f32.mrf.mxu1 }
 0x50f   :  { %v3726_v45 = vadd.f32 %v3725_v35, %v3557_v41  ;;  %v3391_v29 = vadd.f32 %v3390_v38, %v8645_v50 }
 0x510   :  { %v3897_v1 = vpop.f32.mrf.mxu0 }
 0x511   :  { %v3895_v60 = vadd.f32 %v3894_v47, %v3726_v45 }
 0x513   :  { %3963 = vst [vmem:[%s8548_s2 + $0x1e8] sm:$0xff] %v3895_v60  ;;  %v4026_v12 = vadd.f32 %v4025_v48, %v3895_v60  ;;  %v4096_v19 = vmul.f32 %v3895_v60, %v3895_v60 }
 0x514   :  { %v3559_v0 = vpop.f32.mrf.mxu2 }
 0x515   :  { %v4159_v30 = vadd.f32 %v4158_v9, %v4096_v19  ;;  %v3560_v27 = vadd.f32 %v3559_v0, %v3391_v29  ;;  %v3728_v3 = vpop.f32.mrf.mxu3 }
 0x516   :  { %v3392_v55 = vpop.f32.mrf.mxu1 }
 0x517   :  { %v3729_v42 = vadd.f32 %v3728_v3, %v3560_v27  ;;  %v3393_v53 = vadd.f32 %v3392_v55, %v7733_v23 }
 0x518   :  { %v3899_v4 = vpop.f32.mrf.mxu0 }
 0x519   :  { %v3898_v34 = vadd.f32 %v3897_v1, %v3729_v42 }
 0x51b   :  { %3964 = vst [vmem:[%s8548_s2 + $0x1f0] sm:$0xff] %v3898_v34  ;;  %v4027_v8 = vadd.f32 %v4026_v12, %v3898_v34  ;;  %v4097_v11 = vmul.f32 %v3898_v34, %v3898_v34 }
 0x51c   :  { %v3561_v14 = vpop.f32.mrf.mxu2 }
 0x51d   :  { %v4160_v18 = vadd.f32 %v4159_v30, %v4097_v11  ;;  %v3562_v59 = vadd.f32 %v3561_v14, %v3393_v53  ;;  %v3730_v57 = vpop.f32.mrf.mxu3 }
 0x51f   :  { %v3731_v31 = vadd.f32 %v3730_v57, %v3562_v59 }
 0x521   :  { %v3900_v54 = vadd.f32 %v3899_v4, %v3731_v31 }
 0x523   :  { %3965 = vst [vmem:[%s8548_s2 + $0x1f8] sm:$0xff] %v3900_v54  ;;  %v4028_v16 = vadd.f32 %v4027_v8, %v3900_v54  ;;  %v4098_v13 = vmul.f32 %v3900_v54, %v3900_v54 }
 0x525   :  { %v4029_v44 = vrot.slane %v4028_v16, 4  ;;  %v4161_v56 = vadd.f32 %v4160_v18, %v4098_v13 }
 0x527   :  { %v4030_v33 = vadd.f32 %v4029_v44, %v4028_v16  ;;  %v4162_v10 = vrot.slane %v4161_v56, 4 }
 0x529   :  { %v4031_v36 = vrot.slane %v4030_v33, 2  ;;  %v4163_v40 = vadd.f32 %v4162_v10, %v4161_v56 }
 0x52b   :  { %v4032_v23 = vadd.f32 %v4031_v36, %v4030_v33  ;;  %v4164_v24 = vrot.slane %v4163_v40, 2 }
 0x52d   :  { %v4033_v43 = vrot.slane %v4032_v23, 1  ;;  %v4165_v52 = vadd.f32 %v4164_v24, %v4163_v40 }
 0x52f   :  { %v4166_v49 = vrot.slane %v4165_v52, 1  ;;  %v4034_v61 = vadd.f32 %v4033_v43, %v4032_v23 }
 0x531   :  { %v4167_v25 = vadd.f32 %v4166_v49, %v4165_v52 }
 0x533   :  { %v4169_v28 = vsel %vm4168_vm0, %v4034_v61, %v4167_v25 }
 0x534   :  { %4170 = vst [vmem:[%s8549_s3] sm:$0x3] %v4169_v28 }

</bundles_post_ra>
